<compile_context>
chip_gen: v5e
topology: v5e:2x2
jax: 0.10.0
libtpu: 0.0.40
codegen_flags: <defaults>
</compile_context>

<pallas_src>
import functools
import math

import jax
import jax.numpy as jnp
from jax.experimental import pallas as pl
from jax.experimental.pallas import tpu as pltpu


_VMEM_LIMIT = 32 * 1024 * 1024


def _cparams(sem=None):
    return pltpu.CompilerParams(dimension_semantics=sem,
                                vmem_limit_bytes=_VMEM_LIMIT)


# ----------------------------- Pallas kernels ------------------------------

def _conv1d_kernel(x_ref, w_ref, b_ref, *rest, K, L_out, relu, has_res, has_post):
    """1-D conv via im2col: K shifted windows lane-concatenated into one (L_out, K*Cin)
    tile, contracted against the (K*Cin, Cout) bf16 weight in a single MXU matmul with
    f32 accumulation.  Epilogue (bias, residual add, folded-BN affine, ReLU) in f32."""
    idx = 0
    r_ref = s_ref = t_ref = None
    if has_res:
        r_ref = rest[idx]; idx += 1
    if has_post:
        s_ref = rest[idx]; t_ref = rest[idx + 1]; idx += 2
    o_ref = rest[idx]

    if K > 1:
        xcol = jnp.concatenate([x_ref[pl.ds(k, L_out), :] for k in range(K)], axis=-1)
    else:
        xcol = x_ref[pl.ds(0, L_out), :]
    y = jnp.dot(xcol.astype(jnp.bfloat16), w_ref[...],
                preferred_element_type=jnp.float32) + b_ref[...]
    if has_res:
        y = y + r_ref[...]
    if has_post:
        y = y * s_ref[...] + t_ref[...]
    if relu:
        y = jnp.maximum(y, 0.0)
    o_ref[...] = y.astype(o_ref.dtype)


def conv1d(x_pad, w, bias, *, residual=None, post_scale=None, post_shift=None, relu=False):
    """x_pad: (B, L_pad, Cin) already padded, channels-last.  w: (K, Cin, Cout) bf16.
    Variants (residual / post affine) are selected statically: no zero tensors streamed."""
    B, L_pad, Cin = x_pad.shape
    K, _, Cout = w.shape
    L_out = L_pad - K + 1
    w2d = w.reshape(K * Cin, Cout)                       # contiguous reshape; k-major rows
    has_res = residual is not None
    has_post = post_scale is not None

    inputs = [x_pad, w2d, bias.reshape(1, Cout)]
    in_specs = [
        pl.BlockSpec((None, L_pad, Cin), lambda b: (b, 0, 0)),
        pl.BlockSpec((K * Cin, Cout), lambda b: (0, 0)),
        pl.BlockSpec((1, Cout), lambda b: (0, 0)),
    ]
    if has_res:
        inputs.append(residual)
        in_specs.append(pl.BlockSpec((None, L_out, Cout), lambda b: (b, 0, 0)))
    if has_post:
        inputs += [post_scale.reshape(1, Cout), post_shift.reshape(1, Cout)]
        in_specs += [pl.BlockSpec((1, Cout), lambda b: (0, 0)),
                     pl.BlockSpec((1, Cout), lambda b: (0, 0))]

    kern = functools.partial(_conv1d_kernel, K=K, L_out=L_out, relu=relu,
                             has_res=has_res, has_post=has_post)
    return pl.pallas_call(
        kern,
        out_shape=jax.ShapeDtypeStruct((B, L_out, Cout), jnp.float32),
        grid=(B,),
        in_specs=in_specs,
        out_specs=pl.BlockSpec((None, L_out, Cout), lambda b: (b, 0, 0)),
        compiler_params=_cparams(("parallel",)),
    )(*inputs)


def _maxpool_pe_kernel(x_ref, pe_ref, o_ref, *, C):
    # x block is (T, 2C): lanes [0:C] = even rows, [C:2C] = odd rows (free reshape outside).
    x = x_ref[...]
    o_ref[...] = (jnp.maximum(x[:, :C], x[:, C:]) + pe_ref[...]).astype(o_ref.dtype)


def maxpool2_add_pe(x, pe):
    """MaxPool1d(kernel=2, stride=2) fused with the PositionalEncoding add. x: (B, L, C)."""
    B, L, C = x.shape
    T = L // 2
    x2 = x[:, :2 * T, :].reshape(B, T, 2 * C)           # contiguous reshape
    return pl.pallas_call(
        functools.partial(_maxpool_pe_kernel, C=C),
        out_shape=jax.ShapeDtypeStruct((B, T, C), jnp.float32),
        grid=(B,),
        in_specs=[pl.BlockSpec((None, T, 2 * C), lambda b: (b, 0, 0)),
                  pl.BlockSpec((T, C), lambda b: (0, 0))],
        out_specs=pl.BlockSpec((None, T, C), lambda b: (b, 0, 0)),
        compiler_params=_cparams(("parallel",)),
    )(x2, pe)


def _qkv_kernel(h_ref, w_ref, b_ref, o_ref):
    # h block is (T, C) channels-last.  Contract over T (transposed-LHS matmul) so the
    # (B, T, C) -> (B, C, T) transpose never touches HBM.  One fused (T, 3T) bf16 matmul,
    # one lane-dense (C, 3T) store.
    qkv = jax.lax.dot_general(h_ref[...].astype(jnp.bfloat16), w_ref[...],
                              (((0,), (0,)), ((), ())),
                              preferred_element_type=jnp.float32) + b_ref[...]
    o_ref[...] = qkv.astype(o_ref.dtype)


def qkv_project(h, w_qkv, b_qkv):
    """h: (B, T, C) channels-last.  Returns one lane-dense (B, C, 3T) buffer with
    [q | k | v] along the last axis (1/temperature pre-folded into the q columns)."""
    B, T, C = h.shape
    return pl.pallas_call(
        _qkv_kernel,
        out_shape=jax.ShapeDtypeStruct((B, C, 3 * T), jnp.float32),
        grid=(B,),
        in_specs=[pl.BlockSpec((None, T, C), lambda b: (b, 0, 0)),
                  pl.BlockSpec((T, 3 * T), lambda b: (0, 0)),
                  pl.BlockSpec((1, 3 * T), lambda b: (0, 0))],
        out_specs=pl.BlockSpec((None, C, 3 * T), lambda b: (b, 0, 0)),
        compiler_params=_cparams(("parallel",)),
    )(h, w_qkv, b_qkv.reshape(1, 3 * T))


def _attention_kernel(q_ref, k_ref, v_ref, o_ref):
    # All (batch, head) pairs in one call; 1/temperature already folded into q.
    q = q_ref[...].astype(jnp.bfloat16)
    k = k_ref[...].astype(jnp.bfloat16)
    s = jnp.einsum('gqd,gkd->gqk', q, k, preferred_element_type=jnp.float32)
    s = s - jnp.max(s, axis=-1, keepdims=True)
    p = jnp.exp(s)
    p = p / jnp.sum(p, axis=-1, keepdims=True)              # exact f32 softmax
    o = jnp.einsum('gqk,gkd->gqd', p.astype(jnp.bfloat16),
                   v_ref[...].astype(jnp.bfloat16),
                   preferred_element_type=jnp.float32)
    o_ref[...] = o.astype(o_ref.dtype)
    # TODO(synk): the raw-view head split forces a (G, C, head_dim) output layout
    # (head_dim lanes); repacking to a lane-dense (B, C, T) in-kernel would need a
    # full vreg relinearization, so the (free) raw reshape is left to XLA instead.


def sdp_attention(q, k, v):
    """q, k, v: (B*n_head, C, head_dim) — the faithful raw-view head split."""
    G, C, hd = q.shape
    return pl.pallas_call(
        _attention_kernel,
        out_shape=jax.ShapeDtypeStruct((G, C, hd), jnp.float32),
        compiler_params=_cparams(),
    )(q, k, v)


def _final_ln_kernel(x_ref, w_ref, b_ref, g_ref, bb_ref, o_ref, *, eps):
    # fused linear_final + LayerNorm (over the model_dim = T axis)
    y = jnp.dot(x_ref[...].astype(jnp.bfloat16), w_ref[...],
                preferred_element_type=jnp.float32) + b_ref[...]
    mu = jnp.mean(y, axis=-1, keepdims=True)
    var = jnp.mean((y - mu) ** 2, axis=-1, keepdims=True)
    o_ref[...] = ((y - mu) * jax.lax.rsqrt(var + eps) * g_ref[...] + bb_ref[...]).astype(o_ref.dtype)


def final_linear_layernorm(ctx, wf, bf, gamma, beta, eps=1e-5):
    """ctx: (B, C, T)  ->  (B, C, T)."""
    B, C, T = ctx.shape
    return pl.pallas_call(
        functools.partial(_final_ln_kernel, eps=eps),
        out_shape=jax.ShapeDtypeStruct((B, C, T), jnp.float32),
        grid=(B,),
        in_specs=[pl.BlockSpec((None, C, T), lambda b: (b, 0, 0)),
                  pl.BlockSpec((T, T), lambda b: (0, 0)),
                  pl.BlockSpec((1, T), lambda b: (0, 0)),
                  pl.BlockSpec((1, T), lambda b: (0, 0)),
                  pl.BlockSpec((1, T), lambda b: (0, 0))],
        out_specs=pl.BlockSpec((None, C, T), lambda b: (b, 0, 0)),
        compiler_params=_cparams(("parallel",)),
    )(ctx, wf, bf.reshape(1, T), gamma.reshape(1, T), beta.reshape(1, T))


def _head_kernel(x_ref, w1_ref, b1_ref, w2_ref, b2_ref, o_ref, acc_ref):
    # Both head Linears fused; contraction over the flatten axis tiled by the grid.
    k = pl.program_id(0)

    @pl.when(k == 0)
    def _init():
        acc_ref[...] = jnp.zeros_like(acc_ref)

    acc_ref[...] += jnp.dot(x_ref[...].astype(jnp.bfloat16), w1_ref[...],
                            preferred_element_type=jnp.float32)

    @pl.when(k == pl.num_programs(0) - 1)
    def _finalize():
        z = (acc_ref[...] + b1_ref[...]).astype(jnp.bfloat16)
        y = jnp.dot(z, w2_ref[...], preferred_element_type=jnp.float32) + b2_ref[...]
        o_ref[...] = y.astype(o_ref.dtype)


def _pick_contraction_tile(K, candidates=(2560, 1280, 512, 256, 128)):
    for c in candidates:
        if K % c == 0:
            return c
    return K                                               # fallback: untiled


def linear_head(flat, w1, b1, w2, b2):
    """Fused head Linear(2C*T, 2C) -> Linear(2C, 1).  The (2C*T, 2C) weight is the
    largest HBM consumer of the whole model, so it is streamed in 128-multiple
    contraction tiles (bf16) with an f32 VMEM accumulator."""
    B, Kdim = flat.shape
    n1, n2 = w1.shape[1], w2.shape[1]
    tk = _pick_contraction_tile(Kdim)
    nk = Kdim // tk
    return pl.pallas_call(
        _head_kernel,
        out_shape=jax.ShapeDtypeStruct((B, n2), jnp.float32),
        grid=(nk,),
        in_specs=[pl.BlockSpec((B, tk), lambda k: (0, k)),
                  pl.BlockSpec((tk, n1), lambda k: (k, 0)),
                  pl.BlockSpec((1, n1), lambda k: (0, 0)),
                  pl.BlockSpec((n1, n2), lambda k: (0, 0)),
                  pl.BlockSpec((1, n2), lambda k: (0, 0))],
        out_specs=pl.BlockSpec((B, n2), lambda k: (0, 0)),
        scratch_shapes=[pltpu.VMEM((B, n1), jnp.float32)],
        compiler_params=_cparams(("arbitrary",)),
    )(flat, w1, b1.reshape(1, n1), w2, b2.reshape(1, n2))


# ------------------------------ JAX glue -----------------------------------

def reflect_pad_1d(x, left, right):
    """Reflection padding (no edge repeat) along axis 1 of (B, L, C)."""
    L = x.shape[1]
    parts = []
    if left > 0:
        parts.append(x[:, left:0:-1, :])
    parts.append(x)
    if right > 0:
        parts.append(x[:, L - 2:L - 2 - right:-1, :])
    return jnp.concatenate(parts, axis=1)


def zero_pad_1d(x, p):
    return jnp.pad(x, ((0, 0), (p, p), (0, 0)))
# TODO(synk): padding is done with XLA ops between pallas_calls (one extra activation
# round trip per conv stage); fusing the reflect/zero boundaries into the conv kernel
# would remove it, but the activations here are tiny next to the head-weight stream.


def make_pe(T, C):
    pos = jnp.arange(T, dtype=jnp.float32)[:, None]
    div = jnp.exp(jnp.arange(0, C, 2, dtype=jnp.float32) * (-(math.log(10000.0) / C)))
    pe = jnp.zeros((T, C), jnp.float32)
    pe = pe.at[:, 0::2].set(jnp.sin(pos * div))
    pe = pe.at[:, 1::2].set(jnp.cos(pos * div))
    return pe


def init_params(key, input_nc, C, T):
    """Raw parameters in the PyTorch layout (eval-mode BN with default running stats)."""
    keys = iter(jax.random.split(key, 32))

    def w(shape, scale=0.05):
        return (scale * jax.random.normal(next(keys), shape)).astype(jnp.float32)

    bn_s = jnp.full((C,), 1.0 / math.sqrt(1.0 + 1e-5), jnp.float32)   # eval-mode BN scale
    bn_t = jnp.zeros((C,), jnp.float32)                               # eval-mode BN shift
    p = {
        "w_main": w((7, input_nc, C)), "b_main": w((C,)),
        "w_res1": w((3, C, C)), "w_res2": w((3, C, C)),
        "res_bn1_s": bn_s, "res_bn1_t": bn_t,
        "res_bn2_s": bn_s, "res_bn2_t": bn_t,
        "wq": w((T, T)), "bq": w((T,)),
        "wk": w((T, T)), "bk": w((T,)),
        "wv": w((T, T)), "bv": w((T,)),
        "wf": w((T, T)), "bf": w((T,)),
        "ln_g": jnp.ones((T,), jnp.float32), "ln_b": jnp.zeros((T,), jnp.float32),
        "ff_bn_s": bn_s, "ff_bn_t": bn_t,
        "w_ff1": w((3, C, 2 * C)), "b_ff1": w((2 * C,)),
        "w_ff2": w((3, 2 * C, C)), "b_ff2": w((C,)),
        "pw_bn_s": bn_s, "pw_bn_t": bn_t,
        "w_pw1": w((3, C, 2 * C)), "b_pw1": w((2 * C,)),
        "w_pw2": w((3, 2 * C, 2 * C)), "b_pw2": w((2 * C,)),
        "w_l1": w((2 * C * T, 2 * C)), "b_l1": w((2 * C,)),
        "w_l2": w((2 * C, 1)), "b_l2": w((1,)),
    }
    return p


def prepare_params(p, temperature=0.4):
    """One-time (outside jit) parameter folding + bf16 cast of all MXU-side weights:
       * eval-mode BN folded into the adjacent convs (exact here: BN shift is 0, so the
         fold is also exact at zero-padded boundaries);
       * Pointwise BN kept as the epilogue affine of the FeedForward residual conv;
       * 1/temperature folded into the Q columns of the fused (T, 3T) QKV weight/bias;
       * head weight rows permuted from (channel, time) to (time, channel) flatten order
         so the channels-last activation flattens without a transpose."""
    C = p["w_res1"].shape[1]
    T = p["wq"].shape[0]
    bf16 = jnp.bfloat16
    pp = {}
    pp["w_main"] = p["w_main"].astype(bf16)
    pp["b_main"] = p["b_main"]

    pp["w_res1"] = (p["w_res1"] * p["res_bn1_s"][None, None, :]).astype(bf16)
    pp["b_res1"] = p["res_bn1_t"]
    pp["w_res2"] = (p["w_res2"] * p["res_bn2_s"][None, None, :]).astype(bf16)
    pp["b_res2"] = p["res_bn2_t"]

    pp["pe"] = make_pe(T, C)

    inv_t = 1.0 / temperature
    pp["w_qkv"] = jnp.concatenate([p["wq"] * inv_t, p["wk"], p["wv"]], axis=1).astype(bf16)
    pp["b_qkv"] = jnp.concatenate([p["bq"] * inv_t, p["bk"], p["bv"]])
    pp["wf"] = p["wf"].astype(bf16)
    pp["bf"] = p["bf"]
    pp["ln_g"], pp["ln_b"] = p["ln_g"], p["ln_b"]

    pp["w_ff1"] = (p["w_ff1"] * p["ff_bn_s"][None, :, None]).astype(bf16)
    pp["b_ff1"] = p["b_ff1"] + jnp.einsum("kio,i->o", p["w_ff1"], p["ff_bn_t"])
    pp["w_ff2"] = p["w_ff2"].astype(bf16)
    pp["b_ff2"] = p["b_ff2"]

    pp["pw_s"], pp["pw_t"] = p["pw_bn_s"], p["pw_bn_t"]
    pp["w_pw1"] = p["w_pw1"].astype(bf16)
    pp["b_pw1"] = p["b_pw1"]
    pp["w_pw2"] = p["w_pw2"].astype(bf16)
    pp["b_pw2"] = p["b_pw2"]

    out1 = p["w_l1"].shape[1]
    w_l1p = p["w_l1"].reshape(2 * C, T, out1).transpose(1, 0, 2).reshape(T * 2 * C, out1)
    pp["w_l1p"] = w_l1p.astype(bf16)
    pp["b_l1"] = p["b_l1"]
    pp["w_l2"] = p["w_l2"].astype(bf16)
    pp["b_l2"] = p["b_l2"]
    return pp


def enformer_forward(pp, x_ncl, *, n_head=5):
    """x_ncl: (B, input_nc, L) in the PyTorch NCL convention. pp = prepare_params(raw)."""
    B, _, L = x_ncl.shape
    x = jnp.transpose(x_ncl, (0, 2, 1))                     # (B, L, Cin) channels-last

    # ---- self.model ----
    h = reflect_pad_1d(x, 3, 2)                             # ReflectionPad1d((3,2))
    h = zero_pad_1d(h, 3)                                   # Conv1d padding=3 (zeros)
    h = conv1d(h, pp["w_main"], pp["b_main"])               # (B, L+5, C)
    r = reflect_pad_1d(h, 1, 1)
    r = conv1d(r, pp["w_res1"], pp["b_res1"], relu=True)    # conv + folded BN + ReLU
    r = reflect_pad_1d(r, 1, 1)
    h = conv1d(r, pp["w_res2"], pp["b_res2"], residual=h)   # conv + folded BN + skip
    h = maxpool2_add_pe(h, pp["pe"])                        # (B, T, C)

    B_, T, C = h.shape
    hd = T // n_head

    # ---- MultiHeadAttention (model_dim = T; Linear acts on the length axis) ----
    qkv = qkv_project(h, pp["w_qkv"], pp["b_qkv"])          # (B, C, 3T) lane-dense
    # raw row-major reinterpretation == torch's q.view(B*n_head, -1, head_dim)
    q = qkv[:, :, :T].reshape(B * n_head, C, hd)
    k = qkv[:, :, T:2 * T].reshape(B * n_head, C, hd)
    v = qkv[:, :, 2 * T:].reshape(B * n_head, C, hd)
    ctx = sdp_attention(q, k, v)                            # (B*n_head, C, hd)
    ctx = ctx.reshape(B, C, T)                              # == torch .view
    mha = final_linear_layernorm(ctx, pp["wf"], pp["bf"], pp["ln_g"], pp["ln_b"])

    # ---- FeedForward (BN folded into conv1) + Pointwise BN/ReLU as residual epilogue ----
    x_ff = jnp.transpose(mha, (0, 2, 1))                    # (B, T, C) channels-last
    g = conv1d(zero_pad_1d(x_ff, 1), pp["w_ff1"], pp["b_ff1"], relu=True)
    h2 = conv1d(zero_pad_1d(g, 1), pp["w_ff2"], pp["b_ff2"], residual=x_ff,
                post_scale=pp["pw_s"], post_shift=pp["pw_t"], relu=True)  # ReLU(BN(x+ff(x)))

    # ---- Pointwiseforward convs ----
    h2 = conv1d(zero_pad_1d(h2, 1), pp["w_pw1"], pp["b_pw1"])
    h2 = conv1d(zero_pad_1d(h2, 1), pp["w_pw2"], pp["b_pw2"])  # (B, T, 2C)

    # ---- Linear head (flatten without transpose: head weight rows pre-permuted) ----
    flat = h2.reshape(B, T * 2 * C)
    return linear_head(flat, pp["w_l1p"], pp["b_l1"], pp["w_l2"], pp["b_l2"])   # (B, 1)

# TODO(synk): train-mode Dropout masking and training-mode BatchNorm batch statistics
# are not reproduced (eval-mode forward: Dropout = identity, BN = folded running stats).


if __name__ == "__main__":
    B, input_nc, L = 2, 4, 15          # -> seqT = (L + 5) // 2 = 10
    C = 32                             # conv_dim (scaled down from 256)
    n_head = 5                         # head_dim = seqT // 5 = 2
    T = (L + 5) // 2

    key = jax.random.PRNGKey(0)
    pkey, xkey = jax.random.split(key)
    raw_params = init_params(pkey, input_nc, C, T)
    params = prepare_params(raw_params, temperature=0.4)    # one-time folding, outside jit
    x = jax.random.normal(xkey, (B, input_nc, L), dtype=jnp.float32)

    fwd = jax.jit(functools.partial(enformer_forward, n_head=n_head))
    out = fwd(params, x)
    jax.block_until_ready(out)
    assert out.shape == (B, 1) and out.dtype == jnp.float32
    print("KERNEL_OK")
</pallas_src>

<mosaic_0001>
module attributes {stable_mosaic.version = 11 : i64} {
  func.func @_conv1d_kernel(%arg0: i32, %arg1: memref<1x22x32xf32, #tpu.memory_space<vmem>>, %arg2: memref<96x32xbf16, #tpu.memory_space<vmem>>, %arg3: memref<1x32xf32, #tpu.memory_space<vmem>>, %arg4: memref<1x20x32xf32, #tpu.memory_space<vmem>>, %arg5: memref<1x20x32xf32, #tpu.memory_space<vmem>>) attributes {dimension_semantics = [#tpu.dimension_semantics<parallel>], iteration_bounds = array<i64: 2>, scalar_prefetch = 0 : i64, scratch_operands = 0 : i64, tpu.core_type = #tpu.core_type<tc>, window_params = [{transform_indices = @transform_0, window_bounds = array<i64: 1, 22, 32>}, {pipeline_mode = #tpu.pipeline_mode<synchronous>, transform_indices = @transform_1, window_bounds = array<i64: 96, 32>}, {pipeline_mode = #tpu.pipeline_mode<synchronous>, transform_indices = @transform_2, window_bounds = array<i64: 1, 32>}, {transform_indices = @transform_3, window_bounds = array<i64: 1, 20, 32>}, {transform_indices = @transform_4, window_bounds = array<i64: 1, 20, 32>}]} {
    %c0 = arith.constant 0 : index
    %c0_0 = arith.constant 0 : index
    %c0_1 = arith.constant 0 : index
    %0 = vector.load %arg1[%c0, %c0_0, %c0_1] : memref<1x22x32xf32, #tpu.memory_space<vmem>>, vector<1x20x32xf32>
    %1 = vector.shape_cast %0 : vector<1x20x32xf32> to vector<20x32xf32>
    %c0_2 = arith.constant 0 : index
    %c1 = arith.constant 1 : index
    %c0_3 = arith.constant 0 : index
    %2 = vector.load %arg1[%c0_2, %c1, %c0_3] : memref<1x22x32xf32, #tpu.memory_space<vmem>>, vector<1x20x32xf32>
    %3 = vector.shape_cast %2 : vector<1x20x32xf32> to vector<20x32xf32>
    %c0_4 = arith.constant 0 : index
    %c2 = arith.constant 2 : index
    %c0_5 = arith.constant 0 : index
    %4 = vector.load %arg1[%c0_4, %c2, %c0_5] : memref<1x22x32xf32, #tpu.memory_space<vmem>>, vector<1x20x32xf32>
    %5 = vector.shape_cast %4 : vector<1x20x32xf32> to vector<20x32xf32>
    %6 = tpu.concatenate %1, %3, %5 in 1 : vector<20x32xf32>, vector<20x32xf32>, vector<20x32xf32> -> vector<20x96xf32>
    %7 = arith.truncf %6 : vector<20x96xf32> to vector<20x96xbf16>
    %c0_6 = arith.constant 0 : index
    %c0_7 = arith.constant 0 : index
    %8 = vector.load %arg2[%c0_6, %c0_7] : memref<96x32xbf16, #tpu.memory_space<vmem>>, vector<96x32xbf16>
    %cst = arith.constant dense<0.000000e+00> : vector<20x32xf32>
    %9 = tpu.matmul %7, %8, %cst {dimension_numbers = #tpu.dot_dimension_numbers<[1], [0], [0], [1], [0, 0, 1, 1], [], []>} : vector<20x96xbf16>, vector<96x32xbf16>, vector<20x32xf32> -> vector<20x32xf32>
    %c0_8 = arith.constant 0 : index
    %c0_9 = arith.constant 0 : index
    %10 = vector.load %arg3[%c0_8, %c0_9] : memref<1x32xf32, #tpu.memory_space<vmem>>, vector<1x32xf32>
    %11 = vector.broadcast %10 : vector<1x32xf32> to vector<20x32xf32>
    %12 = arith.addf %9, %11 : vector<20x32xf32>
    %c0_10 = arith.constant 0 : index
    %c0_11 = arith.constant 0 : index
    %c0_12 = arith.constant 0 : index
    %13 = vector.load %arg4[%c0_10, %c0_11, %c0_12] : memref<1x20x32xf32, #tpu.memory_space<vmem>>, vector<1x20x32xf32>
    %14 = vector.shape_cast %13 : vector<1x20x32xf32> to vector<20x32xf32>
    %15 = arith.addf %12, %14 : vector<20x32xf32>
    %c0_13 = arith.constant 0 : index
    %c0_14 = arith.constant 0 : index
    %c0_15 = arith.constant 0 : index
    %16 = vector.load %arg5[%c0_13, %c0_14, %c0_15] : memref<1x20x32xf32, #tpu.memory_space<vmem>>, vector<1x20x32xf32>
    %17 = vector.shape_cast %16 : vector<1x20x32xf32> to vector<20x32xf32>
    %18 = vector.shape_cast %15 : vector<20x32xf32> to vector<1x20x32xf32>
    tpu.vector_store %arg5[%c0_13, %c0_14, %c0_15], %18 {strides = array<i32>} : memref<1x20x32xf32, #tpu.memory_space<vmem>>, vector<1x20x32xf32>,
    return
  }
  func.func @transform_0(%arg0: i32) -> (i32, i32, i32) {
    %c0_i32 = arith.constant 0 : i32
    %c0_i32_0 = arith.constant 0 : i32
    %c0_i32_1 = arith.constant 0 : i32
    return %arg0, %c0_i32, %c0_i32_0 : i32, i32, i32
  }
  func.func @transform_1(%arg0: i32) -> (i32, i32) {
    %c0_i32 = arith.constant 0 : i32
    %c0_i32_0 = arith.constant 0 : i32
    %c0_i32_1 = arith.constant 0 : i32
    return %c0_i32, %c0_i32_0 : i32, i32
  }
  func.func @transform_2(%arg0: i32) -> (i32, i32) {
    %c0_i32 = arith.constant 0 : i32
    %c0_i32_0 = arith.constant 0 : i32
    %c0_i32_1 = arith.constant 0 : i32
    return %c0_i32, %c0_i32_0 : i32, i32
  }
  func.func @transform_3(%arg0: i32) -> (i32, i32, i32) {
    %c0_i32 = arith.constant 0 : i32
    %c0_i32_0 = arith.constant 0 : i32
    %c0_i32_1 = arith.constant 0 : i32
    return %arg0, %c0_i32, %c0_i32_0 : i32, i32, i32
  }
  func.func @transform_4(%arg0: i32) -> (i32, i32, i32) {
    %c0_i32 = arith.constant 0 : i32
    %c0_i32_0 = arith.constant 0 : i32
    %c0_i32_1 = arith.constant 0 : i32
    return %arg0, %c0_i32, %c0_i32_0 : i32, i32, i32
  }
}

module attributes {stable_mosaic.version = 11 : i64} {
  func.func @_conv1d_kernel(%arg0: i32, %arg1: memref<1x22x32xf32, #tpu.memory_space<vmem>>, %arg2: memref<96x32xbf16, #tpu.memory_space<vmem>>, %arg3: memref<1x32xf32, #tpu.memory_space<vmem>>, %arg4: memref<1x20x32xf32, #tpu.memory_space<vmem>>) attributes {dimension_semantics = [#tpu.dimension_semantics<parallel>], iteration_bounds = array<i64: 2>, scalar_prefetch = 0 : i64, scratch_operands = 0 : i64, tpu.core_type = #tpu.core_type<tc>, window_params = [{transform_indices = @transform_0, window_bounds = array<i64: 1, 22, 32>}, {pipeline_mode = #tpu.pipeline_mode<synchronous>, transform_indices = @transform_1, window_bounds = array<i64: 96, 32>}, {pipeline_mode = #tpu.pipeline_mode<synchronous>, transform_indices = @transform_2, window_bounds = array<i64: 1, 32>}, {transform_indices = @transform_3, window_bounds = array<i64: 1, 20, 32>}]} {
    %c0 = arith.constant 0 : index
    %c0_0 = arith.constant 0 : index
    %c0_1 = arith.constant 0 : index
    %0 = vector.load %arg1[%c0, %c0_0, %c0_1] : memref<1x22x32xf32, #tpu.memory_space<vmem>>, vector<1x20x32xf32>
    %1 = vector.shape_cast %0 : vector<1x20x32xf32> to vector<20x32xf32>
    %c0_2 = arith.constant 0 : index
    %c1 = arith.constant 1 : index
    %c0_3 = arith.constant 0 : index
    %2 = vector.load %arg1[%c0_2, %c1, %c0_3] : memref<1x22x32xf32, #tpu.memory_space<vmem>>, vector<1x20x32xf32>
    %3 = vector.shape_cast %2 : vector<1x20x32xf32> to vector<20x32xf32>
    %c0_4 = arith.constant 0 : index
    %c2 = arith.constant 2 : index
    %c0_5 = arith.constant 0 : index
    %4 = vector.load %arg1[%c0_4, %c2, %c0_5] : memref<1x22x32xf32, #tpu.memory_space<vmem>>, vector<1x20x32xf32>
    %5 = vector.shape_cast %4 : vector<1x20x32xf32> to vector<20x32xf32>
    %6 = tpu.concatenate %1, %3, %5 in 1 : vector<20x32xf32>, vector<20x32xf32>, vector<20x32xf32> -> vector<20x96xf32>
    %7 = arith.truncf %6 : vector<20x96xf32> to vector<20x96xbf16>
    %c0_6 = arith.constant 0 : index
    %c0_7 = arith.constant 0 : index
    %8 = vector.load %arg2[%c0_6, %c0_7] : memref<96x32xbf16, #tpu.memory_space<vmem>>, vector<96x32xbf16>
    %cst = arith.constant dense<0.000000e+00> : vector<20x32xf32>
    %9 = tpu.matmul %7, %8, %cst {dimension_numbers = #tpu.dot_dimension_numbers<[1], [0], [0], [1], [0, 0, 1, 1], [], []>} : vector<20x96xbf16>, vector<96x32xbf16>, vector<20x32xf32> -> vector<20x32xf32>
    %c0_8 = arith.constant 0 : index
    %c0_9 = arith.constant 0 : index
    %10 = vector.load %arg3[%c0_8, %c0_9] : memref<1x32xf32, #tpu.memory_space<vmem>>, vector<1x32xf32>
    %11 = vector.broadcast %10 : vector<1x32xf32> to vector<20x32xf32>
    %12 = arith.addf %9, %11 : vector<20x32xf32>
    %cst_10 = arith.constant 0.000000e+00 : f32
    %13 = vector.broadcast %cst_10 : f32 to vector<20x32xf32>
    %14 = arith.maximumf %12, %13 : vector<20x32xf32>
    %c0_11 = arith.constant 0 : index
    %c0_12 = arith.constant 0 : index
    %c0_13 = arith.constant 0 : index
    %15 = vector.load %arg4[%c0_11, %c0_12, %c0_13] : memref<1x20x32xf32, #tpu.memory_space<vmem>>, vector<1x20x32xf32>
    %16 = vector.shape_cast %15 : vector<1x20x32xf32> to vector<20x32xf32>
    %17 = vector.shape_cast %14 : vector<20x32xf32> to vector<1x20x32xf32>
    tpu.vector_store %arg4[%c0_11, %c0_12, %c0_13], %17 {strides = array<i32>} : memref<1x20x32xf32, #tpu.memory_space<vmem>>, vector<1x20x32xf32>,
    return
  }
  func.func @transform_0(%arg0: i32) -> (i32, i32, i32) {
    %c0_i32 = arith.constant 0 : i32
    %c0_i32_0 = arith.constant 0 : i32
    %c0_i32_1 = arith.constant 0 : i32
    return %arg0, %c0_i32, %c0_i32_0 : i32, i32, i32
  }
  func.func @transform_1(%arg0: i32) -> (i32, i32) {
    %c0_i32 = arith.constant 0 : i32
    %c0_i32_0 = arith.constant 0 : i32
    %c0_i32_1 = arith.constant 0 : i32
    return %c0_i32, %c0_i32_0 : i32, i32
  }
  func.func @transform_2(%arg0: i32) -> (i32, i32) {
    %c0_i32 = arith.constant 0 : i32
    %c0_i32_0 = arith.constant 0 : i32
    %c0_i32_1 = arith.constant 0 : i32
    return %c0_i32, %c0_i32_0 : i32, i32
  }
  func.func @transform_3(%arg0: i32) -> (i32, i32, i32) {
    %c0_i32 = arith.constant 0 : i32
    %c0_i32_0 = arith.constant 0 : i32
    %c0_i32_1 = arith.constant 0 : i32
    return %arg0, %c0_i32, %c0_i32_0 : i32, i32, i32
  }
}

module attributes {stable_mosaic.version = 11 : i64} {
  func.func @_conv1d_kernel(%arg0: i32, %arg1: memref<1x26x4xf32, #tpu.memory_space<vmem>>, %arg2: memref<28x32xbf16, #tpu.memory_space<vmem>>, %arg3: memref<1x32xf32, #tpu.memory_space<vmem>>, %arg4: memref<1x20x32xf32, #tpu.memory_space<vmem>>) attributes {dimension_semantics = [#tpu.dimension_semantics<parallel>], iteration_bounds = array<i64: 2>, scalar_prefetch = 0 : i64, scratch_operands = 0 : i64, tpu.core_type = #tpu.core_type<tc>, window_params = [{transform_indices = @transform_0, window_bounds = array<i64: 1, 26, 4>}, {pipeline_mode = #tpu.pipeline_mode<synchronous>, transform_indices = @transform_1, window_bounds = array<i64: 28, 32>}, {pipeline_mode = #tpu.pipeline_mode<synchronous>, transform_indices = @transform_2, window_bounds = array<i64: 1, 32>}, {transform_indices = @transform_3, window_bounds = array<i64: 1, 20, 32>}]} {
    %c0 = arith.constant 0 : index
    %c0_0 = arith.constant 0 : index
    %c0_1 = arith.constant 0 : index
    %0 = vector.load %arg1[%c0, %c0_0, %c0_1] : memref<1x26x4xf32, #tpu.memory_space<vmem>>, vector<1x20x4xf32>
    %1 = vector.shape_cast %0 : vector<1x20x4xf32> to vector<20x4xf32>
    %c0_2 = arith.constant 0 : index
    %c1 = arith.constant 1 : index
    %c0_3 = arith.constant 0 : index
    %2 = vector.load %arg1[%c0_2, %c1, %c0_3] : memref<1x26x4xf32, #tpu.memory_space<vmem>>, vector<1x20x4xf32>
    %3 = vector.shape_cast %2 : vector<1x20x4xf32> to vector<20x4xf32>
    %c0_4 = arith.constant 0 : index
    %c2 = arith.constant 2 : index
    %c0_5 = arith.constant 0 : index
    %4 = vector.load %arg1[%c0_4, %c2, %c0_5] : memref<1x26x4xf32, #tpu.memory_space<vmem>>, vector<1x20x4xf32>
    %5 = vector.shape_cast %4 : vector<1x20x4xf32> to vector<20x4xf32>
    %c0_6 = arith.constant 0 : index
    %c3 = arith.constant 3 : index
    %c0_7 = arith.constant 0 : index
    %6 = vector.load %arg1[%c0_6, %c3, %c0_7] : memref<1x26x4xf32, #tpu.memory_space<vmem>>, vector<1x20x4xf32>
    %7 = vector.shape_cast %6 : vector<1x20x4xf32> to vector<20x4xf32>
    %c0_8 = arith.constant 0 : index
    %c4 = arith.constant 4 : index
    %c0_9 = arith.constant 0 : index
    %8 = vector.load %arg1[%c0_8, %c4, %c0_9] : memref<1x26x4xf32, #tpu.memory_space<vmem>>, vector<1x20x4xf32>
    %9 = vector.shape_cast %8 : vector<1x20x4xf32> to vector<20x4xf32>
    %c0_10 = arith.constant 0 : index
    %c5 = arith.constant 5 : index
    %c0_11 = arith.constant 0 : index
    %10 = vector.load %arg1[%c0_10, %c5, %c0_11] : memref<1x26x4xf32, #tpu.memory_space<vmem>>, vector<1x20x4xf32>
    %11 = vector.shape_cast %10 : vector<1x20x4xf32> to vector<20x4xf32>
    %c0_12 = arith.constant 0 : index
    %c6 = arith.constant 6 : index
    %c0_13 = arith.constant 0 : index
    %12 = vector.load %arg1[%c0_12, %c6, %c0_13] : memref<1x26x4xf32, #tpu.memory_space<vmem>>, vector<1x20x4xf32>
    %13 = vector.shape_cast %12 : vector<1x20x4xf32> to vector<20x4xf32>
    %14 = tpu.concatenate %1, %3, %5, %7, %9, %11, %13 in 1 : vector<20x4xf32>, vector<20x4xf32>, vector<20x4xf32>, vector<20x4xf32>, vector<20x4xf32>, vector<20x4xf32>, vector<20x4xf32> -> vector<20x28xf32>
    %15 = arith.truncf %14 : vector<20x28xf32> to vector<20x28xbf16>
    %c0_14 = arith.constant 0 : index
    %c0_15 = arith.constant 0 : index
    %16 = vector.load %arg2[%c0_14, %c0_15] : memref<28x32xbf16, #tpu.memory_space<vmem>>, vector<28x32xbf16>
    %cst = arith.constant dense<0.000000e+00> : vector<20x32xf32>
    %17 = tpu.matmul %15, %16, %cst {dimension_numbers = #tpu.dot_dimension_numbers<[1], [0], [0], [1], [0, 0, 1, 1], [], []>} : vector<20x28xbf16>, vector<28x32xbf16>, vector<20x32xf32> -> vector<20x32xf32>
    %c0_16 = arith.constant 0 : index
    %c0_17 = arith.constant 0 : index
    %18 = vector.load %arg3[%c0_16, %c0_17] : memref<1x32xf32, #tpu.memory_space<vmem>>, vector<1x32xf32>
    %19 = vector.broadcast %18 : vector<1x32xf32> to vector<20x32xf32>
    %20 = arith.addf %17, %19 : vector<20x32xf32>
    %c0_18 = arith.constant 0 : index
    %c0_19 = arith.constant 0 : index
    %c0_20 = arith.constant 0 : index
    %21 = vector.load %arg4[%c0_18, %c0_19, %c0_20] : memref<1x20x32xf32, #tpu.memory_space<vmem>>, vector<1x20x32xf32>
    %22 = vector.shape_cast %21 : vector<1x20x32xf32> to vector<20x32xf32>
    %23 = vector.shape_cast %20 : vector<20x32xf32> to vector<1x20x32xf32>
    tpu.vector_store %arg4[%c0_18, %c0_19, %c0_20], %23 {strides = array<i32>} : memref<1x20x32xf32, #tpu.memory_space<vmem>>, vector<1x20x32xf32>,
    return
  }
  func.func @transform_0(%arg0: i32) -> (i32, i32, i32) {
    %c0_i32 = arith.constant 0 : i32
    %c0_i32_0 = arith.constant 0 : i32
    %c0_i32_1 = arith.constant 0 : i32
    return %arg0, %c0_i32, %c0_i32_0 : i32, i32, i32
  }
  func.func @transform_1(%arg0: i32) -> (i32, i32) {
    %c0_i32 = arith.constant 0 : i32
    %c0_i32_0 = arith.constant 0 : i32
    %c0_i32_1 = arith.constant 0 : i32
    return %c0_i32, %c0_i32_0 : i32, i32
  }
  func.func @transform_2(%arg0: i32) -> (i32, i32) {
    %c0_i32 = arith.constant 0 : i32
    %c0_i32_0 = arith.constant 0 : i32
    %c0_i32_1 = arith.constant 0 : i32
    return %c0_i32, %c0_i32_0 : i32, i32
  }
  func.func @transform_3(%arg0: i32) -> (i32, i32, i32) {
    %c0_i32 = arith.constant 0 : i32
    %c0_i32_0 = arith.constant 0 : i32
    %c0_i32_1 = arith.constant 0 : i32
    return %arg0, %c0_i32, %c0_i32_0 : i32, i32, i32
  }
}

module attributes {stable_mosaic.version = 11 : i64} {
  func.func @_maxpool_pe_kernel(%arg0: i32, %arg1: memref<1x10x64xf32, #tpu.memory_space<vmem>>, %arg2: memref<10x32xf32, #tpu.memory_space<vmem>>, %arg3: memref<1x10x32xf32, #tpu.memory_space<vmem>>) attributes {dimension_semantics = [#tpu.dimension_semantics<parallel>], iteration_bounds = array<i64: 2>, scalar_prefetch = 0 : i64, scratch_operands = 0 : i64, tpu.core_type = #tpu.core_type<tc>, window_params = [{transform_indices = @transform_0, window_bounds = array<i64: 1, 10, 64>}, {pipeline_mode = #tpu.pipeline_mode<synchronous>, transform_indices = @transform_1, window_bounds = array<i64: 10, 32>}, {transform_indices = @transform_2, window_bounds = array<i64: 1, 10, 32>}]} {
    %c0 = arith.constant 0 : index
    %c0_0 = arith.constant 0 : index
    %c0_1 = arith.constant 0 : index
    %0 = vector.load %arg1[%c0, %c0_0, %c0_1] : memref<1x10x64xf32, #tpu.memory_space<vmem>>, vector<1x10x64xf32>
    %1 = vector.shape_cast %0 : vector<1x10x64xf32> to vector<10x64xf32>
    %2 = vector.extract_strided_slice %1 {offsets = [0, 0], sizes = [10, 32], strides = [1, 1]} : vector<10x64xf32> to vector<10x32xf32>
    %3 = vector.extract_strided_slice %1 {offsets = [0, 32], sizes = [10, 32], strides = [1, 1]} : vector<10x64xf32> to vector<10x32xf32>
    %4 = arith.maximumf %2, %3 : vector<10x32xf32>
    %c0_2 = arith.constant 0 : index
    %c0_3 = arith.constant 0 : index
    %5 = vector.load %arg2[%c0_2, %c0_3] : memref<10x32xf32, #tpu.memory_space<vmem>>, vector<10x32xf32>
    %6 = arith.addf %4, %5 : vector<10x32xf32>
    %c0_4 = arith.constant 0 : index
    %c0_5 = arith.constant 0 : index
    %c0_6 = arith.constant 0 : index
    %7 = vector.load %arg3[%c0_4, %c0_5, %c0_6] : memref<1x10x32xf32, #tpu.memory_space<vmem>>, vector<1x10x32xf32>
    %8 = vector.shape_cast %7 : vector<1x10x32xf32> to vector<10x32xf32>
    %9 = vector.shape_cast %6 : vector<10x32xf32> to vector<1x10x32xf32>
    tpu.vector_store %arg3[%c0_4, %c0_5, %c0_6], %9 {strides = array<i32>} : memref<1x10x32xf32, #tpu.memory_space<vmem>>, vector<1x10x32xf32>,
    return
  }
  func.func @transform_0(%arg0: i32) -> (i32, i32, i32) {
    %c0_i32 = arith.constant 0 : i32
    %c0_i32_0 = arith.constant 0 : i32
    %c0_i32_1 = arith.constant 0 : i32
    return %arg0, %c0_i32, %c0_i32_0 : i32, i32, i32
  }
  func.func @transform_1(%arg0: i32) -> (i32, i32) {
    %c0_i32 = arith.constant 0 : i32
    %c0_i32_0 = arith.constant 0 : i32
    %c0_i32_1 = arith.constant 0 : i32
    return %c0_i32, %c0_i32_0 : i32, i32
  }
  func.func @transform_2(%arg0: i32) -> (i32, i32, i32) {
    %c0_i32 = arith.constant 0 : i32
    %c0_i32_0 = arith.constant 0 : i32
    %c0_i32_1 = arith.constant 0 : i32
    return %arg0, %c0_i32, %c0_i32_0 : i32, i32, i32
  }
}

module attributes {stable_mosaic.version = 11 : i64} {
  func.func @_attention_kernel(%arg0: memref<10x32x2xf32, #tpu.memory_space<vmem>>, %arg1: memref<10x32x2xf32, #tpu.memory_space<vmem>>, %arg2: memref<10x32x2xf32, #tpu.memory_space<vmem>>, %arg3: memref<10x32x2xf32, #tpu.memory_space<vmem>>) attributes {dimension_semantics = [], scalar_prefetch = 0 : i64, scratch_operands = 0 : i64, tpu.core_type = #tpu.core_type<tc>} {
    %c0 = arith.constant 0 : index
    %c0_0 = arith.constant 0 : index
    %c0_1 = arith.constant 0 : index
    %0 = vector.load %arg0[%c0, %c0_0, %c0_1] : memref<10x32x2xf32, #tpu.memory_space<vmem>>, vector<10x32x2xf32>
    %1 = arith.truncf %0 : vector<10x32x2xf32> to vector<10x32x2xbf16>
    %c0_2 = arith.constant 0 : index
    %c0_3 = arith.constant 0 : index
    %c0_4 = arith.constant 0 : index
    %2 = vector.load %arg1[%c0_2, %c0_3, %c0_4] : memref<10x32x2xf32, #tpu.memory_space<vmem>>, vector<10x32x2xf32>
    %3 = arith.truncf %2 : vector<10x32x2xf32> to vector<10x32x2xbf16>
    "tpu.trace_start"() <{level = 10 : i32, message = "gqd,gkd->gqk"}> : () -> ()
    %cst = arith.constant dense<0.000000e+00> : vector<10x32x32xf32>
    %4 = tpu.matmul %1, %3, %cst {dimension_numbers = #tpu.dot_dimension_numbers<[2], [2], [1], [1], [0, 0, 0, 1, 1, 1], [0], [0]>} : vector<10x32x2xbf16>, vector<10x32x2xbf16>, vector<10x32x32xf32> -> vector<10x32x32xf32>
    "tpu.trace_stop"() : () -> ()
    %cst_5 = arith.constant dense<0xFF800000> : vector<10x32xf32>
    %5 = vector.multi_reduction <maximumf>, %4, %cst_5 [2] : vector<10x32x32xf32> to vector<10x32xf32>
    %6 = vector.shape_cast %5 : vector<10x32xf32> to vector<10x32x1xf32>
    %7 = vector.broadcast %6 : vector<10x32x1xf32> to vector<10x32x32xf32>
    %8 = arith.subf %4, %7 : vector<10x32x32xf32>
    %9 = math.exp %8 : vector<10x32x32xf32>
    %cst_6 = arith.constant dense<0.000000e+00> : vector<10x32xf32>
    %10 = vector.multi_reduction <add>, %9, %cst_6 [2] : vector<10x32x32xf32> to vector<10x32xf32>
    %11 = vector.shape_cast %10 : vector<10x32xf32> to vector<10x32x1xf32>
    %12 = vector.broadcast %11 : vector<10x32x1xf32> to vector<10x32x32xf32>
    %13 = arith.divf %9, %12 : vector<10x32x32xf32>
    %14 = arith.truncf %13 : vector<10x32x32xf32> to vector<10x32x32xbf16>
    %c0_7 = arith.constant 0 : index
    %c0_8 = arith.constant 0 : index
    %c0_9 = arith.constant 0 : index
    %15 = vector.load %arg2[%c0_7, %c0_8, %c0_9] : memref<10x32x2xf32, #tpu.memory_space<vmem>>, vector<10x32x2xf32>
    %16 = arith.truncf %15 : vector<10x32x2xf32> to vector<10x32x2xbf16>
    "tpu.trace_start"() <{level = 10 : i32, message = "gqk,gkd->gqd"}> : () -> ()
    %cst_10 = arith.constant dense<0.000000e+00> : vector<10x32x2xf32>
    %17 = tpu.matmul %14, %16, %cst_10 {dimension_numbers = #tpu.dot_dimension_numbers<[2], [1], [1], [2], [0, 0, 0, 1, 1, 2], [0], [0]>} : vector<10x32x32xbf16>, vector<10x32x2xbf16>, vector<10x32x2xf32> -> vector<10x32x2xf32>
    "tpu.trace_stop"() : () -> ()
    %c0_11 = arith.constant 0 : index
    %c0_12 = arith.constant 0 : index
    %c0_13 = arith.constant 0 : index
    %18 = vector.load %arg3[%c0_11, %c0_12, %c0_13] : memref<10x32x2xf32, #tpu.memory_space<vmem>>, vector<10x32x2xf32>
    tpu.vector_store %arg3[%c0_11, %c0_12, %c0_13], %17 {strides = array<i32>} : memref<10x32x2xf32, #tpu.memory_space<vmem>>, vector<10x32x2xf32>,
    return
  }
}

module attributes {stable_mosaic.version = 11 : i64} {
  func.func @_qkv_kernel(%arg0: i32, %arg1: memref<1x10x32xf32, #tpu.memory_space<vmem>>, %arg2: memref<10x30xbf16, #tpu.memory_space<vmem>>, %arg3: memref<1x30xf32, #tpu.memory_space<vmem>>, %arg4: memref<1x32x30xf32, #tpu.memory_space<vmem>>) attributes {dimension_semantics = [#tpu.dimension_semantics<parallel>], iteration_bounds = array<i64: 2>, scalar_prefetch = 0 : i64, scratch_operands = 0 : i64, tpu.core_type = #tpu.core_type<tc>, window_params = [{transform_indices = @transform_0, window_bounds = array<i64: 1, 10, 32>}, {pipeline_mode = #tpu.pipeline_mode<synchronous>, transform_indices = @transform_1, window_bounds = array<i64: 10, 30>}, {pipeline_mode = #tpu.pipeline_mode<synchronous>, transform_indices = @transform_2, window_bounds = array<i64: 1, 30>}, {transform_indices = @transform_3, window_bounds = array<i64: 1, 32, 30>}]} {
    %c0 = arith.constant 0 : index
    %c0_0 = arith.constant 0 : index
    %c0_1 = arith.constant 0 : index
    %0 = vector.load %arg1[%c0, %c0_0, %c0_1] : memref<1x10x32xf32, #tpu.memory_space<vmem>>, vector<1x10x32xf32>
    %1 = vector.shape_cast %0 : vector<1x10x32xf32> to vector<10x32xf32>
    %2 = arith.truncf %1 : vector<10x32xf32> to vector<10x32xbf16>
    %c0_2 = arith.constant 0 : index
    %c0_3 = arith.constant 0 : index
    %3 = vector.load %arg2[%c0_2, %c0_3] : memref<10x30xbf16, #tpu.memory_space<vmem>>, vector<10x30xbf16>
    %cst = arith.constant dense<0.000000e+00> : vector<32x30xf32>
    %4 = tpu.matmul %2, %3, %cst {dimension_numbers = #tpu.dot_dimension_numbers<[0], [0], [1], [1], [0, 1, 1, 1], [], []>} : vector<10x32xbf16>, vector<10x30xbf16>, vector<32x30xf32> -> vector<32x30xf32>
    %c0_4 = arith.constant 0 : index
    %c0_5 = arith.constant 0 : index
    %5 = vector.load %arg3[%c0_4, %c0_5] : memref<1x30xf32, #tpu.memory_space<vmem>>, vector<1x30xf32>
    %6 = vector.broadcast %5 : vector<1x30xf32> to vector<32x30xf32>
    %7 = arith.addf %4, %6 : vector<32x30xf32>
    %c0_6 = arith.constant 0 : index
    %c0_7 = arith.constant 0 : index
    %c0_8 = arith.constant 0 : index
    %8 = vector.load %arg4[%c0_6, %c0_7, %c0_8] : memref<1x32x30xf32, #tpu.memory_space<vmem>>, vector<1x32x30xf32>
    %9 = vector.shape_cast %8 : vector<1x32x30xf32> to vector<32x30xf32>
    %10 = vector.shape_cast %7 : vector<32x30xf32> to vector<1x32x30xf32>
    tpu.vector_store %arg4[%c0_6, %c0_7, %c0_8], %10 {strides = array<i32>} : memref<1x32x30xf32, #tpu.memory_space<vmem>>, vector<1x32x30xf32>,
    return
  }
  func.func @transform_0(%arg0: i32) -> (i32, i32, i32) {
    %c0_i32 = arith.constant 0 : i32
    %c0_i32_0 = arith.constant 0 : i32
    %c0_i32_1 = arith.constant 0 : i32
    return %arg0, %c0_i32, %c0_i32_0 : i32, i32, i32
  }
  func.func @transform_1(%arg0: i32) -> (i32, i32) {
    %c0_i32 = arith.constant 0 : i32
    %c0_i32_0 = arith.constant 0 : i32
    %c0_i32_1 = arith.constant 0 : i32
    return %c0_i32, %c0_i32_0 : i32, i32
  }
  func.func @transform_2(%arg0: i32) -> (i32, i32) {
    %c0_i32 = arith.constant 0 : i32
    %c0_i32_0 = arith.constant 0 : i32
    %c0_i32_1 = arith.constant 0 : i32
    return %c0_i32, %c0_i32_0 : i32, i32
  }
  func.func @transform_3(%arg0: i32) -> (i32, i32, i32) {
    %c0_i32 = arith.constant 0 : i32
    %c0_i32_0 = arith.constant 0 : i32
    %c0_i32_1 = arith.constant 0 : i32
    return %arg0, %c0_i32, %c0_i32_0 : i32, i32, i32
  }
}

module attributes {stable_mosaic.version = 11 : i64} {
  func.func @_final_ln_kernel(%arg0: i32, %arg1: memref<1x32x10xf32, #tpu.memory_space<vmem>>, %arg2: memref<10x10xbf16, #tpu.memory_space<vmem>>, %arg3: memref<1x10xf32, #tpu.memory_space<vmem>>, %arg4: memref<1x10xf32, #tpu.memory_space<vmem>>, %arg5: memref<1x10xf32, #tpu.memory_space<vmem>>, %arg6: memref<1x32x10xf32, #tpu.memory_space<vmem>>) attributes {dimension_semantics = [#tpu.dimension_semantics<parallel>], iteration_bounds = array<i64: 2>, scalar_prefetch = 0 : i64, scratch_operands = 0 : i64, tpu.core_type = #tpu.core_type<tc>, window_params = [{transform_indices = @transform_0, window_bounds = array<i64: 1, 32, 10>}, {pipeline_mode = #tpu.pipeline_mode<synchronous>, transform_indices = @transform_1, window_bounds = array<i64: 10, 10>}, {pipeline_mode = #tpu.pipeline_mode<synchronous>, transform_indices = @transform_2, window_bounds = array<i64: 1, 10>}, {pipeline_mode = #tpu.pipeline_mode<synchronous>, transform_indices = @transform_3, window_bounds = array<i64: 1, 10>}, {pipeline_mode = #tpu.pipeline_mode<synchronous>, transform_indices = @transform_4, window_bounds = array<i64: 1, 10>}, {transform_indices = @transform_5, window_bounds = array<i64: 1, 32, 10>}]} {
    %c0 = arith.constant 0 : index
    %c0_0 = arith.constant 0 : index
    %c0_1 = arith.constant 0 : index
    %0 = vector.load %arg1[%c0, %c0_0, %c0_1] : memref<1x32x10xf32, #tpu.memory_space<vmem>>, vector<1x32x10xf32>
    %1 = vector.shape_cast %0 : vector<1x32x10xf32> to vector<32x10xf32>
    %2 = arith.truncf %1 : vector<32x10xf32> to vector<32x10xbf16>
    %c0_2 = arith.constant 0 : index
    %c0_3 = arith.constant 0 : index
    %3 = vector.load %arg2[%c0_2, %c0_3] : memref<10x10xbf16, #tpu.memory_space<vmem>>, vector<10x10xbf16>
    %cst = arith.constant dense<0.000000e+00> : vector<32x10xf32>
    %4 = tpu.matmul %2, %3, %cst {dimension_numbers = #tpu.dot_dimension_numbers<[1], [0], [0], [1], [0, 0, 1, 1], [], []>} : vector<32x10xbf16>, vector<10x10xbf16>, vector<32x10xf32> -> vector<32x10xf32>
    %c0_4 = arith.constant 0 : index
    %c0_5 = arith.constant 0 : index
    %5 = vector.load %arg3[%c0_4, %c0_5] : memref<1x10xf32, #tpu.memory_space<vmem>>, vector<1x10xf32>
    %6 = vector.broadcast %5 : vector<1x10xf32> to vector<32x10xf32>
    %7 = arith.addf %4, %6 : vector<32x10xf32>
    %cst_6 = arith.constant dense<0.000000e+00> : vector<32xf32>
    %8 = vector.multi_reduction <add>, %7, %cst_6 [1] : vector<32x10xf32> to vector<32xf32>
    %9 = vector.shape_cast %8 : vector<32xf32> to vector<32x1xf32>
    %cst_7 = arith.constant 1.000000e+01 : f32
    %10 = vector.broadcast %cst_7 : f32 to vector<32x1xf32>
    %11 = arith.divf %9, %10 : vector<32x1xf32>
    %12 = vector.broadcast %11 : vector<32x1xf32> to vector<32x10xf32>
    %13 = arith.subf %7, %12 : vector<32x10xf32>
    %14 = arith.mulf %13, %13 : vector<32x10xf32>
    %cst_8 = arith.constant dense<0.000000e+00> : vector<32xf32>
    %15 = vector.multi_reduction <add>, %14, %cst_8 [1] : vector<32x10xf32> to vector<32xf32>
    %16 = vector.shape_cast %15 : vector<32xf32> to vector<32x1xf32>
    %cst_9 = arith.constant 1.000000e+01 : f32
    %17 = vector.broadcast %cst_9 : f32 to vector<32x1xf32>
    %18 = arith.divf %16, %17 : vector<32x1xf32>
    %19 = vector.broadcast %11 : vector<32x1xf32> to vector<32x10xf32>
    %20 = arith.subf %7, %19 : vector<32x10xf32>
    %cst_10 = arith.constant 9.99999974E-6 : f32
    %21 = vector.broadcast %cst_10 : f32 to vector<32x1xf32>
    %22 = arith.addf %18, %21 : vector<32x1xf32>
    %23 = math.rsqrt %22 : vector<32x1xf32>
    %24 = vector.broadcast %23 : vector<32x1xf32> to vector<32x10xf32>
    %25 = arith.mulf %20, %24 : vector<32x10xf32>
    %c0_11 = arith.constant 0 : index
    %c0_12 = arith.constant 0 : index
    %26 = vector.load %arg4[%c0_11, %c0_12] : memref<1x10xf32, #tpu.memory_space<vmem>>, vector<1x10xf32>
    %27 = vector.broadcast %26 : vector<1x10xf32> to vector<32x10xf32>
    %28 = arith.mulf %25, %27 : vector<32x10xf32>
    %c0_13 = arith.constant 0 : index
    %c0_14 = arith.constant 0 : index
    %29 = vector.load %arg5[%c0_13, %c0_14] : memref<1x10xf32, #tpu.memory_space<vmem>>, vector<1x10xf32>
    %30 = vector.broadcast %29 : vector<1x10xf32> to vector<32x10xf32>
    %31 = arith.addf %28, %30 : vector<32x10xf32>
    %c0_15 = arith.constant 0 : index
    %c0_16 = arith.constant 0 : index
    %c0_17 = arith.constant 0 : index
    %32 = vector.load %arg6[%c0_15, %c0_16, %c0_17] : memref<1x32x10xf32, #tpu.memory_space<vmem>>, vector<1x32x10xf32>
    %33 = vector.shape_cast %32 : vector<1x32x10xf32> to vector<32x10xf32>
    %34 = vector.shape_cast %31 : vector<32x10xf32> to vector<1x32x10xf32>
    tpu.vector_store %arg6[%c0_15, %c0_16, %c0_17], %34 {strides = array<i32>} : memref<1x32x10xf32, #tpu.memory_space<vmem>>, vector<1x32x10xf32>,
    return
  }
  func.func @transform_0(%arg0: i32) -> (i32, i32, i32) {
    %c0_i32 = arith.constant 0 : i32
    %c0_i32_0 = arith.constant 0 : i32
    %c0_i32_1 = arith.constant 0 : i32
    return %arg0, %c0_i32, %c0_i32_0 : i32, i32, i32
  }
  func.func @transform_1(%arg0: i32) -> (i32, i32) {
    %c0_i32 = arith.constant 0 : i32
    %c0_i32_0 = arith.constant 0 : i32
    %c0_i32_1 = arith.constant 0 : i32
    return %c0_i32, %c0_i32_0 : i32, i32
  }
  func.func @transform_2(%arg0: i32) -> (i32, i32) {
    %c0_i32 = arith.constant 0 : i32
    %c0_i32_0 = arith.constant 0 : i32
    %c0_i32_1 = arith.constant 0 : i32
    return %c0_i32, %c0_i32_0 : i32, i32
  }
  func.func @transform_3(%arg0: i32) -> (i32, i32) {
    %c0_i32 = arith.constant 0 : i32
    %c0_i32_0 = arith.constant 0 : i32
    %c0_i32_1 = arith.constant 0 : i32
    return %c0_i32, %c0_i32_0 : i32, i32
  }
  func.func @transform_4(%arg0: i32) -> (i32, i32) {
    %c0_i32 = arith.constant 0 : i32
    %c0_i32_0 = arith.constant 0 : i32
    %c0_i32_1 = arith.constant 0 : i32
    return %c0_i32, %c0_i32_0 : i32, i32
  }
  func.func @transform_5(%arg0: i32) -> (i32, i32, i32) {
    %c0_i32 = arith.constant 0 : i32
    %c0_i32_0 = arith.constant 0 : i32
    %c0_i32_1 = arith.constant 0 : i32
    return %arg0, %c0_i32, %c0_i32_0 : i32, i32, i32
  }
}

module attributes {stable_mosaic.version = 11 : i64} {
  func.func @_conv1d_kernel(%arg0: i32, %arg1: memref<1x12x32xf32, #tpu.memory_space<vmem>>, %arg2: memref<96x64xbf16, #tpu.memory_space<vmem>>, %arg3: memref<1x64xf32, #tpu.memory_space<vmem>>, %arg4: memref<1x10x64xf32, #tpu.memory_space<vmem>>) attributes {dimension_semantics = [#tpu.dimension_semantics<parallel>], iteration_bounds = array<i64: 2>, scalar_prefetch = 0 : i64, scratch_operands = 0 : i64, tpu.core_type = #tpu.core_type<tc>, window_params = [{transform_indices = @transform_0, window_bounds = array<i64: 1, 12, 32>}, {pipeline_mode = #tpu.pipeline_mode<synchronous>, transform_indices = @transform_1, window_bounds = array<i64: 96, 64>}, {pipeline_mode = #tpu.pipeline_mode<synchronous>, transform_indices = @transform_2, window_bounds = array<i64: 1, 64>}, {transform_indices = @transform_3, window_bounds = array<i64: 1, 10, 64>}]} {
    %c0 = arith.constant 0 : index
    %c0_0 = arith.constant 0 : index
    %c0_1 = arith.constant 0 : index
    %0 = vector.load %arg1[%c0, %c0_0, %c0_1] : memref<1x12x32xf32, #tpu.memory_space<vmem>>, vector<1x10x32xf32>
    %1 = vector.shape_cast %0 : vector<1x10x32xf32> to vector<10x32xf32>
    %c0_2 = arith.constant 0 : index
    %c1 = arith.constant 1 : index
    %c0_3 = arith.constant 0 : index
    %2 = vector.load %arg1[%c0_2, %c1, %c0_3] : memref<1x12x32xf32, #tpu.memory_space<vmem>>, vector<1x10x32xf32>
    %3 = vector.shape_cast %2 : vector<1x10x32xf32> to vector<10x32xf32>
    %c0_4 = arith.constant 0 : index
    %c2 = arith.constant 2 : index
    %c0_5 = arith.constant 0 : index
    %4 = vector.load %arg1[%c0_4, %c2, %c0_5] : memref<1x12x32xf32, #tpu.memory_space<vmem>>, vector<1x10x32xf32>
    %5 = vector.shape_cast %4 : vector<1x10x32xf32> to vector<10x32xf32>
    %6 = tpu.concatenate %1, %3, %5 in 1 : vector<10x32xf32>, vector<10x32xf32>, vector<10x32xf32> -> vector<10x96xf32>
    %7 = arith.truncf %6 : vector<10x96xf32> to vector<10x96xbf16>
    %c0_6 = arith.constant 0 : index
    %c0_7 = arith.constant 0 : index
    %8 = vector.load %arg2[%c0_6, %c0_7] : memref<96x64xbf16, #tpu.memory_space<vmem>>, vector<96x64xbf16>
    %cst = arith.constant dense<0.000000e+00> : vector<10x64xf32>
    %9 = tpu.matmul %7, %8, %cst {dimension_numbers = #tpu.dot_dimension_numbers<[1], [0], [0], [1], [0, 0, 1, 1], [], []>} : vector<10x96xbf16>, vector<96x64xbf16>, vector<10x64xf32> -> vector<10x64xf32>
    %c0_8 = arith.constant 0 : index
    %c0_9 = arith.constant 0 : index
    %10 = vector.load %arg3[%c0_8, %c0_9] : memref<1x64xf32, #tpu.memory_space<vmem>>, vector<1x64xf32>
    %11 = vector.broadcast %10 : vector<1x64xf32> to vector<10x64xf32>
    %12 = arith.addf %9, %11 : vector<10x64xf32>
    %cst_10 = arith.constant 0.000000e+00 : f32
    %13 = vector.broadcast %cst_10 : f32 to vector<10x64xf32>
    %14 = arith.maximumf %12, %13 : vector<10x64xf32>
    %c0_11 = arith.constant 0 : index
    %c0_12 = arith.constant 0 : index
    %c0_13 = arith.constant 0 : index
    %15 = vector.load %arg4[%c0_11, %c0_12, %c0_13] : memref<1x10x64xf32, #tpu.memory_space<vmem>>, vector<1x10x64xf32>
    %16 = vector.shape_cast %15 : vector<1x10x64xf32> to vector<10x64xf32>
    %17 = vector.shape_cast %14 : vector<10x64xf32> to vector<1x10x64xf32>
    tpu.vector_store %arg4[%c0_11, %c0_12, %c0_13], %17 {strides = array<i32>} : memref<1x10x64xf32, #tpu.memory_space<vmem>>, vector<1x10x64xf32>,
    return
  }
  func.func @transform_0(%arg0: i32) -> (i32, i32, i32) {
    %c0_i32 = arith.constant 0 : i32
    %c0_i32_0 = arith.constant 0 : i32
    %c0_i32_1 = arith.constant 0 : i32
    return %arg0, %c0_i32, %c0_i32_0 : i32, i32, i32
  }
  func.func @transform_1(%arg0: i32) -> (i32, i32) {
    %c0_i32 = arith.constant 0 : i32
    %c0_i32_0 = arith.constant 0 : i32
    %c0_i32_1 = arith.constant 0 : i32
    return %c0_i32, %c0_i32_0 : i32, i32
  }
  func.func @transform_2(%arg0: i32) -> (i32, i32) {
    %c0_i32 = arith.constant 0 : i32
    %c0_i32_0 = arith.constant 0 : i32
    %c0_i32_1 = arith.constant 0 : i32
    return %c0_i32, %c0_i32_0 : i32, i32
  }
  func.func @transform_3(%arg0: i32) -> (i32, i32, i32) {
    %c0_i32 = arith.constant 0 : i32
    %c0_i32_0 = arith.constant 0 : i32
    %c0_i32_1 = arith.constant 0 : i32
    return %arg0, %c0_i32, %c0_i32_0 : i32, i32, i32
  }
}

module attributes {stable_mosaic.version = 11 : i64} {
  func.func @_conv1d_kernel(%arg0: i32, %arg1: memref<1x12x32xf32, #tpu.memory_space<vmem>>, %arg2: memref<96x64xbf16, #tpu.memory_space<vmem>>, %arg3: memref<1x64xf32, #tpu.memory_space<vmem>>, %arg4: memref<1x10x64xf32, #tpu.memory_space<vmem>>) attributes {dimension_semantics = [#tpu.dimension_semantics<parallel>], iteration_bounds = array<i64: 2>, scalar_prefetch = 0 : i64, scratch_operands = 0 : i64, tpu.core_type = #tpu.core_type<tc>, window_params = [{transform_indices = @transform_0, window_bounds = array<i64: 1, 12, 32>}, {pipeline_mode = #tpu.pipeline_mode<synchronous>, transform_indices = @transform_1, window_bounds = array<i64: 96, 64>}, {pipeline_mode = #tpu.pipeline_mode<synchronous>, transform_indices = @transform_2, window_bounds = array<i64: 1, 64>}, {transform_indices = @transform_3, window_bounds = array<i64: 1, 10, 64>}]} {
    %c0 = arith.constant 0 : index
    %c0_0 = arith.constant 0 : index
    %c0_1 = arith.constant 0 : index
    %0 = vector.load %arg1[%c0, %c0_0, %c0_1] : memref<1x12x32xf32, #tpu.memory_space<vmem>>, vector<1x10x32xf32>
    %1 = vector.shape_cast %0 : vector<1x10x32xf32> to vector<10x32xf32>
    %c0_2 = arith.constant 0 : index
    %c1 = arith.constant 1 : index
    %c0_3 = arith.constant 0 : index
    %2 = vector.load %arg1[%c0_2, %c1, %c0_3] : memref<1x12x32xf32, #tpu.memory_space<vmem>>, vector<1x10x32xf32>
    %3 = vector.shape_cast %2 : vector<1x10x32xf32> to vector<10x32xf32>
    %c0_4 = arith.constant 0 : index
    %c2 = arith.constant 2 : index
    %c0_5 = arith.constant 0 : index
    %4 = vector.load %arg1[%c0_4, %c2, %c0_5] : memref<1x12x32xf32, #tpu.memory_space<vmem>>, vector<1x10x32xf32>
    %5 = vector.shape_cast %4 : vector<1x10x32xf32> to vector<10x32xf32>
    %6 = tpu.concatenate %1, %3, %5 in 1 : vector<10x32xf32>, vector<10x32xf32>, vector<10x32xf32> -> vector<10x96xf32>
    %7 = arith.truncf %6 : vector<10x96xf32> to vector<10x96xbf16>
    %c0_6 = arith.constant 0 : index
    %c0_7 = arith.constant 0 : index
    %8 = vector.load %arg2[%c0_6, %c0_7] : memref<96x64xbf16, #tpu.memory_space<vmem>>, vector<96x64xbf16>
    %cst = arith.constant dense<0.000000e+00> : vector<10x64xf32>
    %9 = tpu.matmul %7, %8, %cst {dimension_numbers = #tpu.dot_dimension_numbers<[1], [0], [0], [1], [0, 0, 1, 1], [], []>} : vector<10x96xbf16>, vector<96x64xbf16>, vector<10x64xf32> -> vector<10x64xf32>
    %c0_8 = arith.constant 0 : index
    %c0_9 = arith.constant 0 : index
    %10 = vector.load %arg3[%c0_8, %c0_9] : memref<1x64xf32, #tpu.memory_space<vmem>>, vector<1x64xf32>
    %11 = vector.broadcast %10 : vector<1x64xf32> to vector<10x64xf32>
    %12 = arith.addf %9, %11 : vector<10x64xf32>
    %c0_10 = arith.constant 0 : index
    %c0_11 = arith.constant 0 : index
    %c0_12 = arith.constant 0 : index
    %13 = vector.load %arg4[%c0_10, %c0_11, %c0_12] : memref<1x10x64xf32, #tpu.memory_space<vmem>>, vector<1x10x64xf32>
    %14 = vector.shape_cast %13 : vector<1x10x64xf32> to vector<10x64xf32>
    %15 = vector.shape_cast %12 : vector<10x64xf32> to vector<1x10x64xf32>
    tpu.vector_store %arg4[%c0_10, %c0_11, %c0_12], %15 {strides = array<i32>} : memref<1x10x64xf32, #tpu.memory_space<vmem>>, vector<1x10x64xf32>,
    return
  }
  func.func @transform_0(%arg0: i32) -> (i32, i32, i32) {
    %c0_i32 = arith.constant 0 : i32
    %c0_i32_0 = arith.constant 0 : i32
    %c0_i32_1 = arith.constant 0 : i32
    return %arg0, %c0_i32, %c0_i32_0 : i32, i32, i32
  }
  func.func @transform_1(%arg0: i32) -> (i32, i32) {
    %c0_i32 = arith.constant 0 : i32
    %c0_i32_0 = arith.constant 0 : i32
    %c0_i32_1 = arith.constant 0 : i32
    return %c0_i32, %c0_i32_0 : i32, i32
  }
  func.func @transform_2(%arg0: i32) -> (i32, i32) {
    %c0_i32 = arith.constant 0 : i32
    %c0_i32_0 = arith.constant 0 : i32
    %c0_i32_1 = arith.constant 0 : i32
    return %c0_i32, %c0_i32_0 : i32, i32
  }
  func.func @transform_3(%arg0: i32) -> (i32, i32, i32) {
    %c0_i32 = arith.constant 0 : i32
    %c0_i32_0 = arith.constant 0 : i32
    %c0_i32_1 = arith.constant 0 : i32
    return %arg0, %c0_i32, %c0_i32_0 : i32, i32, i32
  }
}

module attributes {stable_mosaic.version = 11 : i64} {
  func.func @_conv1d_kernel(%arg0: i32, %arg1: memref<1x12x64xf32, #tpu.memory_space<vmem>>, %arg2: memref<192x32xbf16, #tpu.memory_space<vmem>>, %arg3: memref<1x32xf32, #tpu.memory_space<vmem>>, %arg4: memref<1x10x32xf32, #tpu.memory_space<vmem>>, %arg5: memref<1x32xf32, #tpu.memory_space<vmem>>, %arg6: memref<1x32xf32, #tpu.memory_space<vmem>>, %arg7: memref<1x10x32xf32, #tpu.memory_space<vmem>>) attributes {dimension_semantics = [#tpu.dimension_semantics<parallel>], iteration_bounds = array<i64: 2>, scalar_prefetch = 0 : i64, scratch_operands = 0 : i64, tpu.core_type = #tpu.core_type<tc>, window_params = [{transform_indices = @transform_0, window_bounds = array<i64: 1, 12, 64>}, {pipeline_mode = #tpu.pipeline_mode<synchronous>, transform_indices = @transform_1, window_bounds = array<i64: 192, 32>}, {pipeline_mode = #tpu.pipeline_mode<synchronous>, transform_indices = @transform_2, window_bounds = array<i64: 1, 32>}, {transform_indices = @transform_3, window_bounds = array<i64: 1, 10, 32>}, {pipeline_mode = #tpu.pipeline_mode<synchronous>, transform_indices = @transform_4, window_bounds = array<i64: 1, 32>}, {pipeline_mode = #tpu.pipeline_mode<synchronous>, transform_indices = @transform_5, window_bounds = array<i64: 1, 32>}, {transform_indices = @transform_6, window_bounds = array<i64: 1, 10, 32>}]} {
    %c0 = arith.constant 0 : index
    %c0_0 = arith.constant 0 : index
    %c0_1 = arith.constant 0 : index
    %0 = vector.load %arg1[%c0, %c0_0, %c0_1] : memref<1x12x64xf32, #tpu.memory_space<vmem>>, vector<1x10x64xf32>
    %1 = vector.shape_cast %0 : vector<1x10x64xf32> to vector<10x64xf32>
    %c0_2 = arith.constant 0 : index
    %c1 = arith.constant 1 : index
    %c0_3 = arith.constant 0 : index
    %2 = vector.load %arg1[%c0_2, %c1, %c0_3] : memref<1x12x64xf32, #tpu.memory_space<vmem>>, vector<1x10x64xf32>
    %3 = vector.shape_cast %2 : vector<1x10x64xf32> to vector<10x64xf32>
    %c0_4 = arith.constant 0 : index
    %c2 = arith.constant 2 : index
    %c0_5 = arith.constant 0 : index
    %4 = vector.load %arg1[%c0_4, %c2, %c0_5] : memref<1x12x64xf32, #tpu.memory_space<vmem>>, vector<1x10x64xf32>
    %5 = vector.shape_cast %4 : vector<1x10x64xf32> to vector<10x64xf32>
    %6 = tpu.concatenate %1, %3, %5 in 1 : vector<10x64xf32>, vector<10x64xf32>, vector<10x64xf32> -> vector<10x192xf32>
    %7 = arith.truncf %6 : vector<10x192xf32> to vector<10x192xbf16>
    %c0_6 = arith.constant 0 : index
    %c0_7 = arith.constant 0 : index
    %8 = vector.load %arg2[%c0_6, %c0_7] : memref<192x32xbf16, #tpu.memory_space<vmem>>, vector<192x32xbf16>
    %cst = arith.constant dense<0.000000e+00> : vector<10x32xf32>
    %9 = tpu.matmul %7, %8, %cst {dimension_numbers = #tpu.dot_dimension_numbers<[1], [0], [0], [1], [0, 0, 1, 1], [], []>} : vector<10x192xbf16>, vector<192x32xbf16>, vector<10x32xf32> -> vector<10x32xf32>
    %c0_8 = arith.constant 0 : index
    %c0_9 = arith.constant 0 : index
    %10 = vector.load %arg3[%c0_8, %c0_9] : memref<1x32xf32, #tpu.memory_space<vmem>>, vector<1x32xf32>
    %11 = vector.broadcast %10 : vector<1x32xf32> to vector<10x32xf32>
    %12 = arith.addf %9, %11 : vector<10x32xf32>
    %c0_10 = arith.constant 0 : index
    %c0_11 = arith.constant 0 : index
    %c0_12 = arith.constant 0 : index
    %13 = vector.load %arg4[%c0_10, %c0_11, %c0_12] : memref<1x10x32xf32, #tpu.memory_space<vmem>>, vector<1x10x32xf32>
    %14 = vector.shape_cast %13 : vector<1x10x32xf32> to vector<10x32xf32>
    %15 = arith.addf %12, %14 : vector<10x32xf32>
    %c0_13 = arith.constant 0 : index
    %c0_14 = arith.constant 0 : index
    %16 = vector.load %arg5[%c0_13, %c0_14] : memref<1x32xf32, #tpu.memory_space<vmem>>, vector<1x32xf32>
    %17 = vector.broadcast %16 : vector<1x32xf32> to vector<10x32xf32>
    %18 = arith.mulf %15, %17 : vector<10x32xf32>
    %c0_15 = arith.constant 0 : index
    %c0_16 = arith.constant 0 : index
    %19 = vector.load %arg6[%c0_15, %c0_16] : memref<1x32xf32, #tpu.memory_space<vmem>>, vector<1x32xf32>
    %20 = vector.broadcast %19 : vector<1x32xf32> to vector<10x32xf32>
    %21 = arith.addf %18, %20 : vector<10x32xf32>
    %cst_17 = arith.constant 0.000000e+00 : f32
    %22 = vector.broadcast %cst_17 : f32 to vector<10x32xf32>
    %23 = arith.maximumf %21, %22 : vector<10x32xf32>
    %c0_18 = arith.constant 0 : index
    %c0_19 = arith.constant 0 : index
    %c0_20 = arith.constant 0 : index
    %24 = vector.load %arg7[%c0_18, %c0_19, %c0_20] : memref<1x10x32xf32, #tpu.memory_space<vmem>>, vector<1x10x32xf32>
    %25 = vector.shape_cast %24 : vector<1x10x32xf32> to vector<10x32xf32>
    %26 = vector.shape_cast %23 : vector<10x32xf32> to vector<1x10x32xf32>
    tpu.vector_store %arg7[%c0_18, %c0_19, %c0_20], %26 {strides = array<i32>} : memref<1x10x32xf32, #tpu.memory_space<vmem>>, vector<1x10x32xf32>,
    return
  }
  func.func @transform_0(%arg0: i32) -> (i32, i32, i32) {
    %c0_i32 = arith.constant 0 : i32
    %c0_i32_0 = arith.constant 0 : i32
    %c0_i32_1 = arith.constant 0 : i32
    return %arg0, %c0_i32, %c0_i32_0 : i32, i32, i32
  }
  func.func @transform_1(%arg0: i32) -> (i32, i32) {
    %c0_i32 = arith.constant 0 : i32
    %c0_i32_0 = arith.constant 0 : i32
    %c0_i32_1 = arith.constant 0 : i32
    return %c0_i32, %c0_i32_0 : i32, i32
  }
  func.func @transform_2(%arg0: i32) -> (i32, i32) {
    %c0_i32 = arith.constant 0 : i32
    %c0_i32_0 = arith.constant 0 : i32
    %c0_i32_1 = arith.constant 0 : i32
    return %c0_i32, %c0_i32_0 : i32, i32
  }
  func.func @transform_3(%arg0: i32) -> (i32, i32, i32) {
    %c0_i32 = arith.constant 0 : i32
    %c0_i32_0 = arith.constant 0 : i32
    %c0_i32_1 = arith.constant 0 : i32
    return %arg0, %c0_i32, %c0_i32_0 : i32, i32, i32
  }
  func.func @transform_4(%arg0: i32) -> (i32, i32) {
    %c0_i32 = arith.constant 0 : i32
    %c0_i32_0 = arith.constant 0 : i32
    %c0_i32_1 = arith.constant 0 : i32
    return %c0_i32, %c0_i32_0 : i32, i32
  }
  func.func @transform_5(%arg0: i32) -> (i32, i32) {
    %c0_i32 = arith.constant 0 : i32
    %c0_i32_0 = arith.constant 0 : i32
    %c0_i32_1 = arith.constant 0 : i32
    return %c0_i32, %c0_i32_0 : i32, i32
  }
  func.func @transform_6(%arg0: i32) -> (i32, i32, i32) {
    %c0_i32 = arith.constant 0 : i32
    %c0_i32_0 = arith.constant 0 : i32
    %c0_i32_1 = arith.constant 0 : i32
    return %arg0, %c0_i32, %c0_i32_0 : i32, i32, i32
  }
}

module attributes {stable_mosaic.version = 11 : i64} {
  func.func @_conv1d_kernel(%arg0: i32, %arg1: memref<1x12x64xf32, #tpu.memory_space<vmem>>, %arg2: memref<192x64xbf16, #tpu.memory_space<vmem>>, %arg3: memref<1x64xf32, #tpu.memory_space<vmem>>, %arg4: memref<1x10x64xf32, #tpu.memory_space<vmem>>) attributes {dimension_semantics = [#tpu.dimension_semantics<parallel>], iteration_bounds = array<i64: 2>, scalar_prefetch = 0 : i64, scratch_operands = 0 : i64, tpu.core_type = #tpu.core_type<tc>, window_params = [{transform_indices = @transform_0, window_bounds = array<i64: 1, 12, 64>}, {pipeline_mode = #tpu.pipeline_mode<synchronous>, transform_indices = @transform_1, window_bounds = array<i64: 192, 64>}, {pipeline_mode = #tpu.pipeline_mode<synchronous>, transform_indices = @transform_2, window_bounds = array<i64: 1, 64>}, {transform_indices = @transform_3, window_bounds = array<i64: 1, 10, 64>}]} {
    %c0 = arith.constant 0 : index
    %c0_0 = arith.constant 0 : index
    %c0_1 = arith.constant 0 : index
    %0 = vector.load %arg1[%c0, %c0_0, %c0_1] : memref<1x12x64xf32, #tpu.memory_space<vmem>>, vector<1x10x64xf32>
    %1 = vector.shape_cast %0 : vector<1x10x64xf32> to vector<10x64xf32>
    %c0_2 = arith.constant 0 : index
    %c1 = arith.constant 1 : index
    %c0_3 = arith.constant 0 : index
    %2 = vector.load %arg1[%c0_2, %c1, %c0_3] : memref<1x12x64xf32, #tpu.memory_space<vmem>>, vector<1x10x64xf32>
    %3 = vector.shape_cast %2 : vector<1x10x64xf32> to vector<10x64xf32>
    %c0_4 = arith.constant 0 : index
    %c2 = arith.constant 2 : index
    %c0_5 = arith.constant 0 : index
    %4 = vector.load %arg1[%c0_4, %c2, %c0_5] : memref<1x12x64xf32, #tpu.memory_space<vmem>>, vector<1x10x64xf32>
    %5 = vector.shape_cast %4 : vector<1x10x64xf32> to vector<10x64xf32>
    %6 = tpu.concatenate %1, %3, %5 in 1 : vector<10x64xf32>, vector<10x64xf32>, vector<10x64xf32> -> vector<10x192xf32>
    %7 = arith.truncf %6 : vector<10x192xf32> to vector<10x192xbf16>
    %c0_6 = arith.constant 0 : index
    %c0_7 = arith.constant 0 : index
    %8 = vector.load %arg2[%c0_6, %c0_7] : memref<192x64xbf16, #tpu.memory_space<vmem>>, vector<192x64xbf16>
    %cst = arith.constant dense<0.000000e+00> : vector<10x64xf32>
    %9 = tpu.matmul %7, %8, %cst {dimension_numbers = #tpu.dot_dimension_numbers<[1], [0], [0], [1], [0, 0, 1, 1], [], []>} : vector<10x192xbf16>, vector<192x64xbf16>, vector<10x64xf32> -> vector<10x64xf32>
    %c0_8 = arith.constant 0 : index
    %c0_9 = arith.constant 0 : index
    %10 = vector.load %arg3[%c0_8, %c0_9] : memref<1x64xf32, #tpu.memory_space<vmem>>, vector<1x64xf32>
    %11 = vector.broadcast %10 : vector<1x64xf32> to vector<10x64xf32>
    %12 = arith.addf %9, %11 : vector<10x64xf32>
    %c0_10 = arith.constant 0 : index
    %c0_11 = arith.constant 0 : index
    %c0_12 = arith.constant 0 : index
    %13 = vector.load %arg4[%c0_10, %c0_11, %c0_12] : memref<1x10x64xf32, #tpu.memory_space<vmem>>, vector<1x10x64xf32>
    %14 = vector.shape_cast %13 : vector<1x10x64xf32> to vector<10x64xf32>
    %15 = vector.shape_cast %12 : vector<10x64xf32> to vector<1x10x64xf32>
    tpu.vector_store %arg4[%c0_10, %c0_11, %c0_12], %15 {strides = array<i32>} : memref<1x10x64xf32, #tpu.memory_space<vmem>>, vector<1x10x64xf32>,
    return
  }
  func.func @transform_0(%arg0: i32) -> (i32, i32, i32) {
    %c0_i32 = arith.constant 0 : i32
    %c0_i32_0 = arith.constant 0 : i32
    %c0_i32_1 = arith.constant 0 : i32
    return %arg0, %c0_i32, %c0_i32_0 : i32, i32, i32
  }
  func.func @transform_1(%arg0: i32) -> (i32, i32) {
    %c0_i32 = arith.constant 0 : i32
    %c0_i32_0 = arith.constant 0 : i32
    %c0_i32_1 = arith.constant 0 : i32
    return %c0_i32, %c0_i32_0 : i32, i32
  }
  func.func @transform_2(%arg0: i32) -> (i32, i32) {
    %c0_i32 = arith.constant 0 : i32
    %c0_i32_0 = arith.constant 0 : i32
    %c0_i32_1 = arith.constant 0 : i32
    return %c0_i32, %c0_i32_0 : i32, i32
  }
  func.func @transform_3(%arg0: i32) -> (i32, i32, i32) {
    %c0_i32 = arith.constant 0 : i32
    %c0_i32_0 = arith.constant 0 : i32
    %c0_i32_1 = arith.constant 0 : i32
    return %arg0, %c0_i32, %c0_i32_0 : i32, i32, i32
  }
}

module attributes {stable_mosaic.version = 11 : i64} {
  func.func @_head_kernel(%arg0: i32, %arg1: memref<2x128xf32, #tpu.memory_space<vmem>>, %arg2: memref<128x64xbf16, #tpu.memory_space<vmem>>, %arg3: memref<1x64xf32, #tpu.memory_space<vmem>>, %arg4: memref<64x1xbf16, #tpu.memory_space<vmem>>, %arg5: memref<1x1xf32, #tpu.memory_space<vmem>>, %arg6: memref<2x1xf32, #tpu.memory_space<vmem>>, %arg7: memref<2x64xf32, #tpu.memory_space<vmem>>) attributes {dimension_semantics = [#tpu.dimension_semantics<arbitrary>], iteration_bounds = array<i64: 5>, scalar_prefetch = 0 : i64, scratch_operands = 1 : i64, tpu.core_type = #tpu.core_type<tc>, window_params = [{transform_indices = @transform_0, window_bounds = array<i64: 2, 128>}, {transform_indices = @transform_1, window_bounds = array<i64: 128, 64>}, {pipeline_mode = #tpu.pipeline_mode<synchronous>, transform_indices = @transform_2, window_bounds = array<i64: 1, 64>}, {pipeline_mode = #tpu.pipeline_mode<synchronous>, transform_indices = @transform_3, window_bounds = array<i64: 64, 1>}, {pipeline_mode = #tpu.pipeline_mode<synchronous>, transform_indices = @transform_4, window_bounds = array<i64: 1, 1>}, {pipeline_mode = #tpu.pipeline_mode<synchronous>, transform_indices = @transform_5, window_bounds = array<i64: 2, 1>}]} {
    %c0_i32 = arith.constant 0 : i32
    %0 = arith.cmpi eq, %arg0, %c0_i32 : i32
    %1 = arith.extui %0 : i1 to i32
    %c0_i32_0 = arith.constant 0 : i32
    %2 = arith.cmpi ne, %1, %c0_i32_0 : i32
    scf.if %2 {
      %cst_9 = arith.constant 0.000000e+00 : f32
      %13 = vector.broadcast %cst_9 : f32 to vector<2x64xf32>
      %c0_10 = arith.constant 0 : index
      %c0_11 = arith.constant 0 : index
      %14 = vector.load %arg7[%c0_10, %c0_11] : memref<2x64xf32, #tpu.memory_space<vmem>>, vector<2x64xf32>
      tpu.vector_store %arg7[%c0_10, %c0_11], %13 {strides = array<i32>} : memref<2x64xf32, #tpu.memory_space<vmem>>, vector<2x64xf32>,
    } else {
    }
    %c0 = arith.constant 0 : index
    %c0_1 = arith.constant 0 : index
    %3 = vector.load %arg7[%c0, %c0_1] : memref<2x64xf32, #tpu.memory_space<vmem>>, vector<2x64xf32>
    %c0_2 = arith.constant 0 : index
    %c0_3 = arith.constant 0 : index
    %4 = vector.load %arg1[%c0_2, %c0_3] : memref<2x128xf32, #tpu.memory_space<vmem>>, vector<2x128xf32>
    %5 = arith.truncf %4 : vector<2x128xf32> to vector<2x128xbf16>
    %c0_4 = arith.constant 0 : index
    %c0_5 = arith.constant 0 : index
    %6 = vector.load %arg2[%c0_4, %c0_5] : memref<128x64xbf16, #tpu.memory_space<vmem>>, vector<128x64xbf16>
    %cst = arith.constant dense<0.000000e+00> : vector<2x64xf32>
    %7 = tpu.matmul %5, %6, %cst {dimension_numbers = #tpu.dot_dimension_numbers<[1], [0], [0], [1], [0, 0, 1, 1], [], []>} : vector<2x128xbf16>, vector<128x64xbf16>, vector<2x64xf32> -> vector<2x64xf32>
    %8 = arith.addf %3, %7 : vector<2x64xf32>
    %c0_6 = arith.constant 0 : index
    %c0_7 = arith.constant 0 : index
    %9 = vector.load %arg7[%c0_6, %c0_7] : memref<2x64xf32, #tpu.memory_space<vmem>>, vector<2x64xf32>
    tpu.vector_store %arg7[%c0_6, %c0_7], %8 {strides = array<i32>} : memref<2x64xf32, #tpu.memory_space<vmem>>, vector<2x64xf32>,
    %c4_i32 = arith.constant 4 : i32
    %10 = arith.cmpi eq, %arg0, %c4_i32 : i32
    %11 = arith.extui %10 : i1 to i32
    %c0_i32_8 = arith.constant 0 : i32
    %12 = arith.cmpi ne, %11, %c0_i32_8 : i32
    scf.if %12 {
      %c0_9 = arith.constant 0 : index
      %c0_10 = arith.constant 0 : index
      %13 = vector.load %arg7[%c0_9, %c0_10] : memref<2x64xf32, #tpu.memory_space<vmem>>, vector<2x64xf32>
      %c0_11 = arith.constant 0 : index
      %c0_12 = arith.constant 0 : index
      %14 = vector.load %arg3[%c0_11, %c0_12] : memref<1x64xf32, #tpu.memory_space<vmem>>, vector<1x64xf32>
      %15 = vector.broadcast %14 : vector<1x64xf32> to vector<2x64xf32>
      %16 = arith.addf %13, %15 : vector<2x64xf32>
      %17 = arith.truncf %16 : vector<2x64xf32> to vector<2x64xbf16>
      %c0_13 = arith.constant 0 : index
      %c0_14 = arith.constant 0 : index
      %18 = vector.load %arg4[%c0_13, %c0_14] : memref<64x1xbf16, #tpu.memory_space<vmem>>, vector<64x1xbf16>
      %cst_15 = arith.constant dense<0.000000e+00> : vector<2x1xf32>
      %19 = tpu.matmul %17, %18, %cst_15 {dimension_numbers = #tpu.dot_dimension_numbers<[1], [0], [0], [1], [0, 0, 1, 1], [], []>} : vector<2x64xbf16>, vector<64x1xbf16>, vector<2x1xf32> -> vector<2x1xf32>
      %c0_16 = arith.constant 0 : index
      %c0_17 = arith.constant 0 : index
      %20 = vector.load %arg5[%c0_16, %c0_17] : memref<1x1xf32, #tpu.memory_space<vmem>>, vector<1x1xf32>
      %21 = vector.broadcast %20 : vector<1x1xf32> to vector<2x1xf32>
      %22 = arith.addf %19, %21 : vector<2x1xf32>
      %c0_18 = arith.constant 0 : index
      %c0_19 = arith.constant 0 : index
      %23 = vector.load %arg6[%c0_18, %c0_19] : memref<2x1xf32, #tpu.memory_space<vmem>>, vector<2x1xf32>
      tpu.vector_store %arg6[%c0_18, %c0_19], %22 {strides = array<i32>} : memref<2x1xf32, #tpu.memory_space<vmem>>, vector<2x1xf32>,
    } else {
    }
    return
  }
  func.func @transform_0(%arg0: i32) -> (i32, i32) {
    %c0_i32 = arith.constant 0 : i32
    %c0_i32_0 = arith.constant 0 : i32
    return %c0_i32, %arg0 : i32, i32
  }
  func.func @transform_1(%arg0: i32) -> (i32, i32) {
    %c0_i32 = arith.constant 0 : i32
    %c0_i32_0 = arith.constant 0 : i32
    return %arg0, %c0_i32 : i32, i32
  }
  func.func @transform_2(%arg0: i32) -> (i32, i32) {
    %c0_i32 = arith.constant 0 : i32
    %c0_i32_0 = arith.constant 0 : i32
    %c0_i32_1 = arith.constant 0 : i32
    return %c0_i32, %c0_i32_0 : i32, i32
  }
  func.func @transform_3(%arg0: i32) -> (i32, i32) {
    %c0_i32 = arith.constant 0 : i32
    %c0_i32_0 = arith.constant 0 : i32
    %c0_i32_1 = arith.constant 0 : i32
    return %c0_i32, %c0_i32_0 : i32, i32
  }
  func.func @transform_4(%arg0: i32) -> (i32, i32) {
    %c0_i32 = arith.constant 0 : i32
    %c0_i32_0 = arith.constant 0 : i32
    %c0_i32_1 = arith.constant 0 : i32
    return %c0_i32, %c0_i32_0 : i32, i32
  }
  func.func @transform_5(%arg0: i32) -> (i32, i32) {
    %c0_i32 = arith.constant 0 : i32
    %c0_i32_0 = arith.constant 0 : i32
    %c0_i32_1 = arith.constant 0 : i32
    return %c0_i32, %c0_i32_0 : i32, i32
  }
}

</mosaic_0001>

<bundles_post_ra>
// kernel: enformer_forward.15
= control target key start
LH: loop header
LB: loop body
LE: loop exit
PB: predicated region body
PF: predicated region fallthrough
CT: control target
= control target key end

     0   :  { %s265_s9 = smov 0   ;;  %s288_s0 = inlined_call_operand.vmem [shape: f32[2,10,64], index: 0, kind: input, shape index: {}]   ;;  %s289_s1 = inlined_call_operand.vmem [shape: f32[10,32], index: 1, kind: input, shape index: {}]   ;;  %s290_s2 = inlined_call_operand.vmem [shape: f32[2,10,32], index: 2, kind: output, shape index: {}]  }
   0x1 LB: > { %s219_s10 = sadd.s32 4294967295, %s247_s9   ;;  %p223_p0 = scmp.ge.s32.totalorder %s247_s9, 1  ;;  %s247_s9 = sphi %s265_s9, %s12_s9  }
   0x2   : > { %p112_p1 = scmp.lt.s32.totalorder %s247_s9, 3 }
   0x4   : > { %p113_p2 = pnand %p223_p0, %p112_p1 }
   0x5   : > { %p134_p3 = scmp.lt.s32.totalorder (!%p113_p2), %s219_s10, 1  ;;  %s249_s15 = smov (!%p113_p2), 96  }
   0x6   : > { %116 = sbr.rel (%p113_p2) target bundleno = 143 (0x8f), region = 28 }
   0xb   : > { %s292_s10 = smov (!%p134_p3, %s219_s10), 1  ;;  %v156_v2 = vld [vmem:[%s289_s1] sm:$0xff]  ;;  %vm160_vm0 = vcmask 261120   ;;  %v157_v6 = vld [vmem:[%s289_s1 + $0x8] sm:$0x3]  ;;  %vm162_vm1 = vcmask 254976  }
   0xc   : > { %s230_s11 = sshll.u32 %s292_s10, 4 }
   0xd   : > { %s138_s14 = scalar_lea.vmem %s288_s0, %s230_s11  ;;  %s143_s20 = scalar_lea.vmem %s290_s2, %s230_s11 }
   0xe   : > { %v144_v0 = vld [vmem:[%s138_s14] sm:$0xff]  ;;  %v145_v1 = vld [vmem:[%s138_s14 + $0x8] sm:$0x3] }
   0xf   : > { %148 = vrot.lane.b32.xlu0 %v144_v0, %s249_s15 }
  0x17   : > { %150 = vrot.lane.b32.xlu0 %v145_v1, %s249_s15 }
  0x81   : > { %v149_v3 = vpop.permute.xlu0 %148 }
  0x82   : > { %v154_v4 = vmax.f32 %v144_v0, %v149_v3 }
  0x84   : > { %v158_v5 = vadd.f32 %v156_v2, %v154_v4 }
  0x86   : > { %161 = vst.msk [vmem:[%s143_s20] sm:$0xff] %vm160_vm0, %v158_v5 }
  0x89   : > { %v151_v7 = vpop.permute.xlu0 %150 }
  0x8a   : > { %v155_v8 = vmax.f32 %v145_v1, %v151_v7 }
  0x8c   : > { %v159_v9 = vadd.f32 %v157_v6, %v155_v8 }
  0x8e   : > { %163 = vst.msk [vmem:[%s143_s20 + $0x8] sm:$0x3] %vm162_vm1, %v159_v9 }
  0x8f PF: > { %s12_s9 = sadd.s32 1, %s247_s9  }
  0x90   : > { %p9_p4 = scmp.ge.s32.totalorder %s12_s9, 4  }
  0x92   :  { %11 = sbr.rel (!%p9_p4) target bundleno = 1 (0x1), region = 58 }

// kernel: enformer_forward.13
= control target key start
LH: loop header
LB: loop body
LE: loop exit
PB: predicated region body
PF: predicated region fallthrough
CT: control target
= control target key end

     0   :  { %s453_s12 = smov 0   ;;  %s517_s0 = inlined_call_operand.vmem [shape: f32[2,22,32], index: 0, kind: input, shape index: {}]   ;;  %s518_s1 = inlined_call_operand.vmem [shape: bf16[96,32], index: 1, kind: input, shape index: {}]   ;;  %s519_s2 = inlined_call_operand.vmem [shape: f32[1,32], index: 2, kind: input, shape index: {}]   ;;  %s520_s3 = inlined_call_operand.vmem [shape: f32[2,20,32], index: 3, kind: output, shape index: {}]  }
   0x1 LB: > { %s354_s13 = sadd.s32 4294967295, %s429_s12   ;;  %p358_p0 = scmp.ge.s32.totalorder %s429_s12, 1  ;;  %s429_s12 = sphi %s453_s12, %s13_s12  }
   0x2   : > { %p137_p1 = scmp.lt.s32.totalorder %s429_s12, 3 }
   0x4   : > { %p138_p2 = pnand %p358_p0, %p137_p1 }
   0x5   : > { %p161_p3 = scmp.lt.s32.totalorder (!%p138_p2), %s354_s13, 1  ;;  %s431_s24 = smov (!%p138_p2), 32  }
   0x6   : > { %141 = sbr.rel (%p138_p2) target bundleno = 285 (0x11d), region = 32  ;;  %s432_s25 = smov (!%p138_p2), 64  }
   0xb   : > { %v394_v0 = vld [vmem:[%s518_s1 + $0x28] sm:$0xff]  ;;  %s522_s13 = smov (!%p161_p3, %s354_s13), 1  ;;  %v393_v1 = vld [vmem:[%s518_s1 + $0x20] sm:$0xff]  ;;  %v392_v2 = vld [vmem:[%s518_s1 + $0x18] sm:$0xff]  ;;  %vm205_vm0 = vcmask 261120   ;;  %vm209_vm1 = vcmask 523264  }
   0xc   : > { %395 = vmatpush.bf16.msra.mxu1 %v394_v0  ;;  %276 = vmatpush.bf16.msra.mxu0 %v394_v0  ;;  %s401_s18 = smul.u32 24, %s522_s13  ;;  %v391_v11 = vld [vmem:[%s518_s1 + $0x10] sm:$0xff]  ;;  %v390_v12 = vld [vmem:[%s518_s1 + $0x8] sm:$0xff]  ;;  %v389_v13 = vld [vmem:[%s518_s1] sm:$0xff]  ;;  %vm267_vm2 = vcmask 785408   ;;  %vm297_vm3 = vcmask 257024  }
   0xd   : > { %v422_v33 = vld [vmem:[%s519_s2] ss:$0 sm:$0xff] }
   0xe   : > { %s475_s21 = scalar_lea.vmem %s517_s0, %s401_s18  ;;  %s170_s9 = scalar_lea.vmem %s520_s3, %s401_s18 }
   0xf   : > { %v177_v3 = vld [vmem:[%s475_s21 + $0x11] sm:$0xf]  ;;  %v175_v4 = vld [vmem:[%s475_s21 + $0x1] sm:$0xff]  ;;  %v176_v5 = vld [vmem:[%s475_s21 + $0x9] sm:$0xff] }
  0x10   : > { %396 = vmatpush.bf16.msra.mxu1 %v393_v1  ;;  %277 = vmatpush.bf16.msra.mxu0 %v393_v1  ;;  %v412_v6 = vpack.i.bf16 %v176_v5, %v175_v4  ;;  %v178_v7 = vld [vmem:[%s475_s21 + $0x2] sm:$0xff]  ;;  %v179_v8 = vld [vmem:[%s475_s21 + $0xa] sm:$0xff]  ;;  %v180_v9 = vld [vmem:[%s475_s21 + $0x12] sm:$0xf] }
  0x11   : > { %188 = vrot.lane.b32.xlu1 %v177_v3, %s431_s24  ;;  %v417_v10 = vpack.i.bf16 %v179_v8, %v178_v7  ;;  %v174_v16 = vld [vmem:[%s475_s21 + $0x10] sm:$0xf]  ;;  %v172_v21 = vld [vmem:[%s475_s21] sm:$0xff]  ;;  %v173_v22 = vld [vmem:[%s475_s21 + $0x8] sm:$0xff] }
  0x12   : > { %413 = vrot.lane.b32.xlu0 %v412_v6, %s431_s24 }
  0x14   : > { %397 = vmatpush.bf16.msra.mxu1 %v392_v2  ;;  %278 = vmatpush.bf16.msra.mxu0 %v392_v2 }
  0x18   : > { %398 = vmatpush.bf16.msra.mxu1 %v391_v11  ;;  %279 = vmatpush.bf16.msra.mxu0 %v391_v11 }
  0x19   : > { %200 = vrot.lane.b32.xlu1 %v180_v9, %s432_s25 }
  0x1a   : > { %418 = vrot.lane.b32.xlu0 %v417_v10, %s432_s25 }
  0x1c   : > { %399 = vmatpush.bf16.msra.mxu1 %v390_v12  ;;  %280 = vmatpush.bf16.msra.mxu0 %v390_v12 }
  0x20   : > { %400 = vmatpush.bf16.msra.mxu1 %v389_v13  ;;  %281 = vmatpush.bf16.msra.mxu0 %v389_v13 }
  0x83   : > { %v189_v14 = vpop.permute.xlu1 %188 }
  0x84   : > { %v414_v15 = vpop.permute.xlu0 %413  ;;  %v208_v17 = vsel %vm205_vm0, %v174_v16, %v189_v14 }
  0x85   : > { %v416_v18 = vunpack.i.h.bf16 %v414_v15  ;;  %v415_v19 = vunpack.i.l.bf16 %v414_v15 }
  0x87   : > { %v206_v28 = vsel %vm205_vm0, %v172_v21, %v415_v19  ;;  %v207_v29 = vsel %vm205_vm0, %v173_v22, %v416_v18 }
  0x8b   : > { %v201_v20 = vpop.permute.xlu1 %200 }
  0x8c   : > { %v212_v23 = vsel %vm209_vm1, %v208_v17, %v201_v20  ;;  %v419_v25 = vpop.permute.xlu0 %418 }
  0x8d   : > { %v214_v24 = vpack.c.bf16 %v212_v23, %v212_v23  ;;  %v421_v26 = vunpack.i.h.bf16 %v419_v25  ;;  %v420_v27 = vunpack.i.l.bf16 %v419_v25 }
  0x8f   : > { %386 = vmatmul.msk.bf16.vlgmr.msra.gmra.mxu1 %vm267_vm2, %v214_v24  ;;  %v210_v30 = vsel %vm209_vm1, %v206_v28, %v420_v27  ;;  %v211_v31 = vsel %vm209_vm1, %v207_v29, %v421_v26 }
  0x90   : > { %v213_v32 = vpack.c.bf16 %v211_v31, %v210_v30 }
  0x92   : > { %385 = vmatmul.msk.bf16.vlgmr.msra.gmra.mxu0 %vm267_vm2, %v213_v32 }
 0x10c   : > { %v288_v34 = vpop.f32.mrf.mxu1 }
 0x10d   : > { %v289_v35 = vadd.f32 %v422_v33, %v288_v34 }
 0x10f   : > { %v294_v36 = vmax.f32 %v289_v35, 0.0  ;;  %v283_v37 = vpop.f32.mrf.mxu0 }
 0x110   : > { %v284_v38 = vadd.f32 %v422_v33, %v283_v37 }
 0x111   : > { %298 = vst.msk [vmem:[%s170_s9 + $0x10] sm:$0xf] %vm297_vm3, %v294_v36 }
 0x112   : > { %v292_v39 = vmax.f32 %v284_v38, 0.0 }
 0x114   : > { %v290_v40 = vpop.f32.mrf.mxu1  ;;  %295 = vst.msk [vmem:[%s170_s9] sm:$0xff] %vm205_vm0, %v292_v39 }
 0x117   : > { %v285_v41 = vpop.f32.mrf.mxu0 }
 0x118   : > { %v286_v42 = vadd.f32 %v422_v33, %v285_v41 }
 0x11a   : > { %v293_v43 = vmax.f32 %v286_v42, 0.0 }
 0x11c   : > { %296 = vst.msk [vmem:[%s170_s9 + $0x8] sm:$0xff] %vm205_vm0, %v293_v43 }
 0x11d PF: > { %s13_s12 = sadd.s32 1, %s429_s12  }
 0x11e   : > { %p10_p4 = scmp.ge.s32.totalorder %s13_s12, 4  }
 0x120   :  { %12 = sbr.rel (!%p10_p4) target bundleno = 1 (0x1), region = 62 }

// kernel: enformer_forward.14
= control target key start
LH: loop header
LB: loop body
LE: loop exit
PB: predicated region body
PF: predicated region fallthrough
CT: control target
= control target key end

     0   :  { %s521_s15 = smov 0   ;;  %s586_s0 = inlined_call_operand.vmem [shape: f32[2,22,32], index: 0, kind: input, shape index: {}]   ;;  %s587_s1 = inlined_call_operand.vmem [shape: bf16[96,32], index: 1, kind: input, shape index: {}]   ;;  %s588_s2 = inlined_call_operand.vmem [shape: f32[1,32], index: 2, kind: input, shape index: {}]   ;;  %s589_s3 = inlined_call_operand.vmem [shape: f32[2,20,32], index: 3, kind: input, shape index: {}]   ;;  %s590_s4 = inlined_call_operand.vmem [shape: f32[2,20,32], index: 4, kind: output, shape index: {}]  }
   0x1 LB: > { %s416_s16 = sadd.s32 4294967295, %s492_s15   ;;  %p420_p0 = scmp.ge.s32.totalorder %s492_s15, 1  ;;  %s492_s15 = sphi %s521_s15, %s14_s15  }
   0x2   : > { %p172_p1 = scmp.lt.s32.totalorder %s492_s15, 3 }
   0x4   : > { %p173_p2 = pnand %p420_p0, %p172_p1 }
   0x5   : > { %p203_p3 = scmp.lt.s32.totalorder (!%p173_p2), %s416_s16, 1  ;;  %s494_s27 = smov (!%p173_p2), 32  }
   0x6   : > { %176 = sbr.rel (%p173_p2) target bundleno = 285 (0x11d), region = 36  ;;  %s495_s28 = smov (!%p173_p2), 64  }
   0xb   : > { %v457_v0 = vld [vmem:[%s587_s1 + $0x28] sm:$0xff]  ;;  %s592_s16 = smov (!%p203_p3, %s416_s16), 1  ;;  %v456_v1 = vld [vmem:[%s587_s1 + $0x20] sm:$0xff]  ;;  %v455_v2 = vld [vmem:[%s587_s1 + $0x18] sm:$0xff]  ;;  %vm252_vm0 = vcmask 261120   ;;  %vm256_vm1 = vcmask 523264  }
   0xc   : > { %458 = vmatpush.bf16.msra.mxu1 %v457_v0  ;;  %323 = vmatpush.bf16.msra.mxu0 %v457_v0  ;;  %s535_s21 = smul.u32 24, %s592_s16  ;;  %v454_v11 = vld [vmem:[%s587_s1 + $0x10] sm:$0xff]  ;;  %v453_v12 = vld [vmem:[%s587_s1 + $0x8] sm:$0xff]  ;;  %v452_v13 = vld [vmem:[%s587_s1] sm:$0xff]  ;;  %vm314_vm2 = vcmask 785408   ;;  %vm347_vm3 = vcmask 257024  }
   0xd   : > { %v485_v33 = vld [vmem:[%s588_s2] ss:$0 sm:$0xff] }
   0xe   : > { %s541_s24 = scalar_lea.vmem %s586_s0, %s535_s21  ;;  %s212_s11 = scalar_lea.vmem %s589_s3, %s535_s21 }
   0xf   : > { %v224_v3 = vld [vmem:[%s541_s24 + $0x11] sm:$0xf]  ;;  %v222_v4 = vld [vmem:[%s541_s24 + $0x1] sm:$0xff]  ;;  %v223_v5 = vld [vmem:[%s541_s24 + $0x9] sm:$0xff]  ;;  %s217_s17 = scalar_lea.vmem %s590_s4, %s535_s21 }
  0x10   : > { %459 = vmatpush.bf16.msra.mxu1 %v456_v1  ;;  %324 = vmatpush.bf16.msra.mxu0 %v456_v1  ;;  %v475_v6 = vpack.i.bf16 %v223_v5, %v222_v4  ;;  %v225_v7 = vld [vmem:[%s541_s24 + $0x2] sm:$0xff]  ;;  %v226_v8 = vld [vmem:[%s541_s24 + $0xa] sm:$0xff]  ;;  %v227_v9 = vld [vmem:[%s541_s24 + $0x12] sm:$0xf] }
  0x11   : > { %235 = vrot.lane.b32.xlu1 %v224_v3, %s494_s27  ;;  %v480_v10 = vpack.i.bf16 %v226_v8, %v225_v7  ;;  %v221_v16 = vld [vmem:[%s541_s24 + $0x10] sm:$0xf]  ;;  %v219_v21 = vld [vmem:[%s541_s24] sm:$0xff]  ;;  %v220_v22 = vld [vmem:[%s541_s24 + $0x8] sm:$0xff] }
  0x12   : > { %476 = vrot.lane.b32.xlu0 %v475_v6, %s494_s27  ;;  %v341_v35 = vld [vmem:[%s212_s11 + $0x10] sm:$0xf]  ;;  %v339_v39 = vld [vmem:[%s212_s11] sm:$0xff]  ;;  %v340_v44 = vld [vmem:[%s212_s11 + $0x8] sm:$0xff] }
  0x14   : > { %460 = vmatpush.bf16.msra.mxu1 %v455_v2  ;;  %325 = vmatpush.bf16.msra.mxu0 %v455_v2 }
  0x18   : > { %461 = vmatpush.bf16.msra.mxu1 %v454_v11  ;;  %326 = vmatpush.bf16.msra.mxu0 %v454_v11 }
  0x19   : > { %247 = vrot.lane.b32.xlu1 %v227_v9, %s495_s28 }
  0x1a   : > { %481 = vrot.lane.b32.xlu0 %v480_v10, %s495_s28 }
  0x1c   : > { %462 = vmatpush.bf16.msra.mxu1 %v453_v12  ;;  %327 = vmatpush.bf16.msra.mxu0 %v453_v12 }
  0x20   : > { %463 = vmatpush.bf16.msra.mxu1 %v452_v13  ;;  %328 = vmatpush.bf16.msra.mxu0 %v452_v13 }
  0x83   : > { %v236_v14 = vpop.permute.xlu1 %235 }
  0x84   : > { %v477_v15 = vpop.permute.xlu0 %476  ;;  %v255_v17 = vsel %vm252_vm0, %v221_v16, %v236_v14 }
  0x85   : > { %v479_v18 = vunpack.i.h.bf16 %v477_v15  ;;  %v478_v19 = vunpack.i.l.bf16 %v477_v15 }
  0x87   : > { %v253_v28 = vsel %vm252_vm0, %v219_v21, %v478_v19  ;;  %v254_v29 = vsel %vm252_vm0, %v220_v22, %v479_v18 }
  0x8b   : > { %v248_v20 = vpop.permute.xlu1 %247 }
  0x8c   : > { %v259_v23 = vsel %vm256_vm1, %v255_v17, %v248_v20  ;;  %v482_v25 = vpop.permute.xlu0 %481 }
  0x8d   : > { %v261_v24 = vpack.c.bf16 %v259_v23, %v259_v23  ;;  %v484_v26 = vunpack.i.h.bf16 %v482_v25  ;;  %v483_v27 = vunpack.i.l.bf16 %v482_v25 }
  0x8f   : > { %449 = vmatmul.msk.bf16.vlgmr.msra.gmra.mxu1 %vm314_vm2, %v261_v24  ;;  %v257_v30 = vsel %vm256_vm1, %v253_v28, %v483_v27  ;;  %v258_v31 = vsel %vm256_vm1, %v254_v29, %v484_v26 }
  0x90   : > { %v260_v32 = vpack.c.bf16 %v258_v31, %v257_v30 }
  0x92   : > { %448 = vmatmul.msk.bf16.vlgmr.msra.gmra.mxu0 %vm314_vm2, %v260_v32 }
 0x10c   : > { %v335_v34 = vpop.f32.mrf.mxu1 }
 0x10d   : > { %v336_v36 = vadd.f32 %v485_v33, %v335_v34 }
 0x10f   : > { %v344_v37 = vadd.f32 %v341_v35, %v336_v36  ;;  %v330_v38 = vpop.f32.mrf.mxu0 }
 0x110   : > { %v331_v40 = vadd.f32 %v485_v33, %v330_v38 }
 0x111   : > { %348 = vst.msk [vmem:[%s217_s17 + $0x10] sm:$0xf] %vm347_vm3, %v344_v37 }
 0x112   : > { %v342_v41 = vadd.f32 %v339_v39, %v331_v40 }
 0x114   : > { %v337_v42 = vpop.f32.mrf.mxu1  ;;  %345 = vst.msk [vmem:[%s217_s17] sm:$0xff] %vm252_vm0, %v342_v41 }
 0x117   : > { %v332_v43 = vpop.f32.mrf.mxu0 }
 0x118   : > { %v333_v45 = vadd.f32 %v485_v33, %v332_v43 }
 0x11a   : > { %v343_v46 = vadd.f32 %v340_v44, %v333_v45 }
 0x11c   : > { %346 = vst.msk [vmem:[%s217_s17 + $0x8] sm:$0xff] %vm252_vm0, %v343_v46 }
 0x11d PF: > { %s14_s15 = sadd.s32 1, %s492_s15  }
 0x11e   : > { %p11_p4 = scmp.ge.s32.totalorder %s14_s15, 4  }
 0x120   :  { %13 = sbr.rel (!%p11_p4) target bundleno = 1 (0x1), region = 69 }

// kernel: enformer_forward.12
= control target key start
LH: loop header
LB: loop body
LE: loop exit
PB: predicated region body
PF: predicated region fallthrough
CT: control target
= control target key end

     0   :  { %s504_s12 = smov 0   ;;  %s578_s0 = inlined_call_operand.vmem [shape: f32[2,26,4], index: 0, kind: input, shape index: {}]   ;;  %s579_s1 = inlined_call_operand.vmem [shape: bf16[28,32], index: 1, kind: input, shape index: {}]   ;;  %s580_s2 = inlined_call_operand.vmem [shape: f32[1,32], index: 2, kind: input, shape index: {}]   ;;  %s581_s3 = inlined_call_operand.vmem [shape: f32[2,20,32], index: 3, kind: output, shape index: {}]  }
   0x1 LB: > { %s399_s13 = sadd.s32 4294967295, %s476_s12   ;;  %p403_p0 = scmp.ge.s32.totalorder %s476_s12, 1  ;;  %s476_s12 = sphi %s504_s12, %s13_s12  }
   0x2   : > { %p137_p1 = scmp.lt.s32.totalorder %s476_s12, 3 }
   0x4   : > { %p138_p2 = pnand %p403_p0, %p137_p1 }
   0x5   : > { %p161_p3 = scmp.lt.s32.totalorder (!%p138_p2), %s399_s13, 1  ;;  %s478_s18 = smov (!%p138_p2), 12  }
   0x6   : > { %141 = sbr.rel (%p138_p2) target bundleno = 296 (0x128), region = 32  ;;  %s479_s19 = smov (!%p138_p2), 4  }
   0x7   : > { %s480_s20 = smov (!%p138_p2), 16   ;;  %s481_s21 = smov (!%p138_p2), 8  }
   0x8   : > { %s482_s22 = smov (!%p138_p2), 20   ;;  %s483_s23 = smov (!%p138_p2), 24  }
   0xb   : > { %s583_s13 = smov (!%p161_p3, %s399_s13), 1  ;;  %v413_v24 = vld [vmem:[%s579_s1 + $0x8] sm:$0xf]  ;;  %v421_v25 = vld [vmem:[%s579_s1 + $0x8] sm:$0x30]  ;;  %vm317_vm0 = vcmask 1045504  }
   0xc   : > { %s419_s14 = sshll.u32 %s583_s13, 5  ;;  %v414_v26 = vor.u32 %v421_v25, %v413_v24  ;;  %v420_v28 = vld [vmem:[%s579_s1] sm:$0xff]  ;;  %vm265_vm1 = vcmask 31744   ;;  %vm269_vm2 = vcmask 64512   ;;  %vm273_vm3 = vcmask 97280   ;;  %s424_s30 = smul.u32 24, %s583_s13 }
   0xd   : > { %s518_s17 = scalar_lea.vmem %s578_s0, %s419_s14  ;;  %vm277_vm4 = vcmask 130048   ;;  %vm281_vm5 = vcmask 162816   ;;  %vm285_vm6 = vcmask 195584   ;;  %vm310_vm7 = vcmask 228352  }
   0xe   : > { %v181_v0 = vld [vmem:[%s518_s17 + $0x3] sm:$0xff]  ;;  %v182_v1 = vld [vmem:[%s518_s17 + $0xb] sm:$0xff]  ;;  %v183_v16 = vld [vmem:[%s518_s17 + $0x13] sm:$0xf]  ;;  %v319_v27 = vsel %vm317_vm0, %v414_v26, 0  ;;  %s170_s8 = scalar_lea.vmem %s581_s3, %s424_s30  ;;  %vm339_vm8 = vcmask 261120  }
   0xf   : > { %v175_v2 = vld [vmem:[%s518_s17 + $0x1] sm:$0xff]  ;;  %v449_v3 = vpack.i.bf16 %v182_v1, %v181_v0  ;;  %v176_v4 = vld [vmem:[%s518_s17 + $0x9] sm:$0xff]  ;;  %v177_v11 = vld [vmem:[%s518_s17 + $0x11] sm:$0xf]  ;;  %327 = vmatpush.bf16.msra.mxu0 %v319_v27  ;;  %422 = vmatpush.bf16.msra.mxu1 %v319_v27  ;;  %vm342_vm9 = vcmask 257024  }
  0x10   : > { %v439_v5 = vpack.i.bf16 %v176_v4, %v175_v2  ;;  %v184_v6 = vld [vmem:[%s518_s17 + $0x4] sm:$0xff]  ;;  %v185_v7 = vld [vmem:[%s518_s17 + $0xc] sm:$0xff]  ;;  %v189_v21 = vld [vmem:[%s518_s17 + $0x15] sm:$0xf] }
  0x11   : > { %450 = vrot.lane.b32.xlu1 %v449_v3, %s478_s18  ;;  %v178_v8 = vld [vmem:[%s518_s17 + $0x2] sm:$0xff]  ;;  %v179_v9 = vld [vmem:[%s518_s17 + $0xa] sm:$0xff]  ;;  %v454_v10 = vpack.i.bf16 %v185_v7, %v184_v6  ;;  %v180_v13 = vld [vmem:[%s518_s17 + $0x12] sm:$0xf] }
  0x12   : > { %440 = vrot.lane.b32.xlu0 %v439_v5, %s479_s19  ;;  %v444_v12 = vpack.i.bf16 %v179_v9, %v178_v8  ;;  %v187_v14 = vld [vmem:[%s518_s17 + $0x5] sm:$0xff]  ;;  %v188_v15 = vld [vmem:[%s518_s17 + $0xd] sm:$0xff]  ;;  %v192_v23 = vld [vmem:[%s518_s17 + $0x16] sm:$0xf] }
  0x13   : > { %455 = vrot.lane.b32.xlu2 %v454_v10, %s480_s20  ;;  %v459_v17 = vpack.i.bf16 %v188_v15, %v187_v14  ;;  %v190_v18 = vld [vmem:[%s518_s17 + $0x6] sm:$0xff]  ;;  %v191_v19 = vld [vmem:[%s518_s17 + $0xe] sm:$0xff]  ;;  %328 = vmatpush.bf16.msra.mxu0 %v420_v28 }
  0x14   : > { %v464_v20 = vpack.i.bf16 %v191_v19, %v190_v18  ;;  %v186_v22 = vld [vmem:[%s518_s17 + $0x14] sm:$0xf]  ;;  %423 = vmatpush.bf16.msra.mxu1 %v420_v28  ;;  %v172_v36 = vld [vmem:[%s518_s17] sm:$0xff]  ;;  %v173_v37 = vld [vmem:[%s518_s17 + $0x8] sm:$0xff] }
  0x15   : > { %v174_v56 = vld [vmem:[%s518_s17 + $0x10] sm:$0xf] }
  0x19   : > { %200 = vrot.lane.b32.xlu1 %v177_v11, %s479_s19 }
  0x1a   : > { %445 = vrot.lane.b32.xlu0 %v444_v12, %s481_s21  ;;  %v469_v12 = vld [vmem:[%s580_s2] ss:$0 sm:$0xff] }
  0x1b   : > { %212 = vrot.lane.b32.xlu2 %v180_v13, %s481_s21 }
  0x21   : > { %224 = vrot.lane.b32.xlu1 %v183_v16, %s478_s18 }
  0x22   : > { %460 = vrot.lane.b32.xlu0 %v459_v17, %s482_s22 }
  0x23   : > { %465 = vrot.lane.b32.xlu2 %v464_v20, %s483_s23 }
  0x29   : > { %248 = vrot.lane.b32.xlu1 %v189_v21, %s482_s22 }
  0x2a   : > { %236 = vrot.lane.b32.xlu0 %v186_v22, %s480_s20 }
  0x2b   : > { %260 = vrot.lane.b32.xlu2 %v192_v23, %s483_s23 }
  0x6d   : > { %v456_v29 = vpop.permute.xlu2 %455 }
  0x6e   : > { %v458_v48 = vunpack.i.h.bf16 %v456_v29  ;;  %v457_v52 = vunpack.i.l.bf16 %v456_v29 }
  0x75   : > { %v213_v32 = vpop.permute.xlu2 %212 }
  0x7d   : > { %v466_v47 = vpop.permute.xlu2 %465 }
  0x7e   : > { %v468_v54 = vunpack.i.h.bf16 %v466_v47  ;;  %v467_v55 = vunpack.i.l.bf16 %v466_v47 }
  0x83   : > { %v451_v30 = vpop.permute.xlu1 %450 }
  0x84   : > { %v441_v31 = vpop.permute.xlu0 %440  ;;  %v453_v45 = vunpack.i.h.bf16 %v451_v30  ;;  %v452_v46 = vunpack.i.l.bf16 %v451_v30 }
  0x85   : > { %v443_v33 = vunpack.i.h.bf16 %v441_v31  ;;  %v442_v34 = vunpack.i.l.bf16 %v441_v31  ;;  %v261_v7 = vpop.permute.xlu2 %260 }
  0x87   : > { %v266_v41 = vsel %vm265_vm1, %v172_v36, %v442_v34  ;;  %v267_v42 = vsel %vm265_vm1, %v173_v37, %v443_v33 }
  0x8b   : > { %v201_v35 = vpop.permute.xlu1 %200 }
  0x8c   : > { %v446_v38 = vpop.permute.xlu0 %445  ;;  %v268_v63 = vsel %vm265_vm1, %v174_v56, %v201_v35 }
  0x8d   : > { %v448_v39 = vunpack.i.h.bf16 %v446_v38  ;;  %v447_v40 = vunpack.i.l.bf16 %v446_v38  ;;  %v272_v3 = vsel %vm269_vm2, %v268_v63, %v213_v32 }
  0x8f   : > { %v270_v43 = vsel %vm269_vm2, %v266_v41, %v447_v40  ;;  %v271_v44 = vsel %vm269_vm2, %v267_v42, %v448_v39 }
  0x90   : > { %v274_v50 = vsel %vm273_vm3, %v270_v43, %v452_v46  ;;  %v275_v51 = vsel %vm273_vm3, %v271_v44, %v453_v45 }
  0x91   : > { %v278_v59 = vsel %vm277_vm4, %v274_v50, %v457_v52  ;;  %v279_v60 = vsel %vm277_vm4, %v275_v51, %v458_v48 }
  0x93   : > { %v225_v49 = vpop.permute.xlu1 %224 }
  0x94   : > { %v461_v53 = vpop.permute.xlu0 %460  ;;  %v276_v5 = vsel %vm273_vm3, %v272_v3, %v225_v49 }
  0x95   : > { %v463_v57 = vunpack.i.h.bf16 %v461_v53  ;;  %v462_v58 = vunpack.i.l.bf16 %v461_v53 }
  0x97   : > { %v282_v61 = vsel %vm281_vm5, %v278_v59, %v462_v58  ;;  %v283_v62 = vsel %vm281_vm5, %v279_v60, %v463_v57 }
  0x98   : > { %v286_v0 = vsel %vm285_vm6, %v282_v61, %v467_v55  ;;  %v287_v1 = vsel %vm285_vm6, %v283_v62, %v468_v54 }
  0x99   : > { %v289_v2 = vpack.c.bf16 %v287_v1, %v286_v0 }
  0x9b   : > { %415 = vmatmul.msk.bf16.vlgmr.msra.gmra.mxu0 %vm310_vm7, %v289_v2  ;;  %v249_v4 = vpop.permute.xlu1 %248 }
  0x9c   : > { %v237_v6 = vpop.permute.xlu0 %236 }
  0x9d   : > { %v280_v8 = vsel %vm277_vm4, %v276_v5, %v237_v6 }
  0x9e   : > { %v284_v9 = vsel %vm281_vm5, %v280_v8, %v249_v4 }
  0x9f   : > { %v288_v10 = vsel %vm285_vm6, %v284_v9, %v261_v7 }
  0xa0   : > { %v290_v11 = vpack.c.bf16 %v288_v10, %v288_v10 }
  0xa2   : > { %416 = vmatmul.msk.bf16.vlgmr.msra.gmra.mxu1 %vm310_vm7, %v290_v11 }
 0x118   : > { %v330_v13 = vpop.f32.mrf.mxu0 }
 0x119   : > { %v331_v14 = vadd.f32 %v469_v12, %v330_v13 }
 0x11b   : > { %340 = vst.msk [vmem:[%s170_s8] sm:$0xff] %vm339_vm8, %v331_v14 }
 0x11f   : > { %v335_v15 = vpop.f32.mrf.mxu1 }
 0x120   : > { %v336_v16 = vadd.f32 %v469_v12, %v335_v15  ;;  %v332_v17 = vpop.f32.mrf.mxu0 }
 0x121   : > { %v333_v18 = vadd.f32 %v469_v12, %v332_v17 }
 0x122   : > { %343 = vst.msk [vmem:[%s170_s8 + $0x10] sm:$0xf] %vm342_vm9, %v336_v16 }
 0x123   : > { %341 = vst.msk [vmem:[%s170_s8 + $0x8] sm:$0xff] %vm339_vm8, %v333_v18 }
 0x127   : > { %v337_v19 = vpop.f32.mrf.mxu1 }
 0x128 PF: > { %s13_s12 = sadd.s32 1, %s476_s12  }
 0x129   : > { %p10_p4 = scmp.ge.s32.totalorder %s13_s12, 4  }
 0x12b   :  { %12 = sbr.rel (!%p10_p4) target bundleno = 1 (0x1), region = 62 }

// kernel: enformer_forward.16
= control target key start
LH: loop header
LB: loop body
LE: loop exit
PB: predicated region body
PF: predicated region fallthrough
CT: control target
= control target key end

     0   :  { %s351_s12 = smov 0   ;;  %s377_s0 = inlined_call_operand.vmem [shape: f32[2,10,32], index: 0, kind: input, shape index: {}]   ;;  %s378_s1 = inlined_call_operand.vmem [shape: bf16[10,30], index: 1, kind: input, shape index: {}]   ;;  %s379_s2 = inlined_call_operand.vmem [shape: f32[1,30], index: 2, kind: input, shape index: {}]   ;;  %s380_s3 = inlined_call_operand.vmem [shape: f32[2,32,30], index: 3, kind: output, shape index: {}]  }
   0x1 LB: > { %s292_s13 = sadd.s32 4294967295, %s329_s12   ;;  %p296_p0 = scmp.ge.s32.totalorder %s329_s12, 1  ;;  %s329_s12 = sphi %s351_s12, %s13_s12  }
   0x2   : > { %p137_p1 = scmp.lt.s32.totalorder %s329_s12, 3 }
   0x4   : > { %p138_p2 = pnand %p296_p0, %p137_p1 }
   0x5   : > { %p161_p3 = scmp.lt.s32.totalorder (!%p138_p2), %s292_s13, 1 }
   0x6   : > { %141 = sbr.rel (%p138_p2) target bundleno = 343 (0x157), region = 32 }
   0xb   : > { %v303_v0 = vld [vmem:[%s378_s1] sm:$0xf]  ;;  %v311_v1 = vld [vmem:[%s378_s1] sm:$0x10]  ;;  %vm209_vm0 = vcmask 1044480   ;;  %s382_s13 = smov (!%p161_p3, %s292_s13), 1 }
   0xc   : > { %v304_v2 = vor.u32 %v311_v1, %v303_v0  ;;  %s309_s18 = sshll.u32 %s382_s13, 4  ;;  %vm202_vm1 = vcmask 80896   ;;  %s310_s22 = sshll.u32 %s382_s13, 5  ;;  %v322_v9 = vld [vmem:[%s379_s2] ss:$0 sm:$0xff]  ;;  %vm232_vm2 = vcmask 244736  }
   0xd   : > { %s165_s21 = scalar_lea.vmem %s377_s0, %s309_s18  ;;  %s170_s27 = scalar_lea.vmem %s380_s3, %s310_s22 }
   0xe   : > { %v211_v3 = vsel %vm209_vm0, %v304_v2, 0  ;;  %v172_v4 = vld [vmem:[%s165_s21] sm:$0xff]  ;;  %v173_v5 = vld [vmem:[%s165_s21 + $0x8] sm:$0x3] }
   0xf   : > { %220 = vmatpush.bf16.msra.mxu0 %v211_v3  ;;  %312 = vmatpush.bf16.msra.mxu1 %v211_v3  ;;  %v174_v6 = vpack.c.bf16 %v173_v5, %v172_v4 }
  0x11   : > { %181 = vxpose.xlu0.c.b16.start.end [1/1] (short) (narrow) %v174_v6, 32 }
  0xbd   : > { %v189_v7 = vpop.trf.xlu0 }
  0xbe   : > { %305 = vmatmul.msk.bf16.vlgmr.msra.gmra.mxu0 %vm202_vm1, %v189_v7 }
  0xcd   : > { %v190_v8 = vpop.trf.xlu0 }
  0xce   : > { %306 = vmatmul.msk.bf16.vlgmr.msra.gmra.mxu1 %vm202_vm1, %v190_v8 }
 0x13b   : > { %v222_v10 = vpop.f32.mrf.mxu0 }
 0x13c   : > { %v223_v11 = vadd.f32 %v322_v9, %v222_v10 }
 0x13e   : > { %233 = vst.msk [vmem:[%s170_s27] sm:$0xff] %vm232_vm2, %v223_v11 }
 0x143   : > { %v224_v12 = vpop.f32.mrf.mxu0 }
 0x144   : > { %v225_v13 = vadd.f32 %v322_v9, %v224_v12 }
 0x146   : > { %234 = vst.msk [vmem:[%s170_s27 + $0x8] sm:$0xff] %vm232_vm2, %v225_v13 }
 0x14b   : > { %v227_v14 = vpop.f32.mrf.mxu1 }
 0x14c   : > { %v228_v15 = vadd.f32 %v322_v9, %v227_v14 }
 0x14e   : > { %235 = vst.msk [vmem:[%s170_s27 + $0x10] sm:$0xff] %vm232_vm2, %v228_v15 }
 0x153   : > { %v229_v16 = vpop.f32.mrf.mxu1 }
 0x154   : > { %v230_v17 = vadd.f32 %v322_v9, %v229_v16 }
 0x156   : > { %236 = vst.msk [vmem:[%s170_s27 + $0x18] sm:$0xff] %vm232_vm2, %v230_v17 }
 0x157 PF: > { %s13_s12 = sadd.s32 1, %s329_s12  }
 0x158   : > { %p10_p4 = scmp.ge.s32.totalorder %s13_s12, 4  }
 0x15a   :  { %12 = sbr.rel (!%p10_p4) target bundleno = 1 (0x1), region = 62 }

// kernel: enformer_forward.18
= control target key start
LH: loop header
LB: loop body
LE: loop exit
PB: predicated region body
PF: predicated region fallthrough
CT: control target
= control target key end

     0   :  { %s525_s18 = smov 0   ;;  %s593_s0 = inlined_call_operand.vmem [shape: f32[2,32,10], index: 0, kind: input, shape index: {}]   ;;  %s594_s1 = inlined_call_operand.vmem [shape: bf16[10,10], index: 1, kind: input, shape index: {}]   ;;  %s595_s2 = inlined_call_operand.vmem [shape: f32[1,10], index: 2, kind: input, shape index: {}]   ;;  %s596_s3 = inlined_call_operand.vmem [shape: f32[1,10], index: 3, kind: input, shape index: {}]   ;;  %s597_s4 = inlined_call_operand.vmem [shape: f32[1,10], index: 4, kind: input, shape index: {}]   ;;  %s598_s5 = inlined_call_operand.vmem [shape: f32[2,32,10], index: 5, kind: output, shape index: {}]  }
   0x1 LB: > { %s443_s19 = sadd.s32 4294967295, %s492_s18   ;;  %p447_p0 = scmp.ge.s32.totalorder %s492_s18, 1  ;;  %s492_s18 = sphi %s525_s18, %s15_s18  }
   0x2   : > { %p187_p1 = scmp.lt.s32.totalorder %s492_s18, 3 }
   0x4   : > { %p188_p2 = pnand %p447_p0, %p187_p1 }
   0x5   : > { %p215_p3 = scmp.lt.s32.totalorder (!%p188_p2), %s443_s19, 1 }
   0x6   : > { %191 = sbr.rel (%p188_p2) target bundleno = 424 (0x1a8), region = 40 }
   0xb   : > { %v454_v0 = vld [vmem:[%s594_s1] sm:$0xf]  ;;  %v462_v1 = vld [vmem:[%s594_s1] sm:$0x10]  ;;  %vm250_vm0 = vcmask 1044480   ;;  %s600_s19 = smov (!%p215_p3, %s443_s19), 1 }
   0xc   : > { %v455_v2 = vor.u32 %v462_v1, %v454_v0  ;;  %s460_s24 = sshll.u32 %s600_s19, 5  ;;  %vm243_vm1 = vcmask 80896   ;;  %v473_v10 = vld [vmem:[%s595_s2] ss:$0 sm:$0xff]  ;;  %v494_v23 = vmov 10.0  }
   0xd   : > { %s219_s27 = scalar_lea.vmem %s593_s0, %s460_s24  ;;  %476 = vrcp.f32 %v494_v23  ;;  %s224_s11 = scalar_lea.vmem %s598_s5, %s460_s24 }
   0xe   : > { %v252_v3 = vsel %vm250_vm0, %v455_v2, 0  ;;  %v226_v4 = vld [vmem:[%s219_s27] sm:$0xff]  ;;  %v227_v5 = vld [vmem:[%s219_s27 + $0x8] sm:$0xff]  ;;  %v228_v6 = vld [vmem:[%s219_s27 + $0x10] sm:$0xff] }
   0xf   : > { %261 = vmatpush.bf16.msra.mxu0 %v252_v3  ;;  %463 = vmatpush.bf16.msra.mxu1 %v252_v3  ;;  %v230_v7 = vpack.c.bf16 %v227_v5, %v226_v4  ;;  %v229_v8 = vld [vmem:[%s219_s27 + $0x18] sm:$0xff] }
  0x10   : > { %v231_v9 = vpack.c.bf16 %v229_v8, %v228_v6 }
  0x12   : > { %456 = vmatmul.msk.bf16.vlgmr.msra.gmra.mxu0 %vm243_vm1, %v230_v7  ;;  %457 = vmatmul.msk.bf16.vlgmr.msra.gmra.mxu1 %vm243_vm1, %v231_v9 }
  0x13   : > { %v477_v24 = vpop.eup %476 }
  0x14   : > { %v286_v25 = vmul.f32 10.0, %v477_v24  ;;  %vm290_vm2 = vweird.f32 %v477_v24 }
  0x16   : > { %v287_v26 = vsub.f32 1.0, %v286_v25 }
  0x18   : > { %v288_v27 = vmul.f32 %v477_v24, %v287_v26 }
  0x1a   : > { %v289_v28 = vadd.f32 %v477_v24, %v288_v27 }
  0x1c   : > { %v291_v29 = vsel %vm290_vm2, %v477_v24, %v289_v28 }
  0x8f   : > { %v263_v11 = vpop.f32.mrf.mxu0  ;;  %v268_v13 = vpop.f32.mrf.mxu1 }
  0x90   : > { %v264_v12 = vadd.f32 %v473_v10, %v263_v11  ;;  %v269_v14 = vadd.f32 %v473_v10, %v268_v13 }
  0x92   : > { %v273_v15 = vsel %vm243_vm1, %v264_v12, 0.0  ;;  %v279_v16 = vsel %vm243_vm1, %v269_v14, 0.0 }
  0x93   : > { %274 = vadd.xlane.f32.xlu0 %v273_v15  ;;  %280 = vadd.xlane.f32.xlu1 %v279_v16 }
  0x97   : > { %v265_v17 = vpop.f32.mrf.mxu0  ;;  %v270_v19 = vpop.f32.mrf.mxu1 }
  0x98   : > { %v266_v18 = vadd.f32 %v473_v10, %v265_v17  ;;  %v271_v20 = vadd.f32 %v473_v10, %v270_v19  ;;  %v475_v17 = vld [vmem:[%s597_s4] ss:$0 sm:$0xff] }
  0x9a   : > { %v276_v21 = vsel %vm243_vm1, %v266_v18, 0.0  ;;  %v282_v22 = vsel %vm243_vm1, %v271_v20, 0.0 }
  0x9b   : > { %277 = vadd.xlane.f32.xlu0 %v276_v21  ;;  %283 = vadd.xlane.f32.xlu1 %v282_v22 }
 0x106   : > { %v275_v30 = vpop.xlane.xlu0 %274  ;;  %v281_v31 = vpop.xlane.xlu1 %280 }
 0x107   : > { %v292_v32 = vmul.f32 %v291_v29, %v275_v30  ;;  %v294_v33 = vmul.f32 %v291_v29, %v281_v31 }
 0x109   : > { %v296_v34 = vsub.f32 %v264_v12, %v292_v32  ;;  %v556_v35 = vsub.f32 %v269_v14, %v294_v33  ;;  %v474_v12 = vld [vmem:[%s596_s3] ss:$0 sm:$0xff] }
 0x10b   : > { %v300_v36 = vmul.f32 %v296_v34, %v296_v34  ;;  %v302_v37 = vmul.f32 %v556_v35, %v556_v35 }
 0x10d   : > { %v304_v38 = vsel %vm243_vm1, %v300_v36, 0.0  ;;  %v310_v39 = vsel %vm243_vm1, %v302_v37, 0.0 }
 0x10e   : > { %305 = vadd.xlane.f32.xlu2 %v304_v38  ;;  %v278_v40 = vpop.xlane.xlu0 %277  ;;  %v284_v41 = vpop.xlane.xlu1 %283  ;;  %311 = vadd.xlane.f32.xlu0 %v310_v39 }
 0x10f   : > { %v293_v42 = vmul.f32 %v291_v29, %v278_v40  ;;  %v295_v43 = vmul.f32 %v291_v29, %v284_v41 }
 0x111   : > { %v562_v44 = vsub.f32 %v266_v18, %v293_v42  ;;  %v564_v45 = vsub.f32 %v271_v20, %v295_v43 }
 0x113   : > { %v301_v46 = vmul.f32 %v562_v44, %v562_v44  ;;  %v303_v47 = vmul.f32 %v564_v45, %v564_v45 }
 0x115   : > { %v307_v48 = vsel %vm243_vm1, %v301_v46, 0.0  ;;  %v313_v49 = vsel %vm243_vm1, %v303_v47, 0.0 }
 0x116   : > { %308 = vadd.xlane.f32.xlu2 %v307_v48  ;;  %314 = vadd.xlane.f32.xlu1 %v313_v49 }
 0x181   : > { %v306_v50 = vpop.xlane.xlu2 %305  ;;  %v312_v52 = vpop.xlane.xlu0 %311 }
 0x182   : > { %v316_v51 = vmul.f32 %v306_v50, %v291_v29  ;;  %v318_v53 = vmul.f32 %v312_v52, %v291_v29 }
 0x184   : > { %v320_v54 = vadd.f32 1e-05, %v316_v51  ;;  %v322_v55 = vadd.f32 1e-05, %v318_v53 }
 0x186   : > { %478 = vrsqrt.f32 %v320_v54  ;;  %vm330_vm5 = vweird.f32 %v320_v54  ;;  %vm350_vm7 = vweird.f32 %v322_v55 }
 0x187   : > { %480 = vrsqrt.f32 %v322_v55 }
 0x189   : > { %v309_v56 = vpop.xlane.xlu2 %308  ;;  %v315_v57 = vpop.xlane.xlu1 %314 }
 0x18a   : > { %v317_v58 = vmul.f32 %v309_v56, %v291_v29  ;;  %v319_v59 = vmul.f32 %v315_v57, %v291_v29 }
 0x18c   : > { %v479_v60 = vpop.eup %478  ;;  %v321_v61 = vadd.f32 1e-05, %v317_v58  ;;  %v323_v0 = vadd.f32 1e-05, %v319_v59 }
 0x18d   : > { %v481_v62 = vpop.eup %480  ;;  %v325_v63 = vmul.f32 %v479_v60, %v320_v54  ;;  %vm331_vm3 = vweird.f32 %v479_v60 }
 0x18e   : > { %v345_v1 = vmul.f32 %v481_v62, %v322_v55  ;;  %482 = vrsqrt.f32 %v321_v61  ;;  %vm351_vm4 = vweird.f32 %v481_v62  ;;  %vm332_vm6 = vmor %vm330_vm5, %vm331_vm3  ;;  %vm340_vm11 = vweird.f32 %v321_v61 }
 0x18f   : > { %v326_v2 = vmul.f32 %v479_v60, %v325_v63  ;;  %484 = vrsqrt.f32 %v323_v0  ;;  %vm352_vm8 = vmor %vm350_vm7, %vm351_vm4  ;;  %vm360_vm12 = vweird.f32 %v323_v0 }
 0x190   : > { %v346_v3 = vmul.f32 %v481_v62, %v345_v1 }
 0x191   : > { %v327_v4 = vmul.f32 0.5, %v326_v2 }
 0x192   : > { %v347_v5 = vmul.f32 0.5, %v346_v3 }
 0x193   : > { %v328_v6 = vsub.f32 1.5, %v327_v4 }
 0x194   : > { %v483_v7 = vpop.eup %482  ;;  %v348_v8 = vsub.f32 1.5, %v347_v5 }
 0x195   : > { %v485_v9 = vpop.eup %484  ;;  %v329_v10 = vmul.f32 %v479_v60, %v328_v6  ;;  %v335_v11 = vmul.f32 %v483_v7, %v321_v61  ;;  %vm341_vm9 = vweird.f32 %v483_v7 }
 0x196   : > { %v349_v13 = vmul.f32 %v481_v62, %v348_v8  ;;  %v355_v14 = vmul.f32 %v485_v9, %v323_v0  ;;  %vm361_vm10 = vweird.f32 %v485_v9  ;;  %vm342_vm13 = vmor %vm340_vm11, %vm341_vm9 }
 0x197   : > { %v333_v15 = vsel %vm332_vm6, %v479_v60, %v329_v10  ;;  %v336_v16 = vmul.f32 %v483_v7, %v335_v11  ;;  %vm362_vm14 = vmor %vm360_vm12, %vm361_vm10 }
 0x198   : > { %v364_v18 = vmul.f32 %v333_v15, %v296_v34  ;;  %v353_v19 = vsel %vm352_vm8, %v481_v62, %v349_v13  ;;  %v356_v20 = vmul.f32 %v485_v9, %v355_v14 }
 0x199   : > { %v366_v21 = vmul.f32 %v353_v19, %v556_v35  ;;  %v337_v22 = vmul.f32 0.5, %v336_v16 }
 0x19a   : > { %v372_v23 = vmul.f32 %v474_v12, %v364_v18  ;;  %v357_v24 = vmul.f32 0.5, %v356_v20 }
 0x19b   : > { %v374_v25 = vmul.f32 %v474_v12, %v366_v21  ;;  %v338_v26 = vsub.f32 1.5, %v337_v22 }
 0x19c   : > { %v380_v27 = vadd.f32 %v475_v17, %v372_v23  ;;  %v358_v28 = vsub.f32 1.5, %v357_v24 }
 0x19d   : > { %v382_v29 = vadd.f32 %v475_v17, %v374_v25  ;;  %v339_v30 = vmul.f32 %v483_v7, %v338_v26 }
 0x19e   : > { %384 = vst.msk [vmem:[%s224_s11] sm:$0xff] %vm243_vm1, %v380_v27  ;;  %v359_v31 = vmul.f32 %v485_v9, %v358_v28 }
 0x19f   : > { %386 = vst.msk [vmem:[%s224_s11 + $0x10] sm:$0xff] %vm243_vm1, %v382_v29  ;;  %v343_v32 = vsel %vm342_vm13, %v483_v7, %v339_v30 }
 0x1a0   : > { %v363_v33 = vsel %vm362_vm14, %v485_v9, %v359_v31  ;;  %v365_v34 = vmul.f32 %v343_v32, %v562_v44 }
 0x1a1   : > { %v367_v35 = vmul.f32 %v363_v33, %v564_v45 }
 0x1a2   : > { %v373_v36 = vmul.f32 %v474_v12, %v365_v34 }
 0x1a3   : > { %v375_v37 = vmul.f32 %v474_v12, %v367_v35 }
 0x1a4   : > { %v381_v38 = vadd.f32 %v475_v17, %v373_v36 }
 0x1a5   : > { %v383_v39 = vadd.f32 %v475_v17, %v375_v37 }
 0x1a6   : > { %385 = vst.msk [vmem:[%s224_s11 + $0x8] sm:$0xff] %vm243_vm1, %v381_v38 }
 0x1a7   : > { %387 = vst.msk [vmem:[%s224_s11 + $0x18] sm:$0xff] %vm243_vm1, %v383_v39 }
 0x1a8 PF: > { %s15_s18 = sadd.s32 1, %s492_s18  }
 0x1a9   : > { %p12_p4 = scmp.ge.s32.totalorder %s15_s18, 4  }
 0x1ab   :  { %14 = sbr.rel (!%p12_p4) target bundleno = 1 (0x1), region = 70 }

// kernel: enformer_forward.19
= control target key start
LH: loop header
LB: loop body
LE: loop exit
PB: predicated region body
PF: predicated region fallthrough
CT: control target
= control target key end

     0   :  { %s426_s12 = smov 0   ;;  %s471_s0 = inlined_call_operand.vmem [shape: f32[2,12,32], index: 0, kind: input, shape index: {}]   ;;  %s472_s1 = inlined_call_operand.vmem [shape: bf16[96,64], index: 1, kind: input, shape index: {}]   ;;  %s473_s2 = inlined_call_operand.vmem [shape: f32[1,64], index: 2, kind: input, shape index: {}]   ;;  %s474_s3 = inlined_call_operand.vmem [shape: f32[2,10,64], index: 3, kind: output, shape index: {}]  }
   0x1 LB: > { %s331_s13 = sadd.s32 4294967295, %s402_s12   ;;  %p335_p0 = scmp.ge.s32.totalorder %s402_s12, 1  ;;  %s402_s12 = sphi %s426_s12, %s13_s12  }
   0x2   : > { %p137_p1 = scmp.lt.s32.totalorder %s402_s12, 3 }
   0x4   : > { %p138_p2 = pnand %p335_p0, %p137_p1 }
   0x5   : > { %p161_p3 = scmp.lt.s32.totalorder (!%p138_p2), %s331_s13, 1  ;;  %s404_s24 = smov (!%p138_p2), 32  }
   0x6   : > { %141 = sbr.rel (%p138_p2) target bundleno = 284 (0x11c), region = 32  ;;  %s405_s25 = smov (!%p138_p2), 64  }
   0xb   : > { %v374_v0 = vld [vmem:[%s472_s1 + $0x28] sm:$0xff]  ;;  %s476_s13 = smov (!%p161_p3, %s331_s13), 1  ;;  %v373_v1 = vld [vmem:[%s472_s1 + $0x20] sm:$0xff]  ;;  %v372_v4 = vld [vmem:[%s472_s1 + $0x18] sm:$0xff]  ;;  %vm194_vm0 = vcmask 261120   ;;  %vm197_vm1 = vcmask 523264  }
   0xc   : > { %259 = vmatpush.bf16.msra.mxu0 %v374_v0  ;;  %s367_s18 = sshll.u32 %s476_s13, 4  ;;  %v371_v9 = vld [vmem:[%s472_s1 + $0x10] sm:$0xff]  ;;  %v370_v10 = vld [vmem:[%s472_s1 + $0x8] sm:$0xff]  ;;  %v369_v11 = vld [vmem:[%s472_s1] sm:$0xff]  ;;  %vm253_vm2 = vcmask 785408   ;;  %vm274_vm3 = vcmask 517120  }
   0xd   : > { %s165_s21 = scalar_lea.vmem %s471_s0, %s367_s18  ;;  %v395_v25 = vld [vmem:[%s473_s2] ss:$0 sm:$0xff]  ;;  %s170_s9 = scalar_lea.vmem %s474_s3, %s367_s18 }
   0xe   : > { %v174_v2 = vld [vmem:[%s165_s21 + $0x1] sm:$0xff]  ;;  %v175_v3 = vld [vmem:[%s165_s21 + $0x9] sm:$0x3] }
   0xf   : > { %v385_v5 = vpack.i.bf16 %v175_v3, %v174_v2  ;;  %v176_v6 = vld [vmem:[%s165_s21 + $0x2] sm:$0xff]  ;;  %v177_v7 = vld [vmem:[%s165_s21 + $0xa] sm:$0x3] }
  0x10   : > { %260 = vmatpush.bf16.msra.mxu0 %v373_v1  ;;  %v390_v8 = vpack.i.bf16 %v177_v7, %v176_v6  ;;  %v172_v15 = vld [vmem:[%s165_s21] sm:$0xff]  ;;  %v173_v16 = vld [vmem:[%s165_s21 + $0x8] sm:$0x3] }
  0x11   : > { %386 = vrot.lane.b32.xlu0 %v385_v5, %s404_s24 }
  0x14   : > { %261 = vmatpush.bf16.msra.mxu0 %v372_v4 }
  0x18   : > { %262 = vmatpush.bf16.msra.mxu0 %v371_v9 }
  0x19   : > { %391 = vrot.lane.b32.xlu0 %v390_v8, %s405_s25 }
  0x1c   : > { %263 = vmatpush.bf16.msra.mxu0 %v370_v10 }
  0x20   : > { %264 = vmatpush.bf16.msra.mxu0 %v369_v11 }
  0x83   : > { %v387_v12 = vpop.permute.xlu0 %386 }
  0x84   : > { %v389_v13 = vunpack.i.h.bf16 %v387_v12  ;;  %v388_v14 = vunpack.i.l.bf16 %v387_v12 }
  0x86   : > { %v195_v20 = vsel %vm194_vm0, %v172_v15, %v388_v14  ;;  %v196_v21 = vsel %vm194_vm0, %v173_v16, %v389_v13 }
  0x8b   : > { %v392_v17 = vpop.permute.xlu0 %391 }
  0x8c   : > { %v394_v18 = vunpack.i.h.bf16 %v392_v17  ;;  %v393_v19 = vunpack.i.l.bf16 %v392_v17 }
  0x8e   : > { %v198_v22 = vsel %vm197_vm1, %v195_v20, %v393_v19  ;;  %v199_v23 = vsel %vm197_vm1, %v196_v21, %v394_v18 }
  0x8f   : > { %v200_v24 = vpack.c.bf16 %v199_v23, %v198_v22 }
  0x91   : > { %364 = vmatmul.msk.bf16.vlgmr.msra.gmra.mxu0 %vm253_vm2, %v200_v24 }
 0x10e   : > { %v266_v26 = vpop.f32.mrf.mxu0 }
 0x10f   : > { %v267_v27 = vadd.f32 %v395_v25, %v266_v26 }
 0x111   : > { %v271_v28 = vmax.f32 %v267_v27, 0.0 }
 0x113   : > { %273 = vst.msk [vmem:[%s170_s9] sm:$0xff] %vm197_vm1, %v271_v28 }
 0x116   : > { %v268_v29 = vpop.f32.mrf.mxu0 }
 0x117   : > { %v269_v30 = vadd.f32 %v395_v25, %v268_v29 }
 0x119   : > { %v272_v31 = vmax.f32 %v269_v30, 0.0 }
 0x11b   : > { %275 = vst.msk [vmem:[%s170_s9 + $0x8] sm:$0x3] %vm274_vm3, %v272_v31 }
 0x11c PF: > { %s13_s12 = sadd.s32 1, %s402_s12  }
 0x11d   : > { %p10_p4 = scmp.ge.s32.totalorder %s13_s12, 4  }
 0x11f   :  { %12 = sbr.rel (!%p10_p4) target bundleno = 1 (0x1), region = 62 }

// kernel: enformer_forward.17
= control target key start
LH: loop header
LB: loop body
LE: loop exit
PB: predicated region body
PF: predicated region fallthrough
CT: control target
= control target key end

     0   :  { %vm4761_vm0 = vcmask 15360   ;;  %vm4764_vm1 = vcmask 261120   ;;  %s4743_s1 = inlined_call_operand.vmem [shape: f32[10,32,2], index: 1, kind: input, shape index: {}]   ;;  %s4744_s0 = inlined_call_operand.vmem [shape: f32[10,32,2], index: 0, kind: input, shape index: {}]   ;;  %s4745_s2 = inlined_call_operand.vmem [shape: f32[10,32,2], index: 2, kind: input, shape index: {}]   ;;  %s4746_s3 = inlined_call_operand.vmem [shape: f32[10,32,2], index: 3, kind: output, shape index: {}]  }
   0x1   :  { %v97_v0 = vld [vmem:[%s4743_s1 + $0x10] sm:$0xff]  ;;  %v98_v1 = vld [vmem:[%s4743_s1 + $0x18] sm:$0xff]  ;;  %v95_v14 = vld [vmem:[%s4743_s1] sm:$0xff] }
   0x2   :  { %v101_v2 = vld [vmem:[%s4743_s1 + $0x30] sm:$0xff]  ;;  %v137_v3 = vpack.c.bf16 %v97_v0, %v97_v0  ;;  %v138_v4 = vpack.c.bf16 %v98_v1, %v98_v1  ;;  %v102_v5 = vld [vmem:[%s4743_s1 + $0x38] sm:$0xff]  ;;  %v96_v19 = vld [vmem:[%s4743_s1 + $0x8] sm:$0xff]  ;;  %v135_v28 = vpack.c.bf16 %v95_v14, %v95_v14 }
   0x3   :  { %v141_v6 = vpack.c.bf16 %v101_v2, %v101_v2  ;;  %v105_v7 = vld [vmem:[%s4743_s1 + $0x50] sm:$0xff]  ;;  %v106_v8 = vld [vmem:[%s4743_s1 + $0x58] sm:$0xff]  ;;  %v142_v9 = vpack.c.bf16 %v102_v5, %v102_v5  ;;  %v99_v20 = vld [vmem:[%s4743_s1 + $0x20] sm:$0xff]  ;;  %v136_v29 = vpack.c.bf16 %v96_v19, %v96_v19 }
   0x4   :  { %v145_v10 = vpack.c.bf16 %v105_v7, %v105_v7  ;;  %v146_v11 = vpack.c.bf16 %v106_v8, %v106_v8  ;;  %v109_v12 = vld [vmem:[%s4743_s1 + $0x70] sm:$0xff]  ;;  %v110_v13 = vld [vmem:[%s4743_s1 + $0x78] sm:$0xff]  ;;  %v191_v15 = vunpack.c.l.b16 %v137_v3  ;;  %v192_v16 = vunpack.c.l.b16 %v138_v4  ;;  %v100_v25 = vld [vmem:[%s4743_s1 + $0x28] sm:$0xff] }
   0x5   :  { %v243_v17 = vunpack.c.l.b16 %v141_v6  ;;  %v149_v18 = vpack.c.bf16 %v109_v12, %v109_v12  ;;  %v244_v21 = vunpack.c.l.b16 %v142_v9  ;;  %v150_v24 = vpack.c.bf16 %v110_v13, %v110_v13  ;;  %v103_v34 = vld [vmem:[%s4743_s1 + $0x40] sm:$0xff]  ;;  %v104_v35 = vld [vmem:[%s4743_s1 + $0x48] sm:$0xff] }
   0x6   :  { %v294_v22 = vunpack.c.l.b16 %v145_v10  ;;  %v295_v23 = vunpack.c.l.b16 %v146_v11  ;;  %v194_v26 = vpack.c.b16 %v192_v16, %v191_v15  ;;  %v139_v33 = vpack.c.bf16 %v99_v20, %v99_v20  ;;  %v107_v40 = vld [vmem:[%s4743_s1 + $0x60] sm:$0xff]  ;;  %v108_v41 = vld [vmem:[%s4743_s1 + $0x68] sm:$0xff] }
   0x7   :  { %v345_v27 = vunpack.c.l.b16 %v149_v18  ;;  %v246_v30 = vpack.c.b16 %v244_v21, %v243_v17  ;;  %v346_v32 = vunpack.c.l.b16 %v150_v24  ;;  %v189_v37 = vunpack.c.l.b16 %v135_v28  ;;  %v15_v42 = vld [vmem:[%s4744_s0] sm:$0xff]  ;;  %v16_v51 = vld [vmem:[%s4744_s0 + $0x8] sm:$0xff]  ;;  %v17_v17 = vld [vmem:[%s4744_s0 + $0x10] sm:$0xff] }
   0x8   :  { %v297_v31 = vpack.c.b16 %v295_v23, %v294_v22  ;;  %v206_v36 = vsel %vm4761_vm0, %v194_v26, 0  ;;  %v190_v38 = vunpack.c.l.b16 %v136_v29  ;;  %v140_v39 = vpack.c.bf16 %v100_v25, %v100_v25  ;;  %v19_v56 = vld [vmem:[%s4744_s0 + $0x20] sm:$0xff]  ;;  %v20_v57 = vld [vmem:[%s4744_s0 + $0x28] sm:$0xff]  ;;  %v18_v22 = vld [vmem:[%s4744_s0 + $0x18] sm:$0xff] }
   0x9   :  { %214 = vmatpush.bf16.xpose.msra.mxu0 %v206_v36  ;;  %v257_v43 = vsel %vm4761_vm0, %v246_v30, 0  ;;  %v348_v45 = vpack.c.b16 %v346_v32, %v345_v27  ;;  %v241_v46 = vunpack.c.l.b16 %v139_v33  ;;  %v143_v49 = vpack.c.bf16 %v103_v34, %v103_v34  ;;  %v23_v62 = vld [vmem:[%s4744_s0 + $0x40] sm:$0xff]  ;;  %v24_v63 = vld [vmem:[%s4744_s0 + $0x48] sm:$0xff]  ;;  %v113_v23 = vld [vmem:[%s4743_s1 + $0x90] sm:$0xff] }
   0xa   :  { %v308_v44 = vsel %vm4761_vm0, %v297_v31, 0  ;;  %265 = vmatpush.bf16.xpose.msra.mxu1 %v257_v43  ;;  %v193_v47 = vpack.c.b16 %v190_v38, %v189_v37  ;;  %v242_v48 = vunpack.c.l.b16 %v140_v39  ;;  %v144_v50 = vpack.c.bf16 %v104_v35, %v104_v35  ;;  %v27_v4 = vld [vmem:[%s4744_s0 + $0x60] sm:$0xff]  ;;  %v28_v13 = vld [vmem:[%s4744_s0 + $0x68] sm:$0xff]  ;;  %v114_v24 = vld [vmem:[%s4743_s1 + $0x98] sm:$0xff] }
   0xb   :  { %316 = vmatpush.bf16.xpose.msra.mxu2 %v308_v44  ;;  %v359_v52 = vsel %vm4761_vm0, %v348_v45, 0  ;;  %v147_v53 = vpack.c.bf16 %v107_v40, %v107_v40  ;;  %v148_v54 = vpack.c.bf16 %v108_v41, %v108_v41  ;;  %v55_v55 = vpack.c.bf16 %v15_v42, %v15_v42  ;;  %v21_v26 = vld [vmem:[%s4744_s0 + $0x30] sm:$0xff]  ;;  %v2599_v32 = vld [vmem:[%s4744_s0 + $0x38] sm:$0xff] }
   0xc   :  { %367 = vmatpush.bf16.xpose.msra.mxu3 %v359_v52  ;;  %v203_v58 = vsel %vm4761_vm0, %v193_v47, 0  ;;  %v245_v59 = vpack.c.b16 %v242_v48, %v241_v46  ;;  %v292_v60 = vunpack.c.l.b16 %v143_v49  ;;  %v293_v61 = vunpack.c.l.b16 %v144_v50  ;;  %v121_v38 = vld [vmem:[%s4743_s1 + $0xd0] sm:$0xff]  ;;  %v122_v41 = vld [vmem:[%s4743_s1 + $0xd8] sm:$0xff] }
   0xd   :  { %v343_v0 = vunpack.c.l.b16 %v147_v53  ;;  %v344_v1 = vunpack.c.l.b16 %v148_v54  ;;  %v56_v2 = vpack.c.bf16 %v16_v51, %v16_v51  ;;  %v179_v3 = vunpack.c.l.b16 %v55_v55  ;;  %v117_v42 = vld [vmem:[%s4743_s1 + $0xb0] sm:$0xff]  ;;  %v118_v43 = vld [vmem:[%s4743_s1 + $0xb8] sm:$0xff]  ;;  %v111_v53 = vld [vmem:[%s4743_s1 + $0x80] sm:$0xff] }
   0xe   :  { %v254_v5 = vsel %vm4761_vm0, %v245_v59, 0  ;;  %v296_v6 = vpack.c.b16 %v293_v61, %v292_v60  ;;  %v59_v7 = vpack.c.bf16 %v19_v56, %v19_v56  ;;  %v60_v8 = vpack.c.bf16 %v20_v57, %v20_v57  ;;  %v25_v46 = vld [vmem:[%s4744_s0 + $0x50] sm:$0xff]  ;;  %v26_v47 = vld [vmem:[%s4744_s0 + $0x58] sm:$0xff] }
   0xf   :  { %v347_v9 = vpack.c.b16 %v344_v1, %v343_v0  ;;  %v180_v10 = vunpack.c.l.b16 %v56_v2  ;;  %v63_v11 = vpack.c.bf16 %v23_v62, %v23_v62  ;;  %v64_v12 = vpack.c.bf16 %v24_v63, %v24_v63  ;;  %v29_v51 = vld [vmem:[%s4744_s0 + $0x70] sm:$0xff]  ;;  %v126_v60 = vld [vmem:[%s4743_s1 + $0xf8] sm:$0xff]  ;;  %v119_v1 = vld [vmem:[%s4743_s1 + $0xc0] sm:$0xff] }
  0x10   :  { %v305_v14 = vsel %vm4761_vm0, %v296_v6, 0  ;;  %v231_v15 = vunpack.c.l.b16 %v59_v7  ;;  %v67_v16 = vpack.c.bf16 %v27_v4, %v27_v4  ;;  %v232_v19 = vunpack.c.l.b16 %v60_v8  ;;  %v125_v59 = vld [vmem:[%s4743_s1 + $0xf0] sm:$0xff]  ;;  %v120_v6 = vld [vmem:[%s4743_s1 + $0xc8] sm:$0xff]  ;;  %v30_v7 = vld [vmem:[%s4744_s0 + $0x78] sm:$0xff] }
  0x11   :  { %215 = vmatpush.bf16.xpose.msra.mxu0 %v203_v58  ;;  %v356_v18 = vsel %vm4761_vm0, %v347_v9, 0  ;;  %v282_v20 = vunpack.c.l.b16 %v63_v11  ;;  %v283_v21 = vunpack.c.l.b16 %v64_v12  ;;  %v68_v25 = vpack.c.bf16 %v28_v13, %v28_v13  ;;  %v112_v58 = vld [vmem:[%s4743_s1 + $0x88] sm:$0xff] }
  0x12   :  { %266 = vmatpush.bf16.xpose.msra.mxu1 %v254_v5  ;;  %v183_v27 = vpack.c.b16 %v180_v10, %v179_v3  ;;  %v333_v28 = vunpack.c.l.b16 %v67_v16  ;;  %v57_v29 = vpack.c.bf16 %v17_v17, %v17_v17  ;;  %v58_v31 = vpack.c.bf16 %v18_v22, %v18_v22 }
  0x13   :  { %317 = vmatpush.bf16.xpose.msra.mxu2 %v305_v14  ;;  %v334_v30 = vunpack.c.l.b16 %v68_v25  ;;  %v153_v33 = vpack.c.bf16 %v113_v23, %v113_v23  ;;  %v154_v34 = vpack.c.bf16 %v114_v24, %v114_v24  ;;  %v235_v35 = vpack.c.b16 %v232_v19, %v231_v15 }
  0x14   :  { %368 = vmatpush.bf16.xpose.msra.mxu3 %v356_v18  ;;  %v286_v36 = vpack.c.b16 %v283_v21, %v282_v20  ;;  %v61_v37 = vpack.c.bf16 %v21_v26, %v21_v26  ;;  %v62_v45 = vpack.c.bf16 %v2599_v32, %v2599_v32  ;;  %v2622_v48 = vunpack.c.l.b16 %v57_v29  ;;  %v115_v20 = vld [vmem:[%s4743_s1 + $0xa0] sm:$0xff]  ;;  %v116_v21 = vld [vmem:[%s4743_s1 + $0xa8] sm:$0xff] }
  0x15   :  { %v396_v39 = vunpack.c.l.b16 %v153_v33  ;;  %v397_v40 = vunpack.c.l.b16 %v154_v34  ;;  %v337_v44 = vpack.c.b16 %v334_v30, %v333_v28  ;;  %v2624_v49 = vunpack.c.l.b16 %v58_v31  ;;  %v123_v34 = vld [vmem:[%s4743_s1 + $0xe0] sm:$0xff] }
  0x16   :  { %v161_v52 = vpack.c.bf16 %v121_v38, %v121_v38  ;;  %v2634_v54 = vunpack.c.l.b16 %v61_v37  ;;  %v162_v55 = vpack.c.bf16 %v122_v41, %v122_v41  ;;  %v157_v56 = vpack.c.bf16 %v117_v42, %v117_v42 }
  0x17   :  { %v399_v50 = vpack.c.b16 %v397_v40, %v396_v39  ;;  %v158_v57 = vpack.c.bf16 %v118_v43, %v118_v43  ;;  %v65_v62 = vpack.c.bf16 %v25_v46, %v25_v46  ;;  %v66_v63 = vpack.c.bf16 %v26_v47, %v26_v47 }
  0x18   :  { %2281 = vmatmul.msk.bf16.vlgmr.msra.gmra.mxu0 %vm4761_vm0, %v183_v27  ;;  %v498_v0 = vunpack.c.l.b16 %v161_v52  ;;  %v499_v2 = vunpack.c.l.b16 %v162_v55  ;;  %v447_v3 = vunpack.c.l.b16 %v157_v56  ;;  %v151_v5 = vpack.c.bf16 %v111_v53, %v111_v53  ;;  %v129_v55 = vld [vmem:[%s4743_s1 + $0x110] sm:$0xff] }
  0x19   :  { %2283 = vmatmul.msk.bf16.vlgmr.msra.gmra.mxu1 %vm4761_vm0, %v235_v35  ;;  %v410_v61 = vsel %vm4761_vm0, %v399_v50, 0  ;;  %v448_v4 = vunpack.c.l.b16 %v158_v57  ;;  %v69_v8 = vpack.c.bf16 %v29_v51, %v29_v51  ;;  %v152_v9 = vpack.c.bf16 %v112_v58, %v112_v58  ;;  %v124_v35 = vld [vmem:[%s4743_s1 + $0xe8] sm:$0xff] }
  0x1a   :  { %2285 = vmatmul.msk.bf16.vlgmr.msra.gmra.mxu2 %vm4761_vm0, %v286_v36  ;;  %418 = vmatpush.bf16.xpose.msrb.mxu0 %v410_v61  ;;  %v165_v10 = vpack.c.bf16 %v125_v59, %v125_v59  ;;  %v166_v11 = vpack.c.bf16 %v126_v60, %v126_v60  ;;  %v501_v12 = vpack.c.b16 %v499_v2, %v498_v0  ;;  %v394_v14 = vunpack.c.l.b16 %v151_v5  ;;  %v39_v59 = vld [vmem:[%s4744_s0 + $0xc0] sm:$0xff]  ;;  %v36_v2 = vld [vmem:[%s4744_s0 + $0xa8] sm:$0xff] }
  0x1b   :  { %2287 = vmatmul.msk.bf16.vlgmr.msra.gmra.mxu3 %vm4761_vm0, %v337_v44  ;;  %v450_v13 = vpack.c.b16 %v448_v4, %v447_v3  ;;  %v159_v15 = vpack.c.bf16 %v119_v1, %v119_v1  ;;  %v395_v16 = vunpack.c.l.b16 %v152_v9  ;;  %v160_v19 = vpack.c.bf16 %v120_v6, %v120_v6  ;;  %v127_v61 = vld [vmem:[%s4743_s1 + $0x100] sm:$0xff] }
  0x1c   :  { %v549_v17 = vunpack.c.l.b16 %v165_v10  ;;  %v550_v18 = vunpack.c.l.b16 %v166_v11  ;;  %v70_v22 = vpack.c.bf16 %v30_v7, %v30_v7  ;;  %v512_v23 = vsel %vm4761_vm0, %v501_v12, 0  ;;  %v35_v1 = vld [vmem:[%s4744_s0 + $0xa0] sm:$0xff] }
  0x1d   :  { %v461_v24 = vsel %vm4761_vm0, %v450_v13, 0  ;;  %v496_v25 = vunpack.c.l.b16 %v159_v15  ;;  %v234_v26 = vunpack.c.l.b16 %v62_v45  ;;  %520 = vmatpush.bf16.xpose.msrb.mxu2 %v512_v23  ;;  %v398_v27 = vpack.c.b16 %v395_v16, %v394_v14  ;;  %v43_v7 = vld [vmem:[%s4744_s0 + $0xe0] sm:$0xff] }
  0x1e   :  { %469 = vmatpush.bf16.xpose.msrb.mxu1 %v461_v24  ;;  %v552_v28 = vpack.c.b16 %v550_v18, %v549_v17  ;;  %v497_v29 = vunpack.c.l.b16 %v160_v19  ;;  %v284_v30 = vunpack.c.l.b16 %v65_v62  ;;  %v285_v31 = vunpack.c.l.b16 %v66_v63  ;;  %v128_v62 = vld [vmem:[%s4743_s1 + $0x108] sm:$0xff] }
  0x1f   :  { %v155_v32 = vpack.c.bf16 %v115_v20, %v115_v20  ;;  %v156_v33 = vpack.c.bf16 %v116_v21, %v116_v21  ;;  %v407_v36 = vsel %vm4761_vm0, %v398_v27, 0  ;;  %v335_v39 = vunpack.c.l.b16 %v69_v8  ;;  %v40_v63 = vld [vmem:[%s4744_s0 + $0xc8] sm:$0xff] }
  0x20   :  { %v563_v37 = vsel %vm4761_vm0, %v552_v28, 0  ;;  %v500_v38 = vpack.c.b16 %v497_v29, %v496_v25  ;;  %v336_v40 = vunpack.c.l.b16 %v70_v22  ;;  %v184_v43 = vpack.c.b16 %v2624_v49, %v2622_v48  ;;  %v130_v48 = vld [vmem:[%s4743_s1 + $0x118] sm:$0xff]  ;;  %v31_v49 = vld [vmem:[%s4744_s0 + $0x80] sm:$0xff]  ;;  %v44_v8 = vld [vmem:[%s4744_s0 + $0xe8] sm:$0xff] }
  0x21   :  { %571 = vmatpush.bf16.xpose.msrb.mxu3 %v563_v37  ;;  %v445_v41 = vunpack.c.l.b16 %v155_v32  ;;  %v446_v42 = vunpack.c.l.b16 %v156_v33  ;;  %v163_v44 = vpack.c.bf16 %v123_v34, %v123_v34  ;;  %v164_v45 = vpack.c.bf16 %v124_v35, %v124_v35  ;;  %v133_v32 = vld [vmem:[%s4743_s1 + $0x130] sm:$0xff]  ;;  %v134_v33 = vld [vmem:[%s4743_s1 + $0x138] sm:$0xff] }
  0x22   :  { %419 = vmatpush.bf16.xpose.msrb.mxu0 %v407_v36  ;;  %v236_v46 = vpack.c.b16 %v234_v26, %v2634_v54  ;;  %v287_v47 = vpack.c.b16 %v285_v31, %v284_v30  ;;  %v509_v50 = vsel %vm4761_vm0, %v500_v38, 0  ;;  %v338_v56 = vpack.c.b16 %v336_v40, %v335_v39  ;;  %v32_v54 = vld [vmem:[%s4744_s0 + $0x88] sm:$0xff] }
  0x23   :  { %v449_v51 = vpack.c.b16 %v446_v42, %v445_v41  ;;  %v547_v52 = vunpack.c.l.b16 %v163_v44  ;;  %v548_v53 = vunpack.c.l.b16 %v164_v45  ;;  %v169_v60 = vpack.c.bf16 %v129_v55, %v129_v55  ;;  %v131_v42 = vld [vmem:[%s4743_s1 + $0x120] sm:$0xff]  ;;  %v33_v44 = vld [vmem:[%s4744_s0 + $0x90] sm:$0xff]  ;;  %v34_v45 = vld [vmem:[%s4744_s0 + $0x98] sm:$0xff] }
  0x24   :  { %v170_v3 = vpack.c.bf16 %v130_v48, %v130_v48  ;;  %v71_v4 = vpack.c.bf16 %v31_v49, %v31_v49  ;;  %v72_v6 = vpack.c.bf16 %v32_v54, %v32_v54  ;;  %v167_v10 = vpack.c.bf16 %v127_v61, %v127_v61  ;;  %v42_v55 = vld [vmem:[%s4744_s0 + $0xd8] sm:$0xff] }
  0x25   :  { %v458_v57 = vsel %vm4761_vm0, %v449_v51, 0  ;;  %521 = vmatpush.bf16.xpose.msrb.mxu2 %v509_v50  ;;  %v551_v58 = vpack.c.b16 %v548_v53, %v547_v52  ;;  %v600_v5 = vunpack.c.l.b16 %v169_v60  ;;  %v168_v11 = vpack.c.bf16 %v128_v62, %v128_v62  ;;  %v38_v52 = vld [vmem:[%s4744_s0 + $0xb8] sm:$0xff]  ;;  %v41_v53 = vld [vmem:[%s4744_s0 + $0xd0] sm:$0xff] }
  0x26   :  { %470 = vmatpush.bf16.xpose.msrb.mxu1 %v458_v57  ;;  %v601_v9 = vunpack.c.l.b16 %v170_v3  ;;  %v79_v12 = vpack.c.bf16 %v39_v59, %v39_v59  ;;  %v80_v13 = vpack.c.bf16 %v40_v63, %v40_v63  ;;  %v75_v14 = vpack.c.bf16 %v35_v1, %v35_v1  ;;  %v45_v59 = vld [vmem:[%s4744_s0 + $0xf0] sm:$0xff]  ;;  %v46_v60 = vld [vmem:[%s4744_s0 + $0xf8] sm:$0xff] }
  0x27   :  { %v560_v0 = vsel %vm4761_vm0, %v551_v58, 0  ;;  %v76_v15 = vpack.c.bf16 %v36_v2, %v36_v2  ;;  %v83_v17 = vpack.c.bf16 %v43_v7, %v43_v7  ;;  %v84_v18 = vpack.c.bf16 %v44_v8, %v44_v8 }
  0x28   :  { %2282 = vmatmul.msk.bf16.gmra.mxu0 %vm4761_vm0, %v184_v43  ;;  %v603_v16 = vpack.c.b16 %v601_v9, %v600_v5  ;;  %v598_v19 = vunpack.c.l.b16 %v167_v10  ;;  %v599_v20 = vunpack.c.l.b16 %v168_v11  ;;  %v384_v21 = vunpack.c.l.b16 %v71_v4  ;;  %v132_v43 = vld [vmem:[%s4743_s1 + $0x128] sm:$0xff] }
  0x29   :  { %2284 = vmatmul.msk.bf16.gmra.mxu1 %vm4761_vm0, %v236_v46  ;;  %572 = vmatpush.bf16.xpose.msrb.mxu3 %v560_v0  ;;  %v385_v22 = vunpack.c.l.b16 %v72_v6  ;;  %v486_v24 = vunpack.c.l.b16 %v79_v12  ;;  %v487_v25 = vunpack.c.l.b16 %v80_v13  ;;  %v435_v26 = vunpack.c.l.b16 %v75_v14  ;;  %v37_v46 = vld [vmem:[%s4744_s0 + $0xb0] sm:$0xff] }
  0x2a   :  { %2286 = vmatmul.msk.bf16.gmra.mxu2 %vm4761_vm0, %v287_v47  ;;  %v614_v23 = vsel %vm4761_vm0, %v603_v16, 0  ;;  %v436_v27 = vunpack.c.l.b16 %v76_v15  ;;  %v537_v28 = vunpack.c.l.b16 %v83_v17  ;;  %v538_v29 = vunpack.c.l.b16 %v84_v18  ;;  %v47_v16 = vld [vmem:[%s4744_s0 + $0x100] sm:$0xff]  ;;  %v48_v17 = vld [vmem:[%s4744_s0 + $0x108] sm:$0xff] }
  0x2b   :  { %2288 = vmatmul.msk.bf16.gmra.mxu3 %vm4761_vm0, %v338_v56  ;;  %622 = vmatpush.bf16.xpose.msra.mxu0 %v614_v23  ;;  %v602_v30 = vpack.c.b16 %v599_v20, %v598_v19  ;;  %v388_v31 = vpack.c.b16 %v385_v22, %v384_v21  ;;  %v490_v34 = vpack.c.b16 %v487_v25, %v486_v24  ;;  %v51_v18 = vld [vmem:[%s4744_s0 + $0x120] sm:$0xff]  ;;  %v52_v19 = vld [vmem:[%s4744_s0 + $0x128] sm:$0xff] }
  0x2c   :  { %v439_v35 = vpack.c.b16 %v436_v27, %v435_v26  ;;  %v173_v36 = vpack.c.bf16 %v133_v32, %v133_v32  ;;  %v174_v37 = vpack.c.bf16 %v134_v33, %v134_v33  ;;  %v541_v38 = vpack.c.b16 %v538_v29, %v537_v28  ;;  %v53_v32 = vld [vmem:[%s4744_s0 + $0x130] sm:$0xff]  ;;  %v54_v33 = vld [vmem:[%s4744_s0 + $0x138] sm:$0xff] }
  0x2d   :  { %v611_v39 = vsel %vm4761_vm0, %v602_v30, 0  ;;  %v171_v50 = vpack.c.bf16 %v131_v42, %v131_v42  ;;  %v172_v51 = vpack.c.bf16 %v132_v43, %v132_v43  ;;  %v73_v49 = vpack.c.bf16 %v33_v44, %v33_v44  ;;  %v49_v30 = vld [vmem:[%s4744_s0 + $0x110] sm:$0xff] }
  0x2e   :  { %v651_v40 = vunpack.c.l.b16 %v173_v36  ;;  %v652_v41 = vunpack.c.l.b16 %v174_v37  ;;  %v74_v54 = vpack.c.bf16 %v34_v45, %v34_v45  ;;  %v77_v58 = vpack.c.bf16 %v37_v46, %v37_v46 }
  0x2f   :  { %v649_v57 = vunpack.c.l.b16 %v171_v50  ;;  %v650_v48 = vunpack.c.l.b16 %v172_v51  ;;  %v78_v61 = vpack.c.bf16 %v38_v52, %v38_v52  ;;  %v81_v62 = vpack.c.bf16 %v41_v53, %v41_v53 }
  0x30   :  { %v654_v47 = vpack.c.b16 %v652_v41, %v651_v40  ;;  %v82_v63 = vpack.c.bf16 %v42_v55, %v42_v55  ;;  %v85_v1 = vpack.c.bf16 %v45_v59, %v45_v59  ;;  %v86_v2 = vpack.c.bf16 %v46_v60, %v46_v60 }
  0x31   :  { %v653_v0 = vpack.c.b16 %v650_v48, %v649_v57  ;;  %v386_v3 = vunpack.c.l.b16 %v73_v49  ;;  %v387_v4 = vunpack.c.l.b16 %v74_v54  ;;  %v437_v5 = vunpack.c.l.b16 %v77_v58 }
  0x32   :  { %v665_v56 = vsel %vm4761_vm0, %v654_v47, 0  ;;  %v438_v6 = vunpack.c.l.b16 %v78_v61  ;;  %v488_v7 = vunpack.c.l.b16 %v81_v62  ;;  %v489_v8 = vunpack.c.l.b16 %v82_v63 }
  0x33   :  { %623 = vmatpush.bf16.xpose.msra.mxu0 %v611_v39  ;;  %673 = vmatpush.bf16.xpose.msra.mxu1 %v665_v56  ;;  %v662_v9 = vsel %vm4761_vm0, %v653_v0, 0  ;;  %v539_v10 = vunpack.c.l.b16 %v85_v1  ;;  %v540_v11 = vunpack.c.l.b16 %v86_v2  ;;  %v389_v12 = vpack.c.b16 %v387_v4, %v386_v3 }
  0x34   :  { %v440_v13 = vpack.c.b16 %v438_v6, %v437_v5  ;;  %v491_v14 = vpack.c.b16 %v489_v8, %v488_v7  ;;  %v87_v20 = vpack.c.bf16 %v47_v16, %v47_v16  ;;  %v88_v21 = vpack.c.bf16 %v48_v17, %v48_v17 }
  0x35   :  { %v542_v15 = vpack.c.b16 %v540_v11, %v539_v10  ;;  %v91_v22 = vpack.c.bf16 %v51_v18, %v51_v18  ;;  %v92_v23 = vpack.c.bf16 %v52_v19, %v52_v19  ;;  %v93_v36 = vpack.c.bf16 %v53_v32, %v53_v32 }
  0x36   :  { %v588_v24 = vunpack.c.l.b16 %v87_v20  ;;  %v589_v25 = vunpack.c.l.b16 %v88_v21  ;;  %v94_v37 = vpack.c.bf16 %v54_v33, %v54_v33 }
  0x37   :  { %v639_v26 = vunpack.c.l.b16 %v91_v22  ;;  %v640_v27 = vunpack.c.l.b16 %v92_v23  ;;  %v641_v40 = vunpack.c.l.b16 %v93_v36 }
  0x38   :  { %2289 = vmatmul.msk.bf16.vlgmr.msrb.gmra.mxu0 %vm4761_vm0, %v388_v31  ;;  %v592_v28 = vpack.c.b16 %v589_v25, %v588_v24  ;;  %v50_v31 = vld [vmem:[%s4744_s0 + $0x118] sm:$0xff]  ;;  %v642_v41 = vunpack.c.l.b16 %v94_v37 }
  0x39   :  { %2291 = vmatmul.msk.bf16.vlgmr.msrb.gmra.mxu1 %vm4761_vm0, %v439_v35  ;;  %v643_v29 = vpack.c.b16 %v640_v27, %v639_v26  ;;  %v90_v35 = vpack.c.bf16 %v50_v31, %v50_v31 }
  0x3a   :  { %2293 = vmatmul.msk.bf16.vlgmr.msrb.gmra.mxu2 %vm4761_vm0, %v490_v34  ;;  %v89_v34 = vpack.c.bf16 %v49_v30, %v49_v30  ;;  %v644_v43 = vpack.c.b16 %v642_v41, %v641_v40 }
  0x3b   :  { %2295 = vmatmul.msk.bf16.vlgmr.msrb.gmra.mxu3 %vm4761_vm0, %v541_v38  ;;  %674 = vmatpush.bf16.xpose.msra.mxu1 %v662_v9  ;;  %v591_v39 = vunpack.c.l.b16 %v90_v35 }
  0x3c   :  { %v590_v38 = vunpack.c.l.b16 %v89_v34 }
  0x3e   :  { %v593_v42 = vpack.c.b16 %v591_v39, %v590_v38 }
  0x48   :  { %2290 = vmatmul.msk.bf16.gmra.mxu0 %vm4761_vm0, %v389_v12 }
  0x49   :  { %2292 = vmatmul.msk.bf16.gmra.mxu1 %vm4761_vm0, %v440_v13 }
  0x4a   :  { %2294 = vmatmul.msk.bf16.gmra.mxu2 %vm4761_vm0, %v491_v14 }
  0x4b   :  { %2296 = vmatmul.msk.bf16.gmra.mxu3 %vm4761_vm0, %v542_v15 }
  0x58   :  { %2297 = vmatmul.msk.bf16.vlgmr.msra.gmra.mxu0 %vm4761_vm0, %v592_v28 }
  0x59   :  { %2299 = vmatmul.msk.bf16.vlgmr.msra.gmra.mxu1 %vm4761_vm0, %v643_v29 }
  0x68   :  { %2298 = vmatmul.msk.bf16.gmra.mxu0 %vm4761_vm0, %v593_v42 }
  0x69   :  { %2300 = vmatmul.msk.bf16.gmra.mxu1 %vm4761_vm0, %v644_v43 }
  0x95   :  { %v2794_v44 = vpop.f32.mrf.mxu0 }
  0x96   :  { %v2796_v45 = vpop.f32.mrf.mxu1  ;;  %v687_v46 = vsel %vm4764_vm1, %v2794_v44, -inf }
  0x97   :  { %v699_v47 = vsel %vm4764_vm1, %v2796_v45, -inf  ;;  %688 = vmax.xlane.f32.xlu0 %v687_v46 }
  0x98   :  { %700 = vmax.xlane.f32.xlu1 %v699_v47 }
  0x9d   :  { %v2802_v50 = vpop.f32.mrf.mxu2  ;;  %v2804_v51 = vpop.f32.mrf.mxu0 }
  0x9e   :  { %v711_v52 = vsel %vm4764_vm1, %v2802_v50, -inf  ;;  %v2808_v53 = vpop.f32.mrf.mxu3  ;;  %v2810_v55 = vpop.f32.mrf.mxu1  ;;  %v690_v59 = vsel %vm4764_vm1, %v2804_v51, -inf }
  0x9f   :  { %v723_v56 = vsel %vm4764_vm1, %v2808_v53, -inf  ;;  %v702_v57 = vsel %vm4764_vm1, %v2810_v55, -inf  ;;  %712 = vmax.xlane.f32.xlu0 %v711_v52 }
  0xa0   :  { %724 = vmax.xlane.f32.xlu2 %v723_v56  ;;  %703 = vmax.xlane.f32.xlu1 %v702_v57 }
  0xa5   :  { %v2816_v48 = vpop.f32.mrf.mxu2  ;;  %v2818_v49 = vpop.f32.mrf.mxu0 }
  0xa6   :  { %v2820_v54 = vpop.f32.mrf.mxu1  ;;  %v2822_v58 = vpop.f32.mrf.mxu3  ;;  %v693_v60 = vsel %vm4764_vm1, %v2818_v49, -inf  ;;  %v714_v61 = vsel %vm4764_vm1, %v2816_v48, -inf }
  0xa7   :  { %691 = vmax.xlane.f32.xlu0 %v690_v59  ;;  %v726_v2 = vsel %vm4764_vm1, %v2822_v58, -inf  ;;  %v705_v6 = vsel %vm4764_vm1, %v2820_v54, -inf }
  0xa8   :  { %715 = vmax.xlane.f32.xlu1 %v714_v61  ;;  %694 = vmax.xlane.f32.xlu2 %v693_v60 }
  0xad   :  { %v2830_v62 = vpop.f32.mrf.mxu2  ;;  %v2832_v63 = vpop.f32.mrf.mxu0 }
  0xae   :  { %v2834_v0 = vpop.f32.mrf.mxu1  ;;  %v2836_v1 = vpop.f32.mrf.mxu3  ;;  %v696_v9 = vsel %vm4764_vm1, %v2832_v63, -inf  ;;  %v717_v13 = vsel %vm4764_vm1, %v2830_v62, -inf }
  0xaf   :  { %v708_v3 = vsel %vm4764_vm1, %v2834_v0, -inf  ;;  %727 = vmax.xlane.f32.xlu0 %v726_v2  ;;  %v729_v4 = vsel %vm4764_vm1, %v2836_v1, -inf }
  0xb0   :  { %709 = vmax.xlane.f32.xlu1 %v708_v3  ;;  %730 = vmax.xlane.f32.xlu2 %v729_v4 }
  0xb5   :  { %v2844_v5 = vpop.f32.mrf.mxu2  ;;  %v2848_v7 = vpop.f32.mrf.mxu0 }
  0xb6   :  { %v720_v8 = vsel %vm4764_vm1, %v2844_v5, -inf  ;;  %v2854_v10 = vpop.f32.mrf.mxu3  ;;  %v2856_v11 = vpop.f32.mrf.mxu1  ;;  %v735_v16 = vsel %vm4764_vm1, %v2848_v7, -inf }
  0xb7   :  { %706 = vmax.xlane.f32.xlu0 %v705_v6  ;;  %v747_v15 = vsel %vm4764_vm1, %v2856_v11, -inf  ;;  %v732_v23 = vsel %vm4764_vm1, %v2854_v10, -inf }
  0xb8   :  { %721 = vmax.xlane.f32.xlu1 %v720_v8  ;;  %697 = vmax.xlane.f32.xlu2 %v696_v9 }
  0xbd   :  { %v2858_v12 = vpop.f32.mrf.mxu2  ;;  %v2862_v14 = vpop.f32.mrf.mxu0 }
  0xbe   :  { %v2868_v17 = vpop.f32.mrf.mxu1  ;;  %v2870_v18 = vpop.f32.mrf.mxu3  ;;  %v759_v26 = vsel %vm4764_vm1, %v2858_v12, -inf  ;;  %v738_v36 = vsel %vm4764_vm1, %v2862_v14, -inf }
  0xbf   :  { %718 = vmax.xlane.f32.xlu0 %v717_v13  ;;  %v771_v22 = vsel %vm4764_vm1, %v2870_v18, -inf  ;;  %v750_v28 = vsel %vm4764_vm1, %v2868_v17, -inf }
  0xc0   :  { %748 = vmax.xlane.f32.xlu1 %v747_v15  ;;  %736 = vmax.xlane.f32.xlu2 %v735_v16 }
  0xc5   :  { %v2872_v19 = vpop.f32.mrf.mxu2  ;;  %v2874_v20 = vpop.f32.mrf.mxu0 }
  0xc6   :  { %v762_v21 = vsel %vm4764_vm1, %v2872_v19, -inf  ;;  %v2882_v24 = vpop.f32.mrf.mxu1  ;;  %v2884_v25 = vpop.f32.mrf.mxu3  ;;  %v741_v29 = vsel %vm4764_vm1, %v2874_v20, -inf }
  0xc7   :  { %733 = vmax.xlane.f32.xlu0 %v732_v23  ;;  %v774_v42 = vsel %vm4764_vm1, %v2884_v25, -inf  ;;  %v753_v52 = vsel %vm4764_vm1, %v2882_v24, -inf }
  0xc8   :  { %763 = vmax.xlane.f32.xlu1 %v762_v21  ;;  %772 = vmax.xlane.f32.xlu2 %v771_v22 }
  0xcd   :  { %v2888_v27 = vpop.f32.mrf.mxu0  ;;  %v2894_v30 = vpop.f32.mrf.mxu2 }
  0xce   :  { %v2896_v31 = vpop.f32.mrf.mxu1  ;;  %v2898_v32 = vpop.f32.mrf.mxu3  ;;  %v744_v41 = vsel %vm4764_vm1, %v2888_v27, -inf  ;;  %v765_v60 = vsel %vm4764_vm1, %v2894_v30, -inf }
  0xcf   :  { %760 = vmax.xlane.f32.xlu0 %v759_v26  ;;  %v777_v34 = vsel %vm4764_vm1, %v2898_v32, -inf  ;;  %v756_v35 = vsel %vm4764_vm1, %v2896_v31, -inf }
  0xd0   :  { %751 = vmax.xlane.f32.xlu2 %v750_v28  ;;  %742 = vmax.xlane.f32.xlu1 %v741_v29 }
  0xd5   :  { %v2900_v33 = vpop.f32.mrf.mxu0  ;;  %v2908_v37 = vpop.f32.mrf.mxu2 }
  0xd6   :  { %v2910_v38 = vpop.f32.mrf.mxu1  ;;  %v768_v40 = vsel %vm4764_vm1, %v2908_v37, -inf  ;;  %v783_v46 = vsel %vm4764_vm1, %v2900_v33, -inf  ;;  %v2940_v3 = vpop.f32.mrf.mxu3 }
  0xd7   :  { %739 = vmax.xlane.f32.xlu0 %v738_v36  ;;  %v780_v6 = vsel %vm4764_vm1, %v2940_v3, -inf  ;;  %v795_v13 = vsel %vm4764_vm1, %v2910_v38, -inf }
  0xd8   :  { %778 = vmax.xlane.f32.xlu2 %v777_v34  ;;  %757 = vmax.xlane.f32.xlu1 %v756_v35 }
  0xdd   :  { %v2912_v39 = vpop.f32.mrf.mxu0 }
  0xde   :  { %v786_v47 = vsel %vm4764_vm1, %v2912_v39, -inf  ;;  %v2928_v56 = vpop.f32.mrf.mxu1 }
  0xdf   :  { %775 = vmax.xlane.f32.xlu0 %v774_v42  ;;  %v798_v59 = vsel %vm4764_vm1, %v2928_v56, -inf }
  0xe0   :  { %769 = vmax.xlane.f32.xlu1 %v768_v40  ;;  %745 = vmax.xlane.f32.xlu2 %v744_v41 }
  0xe5   :  { %v2920_v43 = vpop.f32.mrf.mxu0 }
  0xe6   :  { %v2938_v2 = vpop.f32.mrf.mxu1  ;;  %v789_v4 = vsel %vm4764_vm1, %v2920_v43, -inf }
  0xe7   :  { %754 = vmax.xlane.f32.xlu0 %v753_v52  ;;  %v801_v15 = vsel %vm4764_vm1, %v2938_v2, -inf }
  0xe8   :  { %784 = vmax.xlane.f32.xlu1 %v783_v46  ;;  %787 = vmax.xlane.f32.xlu2 %v786_v47 }
  0xed   :  { %v2930_v57 = vpop.f32.mrf.mxu0 }
  0xee   :  { %v792_v61 = vsel %vm4764_vm1, %v2930_v57, -inf  ;;  %v2946_v8 = vpop.f32.mrf.mxu1 }
  0xef   :  { %766 = vmax.xlane.f32.xlu0 %v765_v60  ;;  %v804_v9 = vsel %vm4764_vm1, %v2946_v8, -inf }
  0xf0   :  { %799 = vmax.xlane.f32.xlu1 %v798_v59  ;;  %793 = vmax.xlane.f32.xlu2 %v792_v61 }
  0xf7   :  { %781 = vmax.xlane.f32.xlu0 %v780_v6 }
  0xf8   :  { %790 = vmax.xlane.f32.xlu1 %v789_v4 }
  0xff   :  { %796 = vmax.xlane.f32.xlu0 %v795_v13 }
 0x100   :  { %805 = vmax.xlane.f32.xlu1 %v804_v9 }
 0x107   :  { %802 = vmax.xlane.f32.xlu0 %v801_v15 }
 0x10a   :  { %v689_v16 = vpop.xlane.xlu0 %688 }
 0x10b   :  { %v701_v21 = vpop.xlane.xlu1 %700  ;;  %v807_v22 = vsub.f32 %v2794_v44, %v689_v16 }
 0x10c   :  { %v811_v23 = vsub.f32 %v2796_v45, %v701_v21 }
 0x10d   :  { %v847_v26 = vmul.f32 1.442695, %v807_v22 }
 0x10e   :  { %v855_v28 = vmul.f32 1.442695, %v811_v23 }
 0x10f   :  { %2321 = vpow2.f32 %v847_v26 }
 0x110   :  { %2323 = vpow2.f32 %v855_v28 }
 0x112   :  { %v713_v29 = vpop.xlane.xlu0 %712 }
 0x113   :  { %v725_v34 = vpop.xlane.xlu2 %724  ;;  %v704_v35 = vpop.xlane.xlu1 %703  ;;  %v815_v36 = vsub.f32 %v2802_v50, %v713_v29 }
 0x114   :  { %v812_v40 = vsub.f32 %v2810_v55, %v704_v35  ;;  %v819_v60 = vsub.f32 %v2808_v53, %v725_v34 }
 0x115   :  { %v2958_v41 = vpop.eup %2321  ;;  %v863_v42 = vmul.f32 1.442695, %v815_v36 }
 0x116   :  { %v2960_v46 = vpop.eup %2323  ;;  %v857_v47 = vmul.f32 1.442695, %v812_v40  ;;  %v927_v44 = vsel %vm4764_vm1, %v2958_v41, 0.0  ;;  %v871_v21 = vmul.f32 1.442695, %v819_v60 }
 0x117   :  { %2325 = vpow2.f32 %v863_v42  ;;  %v939_v45 = vsel %vm4764_vm1, %v2960_v46, 0.0  ;;  %928 = vadd.xlane.f32.xlu2 %v927_v44 }
 0x118   :  { %940 = vadd.xlane.f32.xlu1 %v939_v45  ;;  %2327 = vpow2.f32 %v857_v47 }
 0x11a   :  { %v692_v52 = vpop.xlane.xlu0 %691 }
 0x11b   :  { %v716_v50 = vpop.xlane.xlu1 %715  ;;  %v808_v55 = vsub.f32 %v2804_v51, %v692_v52  ;;  %v695_v59 = vpop.xlane.xlu2 %694 }
 0x11c   :  { %v816_v61 = vsub.f32 %v2816_v48, %v716_v50  ;;  %v809_v13 = vsub.f32 %v2818_v49, %v695_v59 }
 0x11d   :  { %v2969_v4 = vpop.eup %2325  ;;  %v849_v6 = vmul.f32 1.442695, %v808_v55 }
 0x11e   :  { %v865_v9 = vmul.f32 1.442695, %v816_v61  ;;  %v951_v15 = vsel %vm4764_vm1, %v2969_v4, 0.0  ;;  %v2974_v16 = vpop.eup %2327  ;;  %v851_v53 = vmul.f32 1.442695, %v809_v13 }
 0x11f   :  { %2329 = vpow2.f32 %v849_v6  ;;  %v942_v51 = vsel %vm4764_vm1, %v2974_v16, 0.0 }
 0x120   :  { %2331 = vpow2.f32 %v865_v9  ;;  %952 = vadd.xlane.f32.xlu1 %v951_v15  ;;  %943 = vadd.xlane.f32.xlu2 %v942_v51 }
 0x121   :  { %2333 = vpow2.f32 %v871_v21 }
 0x122   :  { %v728_v48 = vpop.xlane.xlu0 %727  ;;  %2335 = vpow2.f32 %v851_v53 }
 0x123   :  { %v710_v22 = vpop.xlane.xlu1 %709  ;;  %v820_v23 = vsub.f32 %v2822_v58, %v728_v48  ;;  %v731_v26 = vpop.xlane.xlu2 %730 }
 0x124   :  { %v821_v34 = vsub.f32 %v2836_v1, %v731_v26  ;;  %v814_v61 = vsub.f32 %v2834_v0, %v710_v22 }
 0x125   :  { %v2979_v49 = vpop.eup %2329  ;;  %v873_v28 = vmul.f32 1.442695, %v820_v23 }
 0x126   :  { %v2981_v29 = vpop.eup %2331  ;;  %v930_v35 = vsel %vm4764_vm1, %v2979_v49, 0.0  ;;  %v875_v40 = vmul.f32 1.442695, %v821_v34 }
 0x127   :  { %2337 = vpow2.f32 %v873_v28  ;;  %931 = vadd.xlane.f32.xlu0 %v930_v35  ;;  %v954_v36 = vsel %vm4764_vm1, %v2981_v29, 0.0  ;;  %v2988_v58 = vpop.eup %2333 }
 0x128   :  { %955 = vadd.xlane.f32.xlu2 %v954_v36  ;;  %v2991_v52 = vpop.eup %2335  ;;  %v963_v60 = vsel %vm4764_vm1, %v2988_v58, 0.0  ;;  %2339 = vpow2.f32 %v875_v40 }
 0x12a   :  { %v707_v42 = vpop.xlane.xlu0 %706 }
 0x12b   :  { %v722_v47 = vpop.xlane.xlu1 %721  ;;  %v813_v44 = vsub.f32 %v2820_v54, %v707_v42  ;;  %v698_v45 = vpop.xlane.xlu2 %697 }
 0x12c   :  { %v810_v1 = vsub.f32 %v2832_v63, %v698_v45  ;;  %v818_v55 = vsub.f32 %v2844_v5, %v722_v47  ;;  %v933_v63 = vsel %vm4764_vm1, %v2991_v52, 0.0  ;;  %v861_v5 = vmul.f32 1.442695, %v814_v61 }
 0x12d   :  { %v2994_v50 = vpop.eup %2337  ;;  %v859_v59 = vmul.f32 1.442695, %v813_v44 }
 0x12e   :  { %v853_v6 = vmul.f32 1.442695, %v810_v1  ;;  %v966_v54 = vsel %vm4764_vm1, %v2994_v50, 0.0  ;;  %v869_v9 = vmul.f32 1.442695, %v818_v55  ;;  %v3005_v51 = vpop.eup %2339 }
 0x12f   :  { %2341 = vpow2.f32 %v859_v59  ;;  %964 = vadd.xlane.f32.xlu0 %v963_v60  ;;  %967 = vadd.xlane.f32.xlu1 %v966_v54  ;;  %v969_v34 = vsel %vm4764_vm1, %v3005_v51, 0.0 }
 0x130   :  { %2343 = vpow2.f32 %v853_v6  ;;  %934 = vadd.xlane.f32.xlu2 %v933_v63 }
 0x131   :  { %2345 = vpow2.f32 %v869_v9 }
 0x132   :  { %v719_v13 = vpop.xlane.xlu0 %718  ;;  %2347 = vpow2.f32 %v861_v5 }
 0x133   :  { %v749_v15 = vpop.xlane.xlu1 %748  ;;  %v817_v21 = vsub.f32 %v2830_v62, %v719_v13  ;;  %v737_v0 = vpop.xlane.xlu2 %736 }
 0x134   :  { %v827_v48 = vsub.f32 %v2856_v11, %v749_v15  ;;  %v823_v28 = vsub.f32 %v2848_v7, %v737_v0 }
 0x135   :  { %v3007_v53 = vpop.eup %2341  ;;  %v867_v22 = vmul.f32 1.442695, %v817_v21 }
 0x136   :  { %v945_v23 = vsel %vm4764_vm1, %v3007_v53, 0.0  ;;  %v3012_v26 = vpop.eup %2343  ;;  %v887_v35 = vmul.f32 1.442695, %v827_v48  ;;  %v879_v40 = vmul.f32 1.442695, %v823_v28 }
 0x137   :  { %2349 = vpow2.f32 %v867_v22  ;;  %946 = vadd.xlane.f32.xlu1 %v945_v23  ;;  %v936_v62 = vsel %vm4764_vm1, %v3012_v26, 0.0  ;;  %v3019_v36 = vpop.eup %2345 }
 0x138   :  { %937 = vadd.xlane.f32.xlu0 %v936_v62  ;;  %970 = vadd.xlane.f32.xlu2 %v969_v34  ;;  %v3025_v44 = vpop.eup %2347  ;;  %2351 = vpow2.f32 %v887_v35  ;;  %v960_v1 = vsel %vm4764_vm1, %v3019_v36, 0.0 }
 0x139   :  { %2353 = vpow2.f32 %v879_v40  ;;  %v948_v55 = vsel %vm4764_vm1, %v3025_v44, 0.0 }
 0x13a   :  { %v734_v11 = vpop.xlane.xlu0 %733 }
 0x13b   :  { %v3021_v42 = vpop.xlane.xlu1 %763  ;;  %v3023_v47 = vpop.xlane.xlu2 %772  ;;  %v822_v23 = vsub.f32 %v2854_v10, %v734_v11 }
 0x13d   :  { %v3027_v7 = vpop.eup %2349  ;;  %v877_v35 = vmul.f32 1.442695, %v822_v23 }
 0x13e   :  { %v957_v45 = vsel %vm4764_vm1, %v3027_v7, 0.0  ;;  %v3035_v60 = vpop.eup %2351 }
 0x13f   :  { %961 = vadd.xlane.f32.xlu1 %v960_v1  ;;  %v3038_v63 = vpop.eup %2353  ;;  %v987_v13 = vsel %vm4764_vm1, %v3035_v60, 0.0 }
 0x140   :  { %958 = vadd.xlane.f32.xlu0 %v957_v45  ;;  %949 = vadd.xlane.f32.xlu2 %v948_v55  ;;  %v975_v15 = vsel %vm4764_vm1, %v3038_v63, 0.0 }
 0x142   :  { %v761_v59 = vpop.xlane.xlu0 %760 }
 0x143   :  { %v752_v61 = vpop.xlane.xlu2 %751  ;;  %v743_v6 = vpop.xlane.xlu1 %742 }
 0x144   :  { %v828_v54 = vsub.f32 %v2868_v17, %v752_v61  ;;  %v825_v5 = vsub.f32 %v2874_v20, %v743_v6  ;;  %v831_v61 = vsub.f32 %v2858_v12, %v761_v59 }
 0x146   :  { %v889_v9 = vmul.f32 1.442695, %v828_v54  ;;  %v883_v21 = vmul.f32 1.442695, %v825_v5 }
 0x147   :  { %988 = vadd.xlane.f32.xlu1 %v987_v13 }
 0x148   :  { %2355 = vpow2.f32 %v889_v9  ;;  %976 = vadd.xlane.f32.xlu2 %v975_v15  ;;  %v895_v9 = vmul.f32 1.442695, %v831_v61 }
 0x149   :  { %2357 = vpow2.f32 %v883_v21 }
 0x14a   :  { %v740_v0 = vpop.xlane.xlu0 %739 }
 0x14b   :  { %v3045_v48 = vpop.xlane.xlu2 %778  ;;  %v824_v17 = vsub.f32 %v2862_v14, %v740_v0  ;;  %v758_v22 = vpop.xlane.xlu1 %757  ;;  %v835_v0 = vsub.f32 %v2870_v18, %v3023_v47 }
 0x14c   :  { %v830_v62 = vsub.f32 %v2896_v31, %v758_v22 }
 0x14d   :  { %v881_v28 = vmul.f32 1.442695, %v824_v17 }
 0x14e   :  { %v3049_v20 = vpop.eup %2355  ;;  %v893_v45 = vmul.f32 1.442695, %v830_v62 }
 0x14f   :  { %2359 = vpow2.f32 %v881_v28  ;;  %v990_v34 = vsel %vm4764_vm1, %v3049_v20, 0.0  ;;  %v3056_v55 = vpop.eup %2357 }
 0x150   :  { %991 = vadd.xlane.f32.xlu2 %v990_v34  ;;  %4765 = vst [vmem:[#allocation2_spill] sm:$0xff] %v3056_v55  ;;  %2361 = vpow2.f32 %v877_v35  ;;  %v981_v6 = vsel %vm4764_vm1, %v3056_v55, 0.0 }
 0x151   :  { %2363 = vpow2.f32 %v893_v45 }
 0x152   :  { %v776_v40 = vpop.xlane.xlu0 %775 }
 0x153   :  { %v3054_v1 = vpop.xlane.xlu1 %769  ;;  %v746_v14 = vpop.xlane.xlu2 %745 }
 0x154   :  { %v826_v11 = vsub.f32 %v2888_v27, %v746_v14  ;;  %v832_v27 = vsub.f32 %v2872_v19, %v3021_v42  ;;  %v903_v42 = vmul.f32 1.442695, %v835_v0 }
 0x155   :  { %v3058_v10 = vpop.eup %2359 }
 0x156   :  { %v978_v31 = vsel %vm4764_vm1, %v3058_v10, 0.0  ;;  %v885_v54 = vmul.f32 1.442695, %v826_v11  ;;  %v3066_v13 = vpop.eup %2361  ;;  %v836_v11 = vsub.f32 %v2884_v25, %v776_v40 }
 0x157   :  { %979 = vadd.xlane.f32.xlu0 %v978_v31  ;;  %v3071_v21 = vpop.eup %2363  ;;  %v972_v22 = vsel %vm4764_vm1, %v3066_v13, 0.0 }
 0x158   :  { %982 = vadd.xlane.f32.xlu2 %v981_v6  ;;  %4766 = vst [vmem:[#allocation3_spill] sm:$0xff] %v3071_v21  ;;  %2365 = vpow2.f32 %v885_v54  ;;  %v996_v19 = vsel %vm4764_vm1, %v3071_v21, 0.0 }
 0x159   :  { %2367 = vpow2.f32 %v895_v9  ;;  %v905_v9 = vmul.f32 1.442695, %v836_v11 }
 0x15a   :  { %v755_v5 = vpop.xlane.xlu0 %754 }
 0x15b   :  { %v829_v15 = vsub.f32 %v2882_v24, %v755_v5  ;;  %v785_v12 = vpop.xlane.xlu1 %784  ;;  %v788_v59 = vpop.xlane.xlu2 %787  ;;  %v897_v24 = vmul.f32 1.442695, %v832_v27 }
 0x15c   :  { %v840_v23 = vsub.f32 %v2912_v39, %v788_v59  ;;  %v839_v35 = vsub.f32 %v2900_v33, %v785_v12 }
 0x15d   :  { %v891_v17 = vmul.f32 1.442695, %v829_v15 }
 0x15e   :  { %v3080_v62 = vpop.eup %2365  ;;  %v913_v18 = vmul.f32 1.442695, %v840_v23  ;;  %v911_v31 = vmul.f32 1.442695, %v839_v35 }
 0x15f   :  { %2369 = vpow2.f32 %v891_v17  ;;  %973 = vadd.xlane.f32.xlu0 %v972_v22  ;;  %4767 = vst [vmem:[#allocation4_spill] sm:$0xff] %v3080_v62  ;;  %v3082_v47 = vpop.eup %2367  ;;  %v984_v45 = vsel %vm4764_vm1, %v3080_v62, 0.0 }
 0x160   :  { %997 = vadd.xlane.f32.xlu2 %v996_v19  ;;  %2371 = vpow2.f32 %v897_v24  ;;  %v999_v61 = vsel %vm4764_vm1, %v3082_v47, 0.0 }
 0x161   :  { %2373 = vpow2.f32 %v903_v42 }
 0x162   :  { %v767_v28 = vpop.xlane.xlu0 %766  ;;  %2375 = vpow2.f32 %v913_v18 }
 0x163   :  { %v800_v39 = vpop.xlane.xlu1 %799  ;;  %2377 = vpow2.f32 %v911_v31  ;;  %v833_v22 = vsub.f32 %v2894_v30, %v767_v28 }
 0x164   :  { %v844_v25 = vsub.f32 %v2928_v56, %v800_v39  ;;  %2379 = vpow2.f32 %v905_v9  ;;  %v794_v39 = vpop.xlane.xlu2 %793  ;;  %v834_v9 = vsub.f32 %v2908_v37, %v3054_v1 }
 0x165   :  { %v3084_v34 = vpop.eup %2369  ;;  %v899_v18 = vmul.f32 1.442695, %v833_v22 }
 0x166   :  { %4768 = vst [vmem:[#allocation5_spill] sm:$0xff] %v3084_v34  ;;  %v993_v14 = vsel %vm4764_vm1, %v3084_v34, 0.0  ;;  %v3094_v6 = vpop.eup %2371  ;;  %v921_v59 = vmul.f32 1.442695, %v844_v25 }
 0x167   :  { %985 = vadd.xlane.f32.xlu0 %v984_v45  ;;  %994 = vadd.xlane.f32.xlu1 %v993_v14  ;;  %v3098_v54 = vpop.eup %2373  ;;  %v1002_v40 = vsel %vm4764_vm1, %v3094_v6, 0.0 }
 0x168   :  { %1000 = vadd.xlane.f32.xlu2 %v999_v61  ;;  %v3100_v5 = vpop.eup %2375  ;;  %v1011_v15 = vsel %vm4764_vm1, %v3098_v54, 0.0  ;;  %2381 = vpow2.f32 %v921_v59 }
 0x169   :  { %v1026_v12 = vsel %vm4764_vm1, %v3100_v5, 0.0  ;;  %v3109_v17 = vpop.eup %2377 }
 0x16a   :  { %v3096_v33 = vpop.xlane.xlu0 %781  ;;  %4769 = vst [vmem:[#allocation6_spill] sm:$0xff] %v3109_v17  ;;  %v3113_v23 = vpop.eup %2379  ;;  %v1023_v42 = vsel %vm4764_vm1, %v3109_v17, 0.0 }
 0x16b   :  { %v791_v27 = vpop.xlane.xlu1 %790  ;;  %4770 = vst [vmem:[#allocation7_spill] sm:$0xff] %v3113_v23  ;;  %v1014_v35 = vsel %vm4764_vm1, %v3113_v23, 0.0  ;;  %v838_v37 = vsub.f32 %v2940_v3, %v3096_v33  ;;  %v1693_v3 = vld [vmem:[%s4745_s2 + $0x30] sm:$0xff]  ;;  %v1694_v33 = vld [vmem:[%s4745_s2 + $0x38] sm:$0xff] }
 0x16c   :  { %v841_v24 = vsub.f32 %v2920_v43, %v791_v27  ;;  %v842_v43 = vsub.f32 %v2930_v57, %v794_v39  ;;  %v837_v57 = vsub.f32 %v2898_v32, %v3045_v48  ;;  %v1733_v22 = vpack.c.bf16 %v1693_v3, %v1693_v3 }
 0x16e   :  { %v915_v45 = vmul.f32 1.442695, %v841_v24  ;;  %v3120_v28 = vpop.eup %2381  ;;  %v907_v59 = vmul.f32 1.442695, %v837_v57  ;;  %v1734_v24 = vpack.c.bf16 %v1694_v33, %v1694_v33 }
 0x16f   :  { %1003 = vadd.xlane.f32.xlu0 %v1002_v40  ;;  %1012 = vadd.xlane.f32.xlu1 %v1011_v15  ;;  %4771 = vst [vmem:[#allocation8_spill] sm:$0xff] %v3120_v28  ;;  %v1038_v40 = vsel %vm4764_vm1, %v3120_v28, 0.0 }
 0x170   :  { %1027 = vadd.xlane.f32.xlu2 %v1026_v12 }
 0x172   :  { %v797_v0 = vpop.xlane.xlu0 %796 }
 0x173   :  { %v843_v56 = vsub.f32 %v2910_v38, %v797_v0  ;;  %v806_v38 = vpop.xlane.xlu1 %805 }
 0x174   :  { %v846_v61 = vsub.f32 %v2946_v8, %v806_v38  ;;  %v901_v8 = vmul.f32 1.442695, %v834_v9  ;;  %v1692_v38 = vld [vmem:[%s4745_s2 + $0x28] sm:$0xff] }
 0x175   :  { %v919_v19 = vmul.f32 1.442695, %v843_v56  ;;  %v909_v56 = vmul.f32 1.442695, %v838_v37  ;;  %v1732_v9 = vpack.c.bf16 %v1692_v38, %v1692_v38 }
 0x176   :  { %v925_v15 = vmul.f32 1.442695, %v846_v61 }
 0x177   :  { %2383 = vpow2.f32 %v919_v19  ;;  %1024 = vadd.xlane.f32.xlu1 %v1023_v42 }
 0x178   :  { %1015 = vadd.xlane.f32.xlu2 %v1014_v35  ;;  %2385 = vpow2.f32 %v899_v18 }
 0x179   :  { %2387 = vpow2.f32 %v915_v45  ;;  %v1691_v45 = vld [vmem:[%s4745_s2 + $0x20] sm:$0xff] }
 0x17a   :  { %v803_v30 = vpop.xlane.xlu0 %802 }
 0x17b   :  { %v845_v14 = vsub.f32 %v2938_v2, %v803_v30  ;;  %v917_v2 = vmul.f32 1.442695, %v842_v43  ;;  %v1830_v30 = vunpack.c.l.b16 %v1733_v22 }
 0x17d   :  { %v3124_v11 = vpop.eup %2383  ;;  %v923_v31 = vmul.f32 1.442695, %v845_v14  ;;  %v1831_v14 = vunpack.c.l.b16 %v1734_v24 }
 0x17e   :  { %4772 = vst [vmem:[#allocation9_spill] sm:$0xff] %v3124_v11  ;;  %v1035_v25 = vsel %vm4764_vm1, %v3124_v11, 0.0  ;;  %v3135_v27 = vpop.eup %2385 }
 0x17f   :  { %2389 = vpow2.f32 %v923_v31  ;;  %1036 = vadd.xlane.f32.xlu0 %v1035_v25  ;;  %1039 = vadd.xlane.f32.xlu1 %v1038_v40  ;;  %4773 = vst [vmem:[#allocation10_spill] sm:$0xff] %v3135_v27  ;;  %v3137_v12 = vpop.eup %2387  ;;  %v1005_v0 = vsel %vm4764_vm1, %v3135_v27, 0.0  ;;  %v1731_v31 = vpack.c.bf16 %v1691_v45, %v1691_v45  ;;  %v1833_v40 = vpack.c.b16 %v1831_v14, %v1830_v30 }
 0x180   :  { %4774 = vst [vmem:[#allocation11_spill] sm:$0xff] %v3137_v12  ;;  %2391 = vpow2.f32 %v917_v2  ;;  %v1029_v32 = vsel %vm4764_vm1, %v3137_v12, 0.0 }
 0x181   :  { %2393 = vpow2.f32 %v925_v15  ;;  %v1828_v57 = vunpack.c.l.b16 %v1731_v31  ;;  %v1829_v15 = vunpack.c.l.b16 %v1732_v9  ;;  %1848 = vmatpush.bf16.msra.mxu3 %v1833_v40 }
 0x182   :  { %2395 = vpow2.f32 %v901_v8 }
 0x183   :  { %2397 = vpow2.f32 %v907_v59  ;;  %v1832_v59 = vpack.c.b16 %v1829_v15, %v1828_v57 }
 0x185   :  { %v3141_v1 = vpop.eup %2389  ;;  %1849 = vmatpush.bf16.msra.mxu3 %v1832_v59 }
 0x186   :  { %4775 = vst [vmem:[#allocation12_spill] sm:$0xff] %v3141_v1  ;;  %v1041_v48 = vsel %vm4764_vm1, %v3141_v1, 0.0  ;;  %v3155_v19 = vpop.eup %2391 }
 0x187   :  { %1006 = vadd.xlane.f32.xlu1 %v1005_v0  ;;  %1030 = vadd.xlane.f32.xlu0 %v1029_v32  ;;  %4776 = vst [vmem:[#allocation13_spill] sm:$0xff] %v3155_v19  ;;  %v3159_v18 = vpop.eup %2393  ;;  %v1032_v61 = vsel %vm4764_vm1, %v3155_v19, 0.0 }
 0x188   :  { %1042 = vadd.xlane.f32.xlu2 %v1041_v48  ;;  %4777 = vst [vmem:[#allocation14_spill] sm:$0xff] %v3159_v18  ;;  %v3164_v39 = vpop.eup %2395  ;;  %v1044_v43 = vsel %vm4764_vm1, %v3159_v18, 0.0 }
 0x189   :  { %4778 = vst [vmem:[#allocation15_spill] sm:$0xff] %v3164_v39  ;;  %v1008_v25 = vsel %vm4764_vm1, %v3164_v39, 0.0  ;;  %v3179_v2 = vpop.eup %2397 }
 0x18a   :  { %v3157_v42 = vpop.xlane.xlu2 %928  ;;  %4779 = vst [vmem:[#allocation16_spill] sm:$0xff] %v3179_v2  ;;  %v1017_v33 = vsel %vm4764_vm1, %v3179_v2, 0.0 }
 0x18b   :  { %v3161_v35 = vpop.xlane.xlu1 %940  ;;  %2399 = vrcp.f32 %v3157_v42  ;;  %v1056_v15 = vand.u32 2147483647, %v3157_v42  ;;  %vm1052_vm3 = vweird.f32 %v3157_v42 }
 0x18c   :  { %2401 = vpow2.f32 %v909_v56  ;;  %v1118_v59 = vand.u32 2147483648, %v3161_v35  ;;  %vm1112_vm4 = vweird.f32 %v3161_v35 }
 0x18d   :  { %2403 = vrcp.f32 %v3161_v35  ;;  %vm1057_vm7 = vcmp.eq.f32.partialorder %v1056_v15, 8.507059e+37 }
 0x18f   :  { %1045 = vadd.xlane.f32.xlu0 %v1044_v43  ;;  %1033 = vadd.xlane.f32.xlu1 %v1032_v61 }
 0x190   :  { %1009 = vadd.xlane.f32.xlu2 %v1008_v25 }
 0x191   :  { %v2400_v8 = vpop.eup %2399 }
 0x192   :  { %v3181_v37 = vpop.eup %2401  ;;  %v1048_v32 = vmul.f32 %v2400_v8, %v3157_v42  ;;  %vm1053_vm2 = vweird.f32 %v2400_v8 }
 0x193   :  { %4780 = vst [vmem:[#allocation17_spill] sm:$0xff] %v3181_v37  ;;  %v3183_v0 = vpop.eup %2403  ;;  %v3186_v48 = vpop.xlane.xlu1 %952  ;;  %v1020_v22 = vsel %vm4764_vm1, %v3181_v37, 0.0  ;;  %vm3221_vm6 = vmor %vm1052_vm3, %vm1053_vm2 }
 0x194   :  { %2405 = vrcp.f32 %v3186_v48  ;;  %v3189_v56 = vpop.xlane.xlu2 %943  ;;  %v1108_v3 = vmul.f32 %v3183_v0, %v3161_v35  ;;  %v1049_v24 = vsub.f32 1.0, %v1048_v32  ;;  %v1058_v32 = vand.u32 2147483648, %v3157_v42 }
 0x195   :  { %2407 = vrcp.f32 %v3189_v56  ;;  %vm1113_vm5 = vweird.f32 %v3183_v0  ;;  %v1178_v19 = vand.u32 2147483648, %v3186_v48  ;;  %vm1127_vm10 = vweird.f32 %v3189_v56 }
 0x196   :  { %v1109_v38 = vsub.f32 1.0, %v1108_v3  ;;  %v1050_v43 = vmul.f32 %v2400_v8, %v1049_v24  ;;  %vm3246_vm8 = vmor %vm1112_vm4, %vm1113_vm5  ;;  %vm1172_vm14 = vweird.f32 %v3186_v48 }
 0x197   :  { %1018 = vadd.xlane.f32.xlu0 %v1017_v33  ;;  %1021 = vadd.xlane.f32.xlu1 %v1020_v22 }
 0x198   :  { %v1110_v25 = vmul.f32 %v3183_v0, %v1109_v38  ;;  %v1051_v57 = vadd.f32 %v2400_v8, %v1050_v43 }
 0x19a   :  { %v3198_v45 = vpop.eup %2405  ;;  %v3200_v30 = vpop.xlane.xlu0 %931  ;;  %v1111_v22 = vadd.f32 %v3183_v0, %v1110_v25  ;;  %v1055_v42 = vsel %vm3221_vm6, %v2400_v8, %v1051_v57  ;;  %v1059_v25 = vor.u32 1.1754944e-38, %v1058_v32 }
 0x19b   :  { %v3202_v14 = vpop.eup %2407  ;;  %v1168_v9 = vmul.f32 %v3198_v45, %v3186_v48  ;;  %2409 = vrcp.f32 %v3200_v30  ;;  %vm1173_vm12 = vweird.f32 %v3198_v45  ;;  %vm1067_vm4 = vweird.f32 %v3200_v30 }
 0x19c   :  { %v1123_v61 = vmul.f32 %v3202_v14, %v3189_v56  ;;  %v3206_v31 = vpop.xlane.xlu2 %955  ;;  %vm1128_vm9 = vweird.f32 %v3202_v14  ;;  %v1115_v32 = vsel %vm3246_vm8, %v3183_v0, %v1111_v22  ;;  %v1060_v24 = vsel %vm1057_vm7, %v1059_v25, %v1055_v42  ;;  %vm3291_vm3 = vmor %vm1172_vm14, %vm1173_vm12 }
 0x19d   :  { %2411 = vrcp.f32 %v3206_v31  ;;  %v1169_v3 = vsub.f32 1.0, %v1168_v9  ;;  %v1119_v9 = vor.u32 1.1754944e-38, %v1118_v59  ;;  %v1133_v59 = vand.u32 2147483648, %v3189_v56  ;;  %vm3264_vm13 = vmor %vm1127_vm10, %vm1128_vm9 }
 0x19e   :  { %v1124_v40 = vsub.f32 1.0, %v1123_v61  ;;  %v1116_v61 = vand.u32 2147483647, %v3161_v35  ;;  %v1061_v42 = vmul.f32 %v2958_v41, %v1060_v24  ;;  %vm1187_vm8 = vweird.f32 %v3206_v31 }
 0x19f   :  { %v1170_v57 = vmul.f32 %v3198_v45, %v1169_v3  ;;  %v1131_v3 = vand.u32 2147483647, %v3189_v56  ;;  %v1134_v8 = vor.u32 1.1754944e-38, %v1133_v59 }
 0x1a0   :  { %v1125_v33 = vmul.f32 %v3202_v14, %v1124_v40  ;;  %v1176_v40 = vand.u32 2147483647, %v3186_v48  ;;  %vm1117_vm11 = vcmp.eq.f32.partialorder %v1116_v61, 8.507059e+37  ;;  %v1689_v61 = vld [vmem:[%s4745_s2 + $0x10] sm:$0xff]  ;;  %v1647_v24 = vpack.c.bf16 %v1061_v42, %v1061_v42 }
 0x1a1   :  { %v3227_v43 = vpop.eup %2409  ;;  %v1120_v22 = vsel %vm1117_vm11, %v1119_v9, %v1115_v32  ;;  %v1171_v25 = vadd.f32 %v3198_v45, %v1170_v57  ;;  %v1690_v9 = vld [vmem:[%s4745_s2 + $0x18] sm:$0xff]  ;;  %v1179_v57 = vor.u32 1.1754944e-38, %v1178_v19  ;;  %vm1132_vm2 = vcmp.eq.f32.partialorder %v1131_v3, 8.507059e+37  ;;  %v1697_v42 = vld [vmem:[%s4745_s2 + $0x50] sm:$0xff] }
 0x1a2   :  { %v3225_v38 = vpop.xlane.xlu0 %964  ;;  %v1063_v37 = vmul.f32 %v3227_v43, %v3200_v30  ;;  %v3236_v2 = vpop.xlane.xlu1 %967  ;;  %v1126_v15 = vadd.f32 %v3202_v14, %v1125_v33  ;;  %vm3283_vm15 = vcmp.eq.f32.partialorder %v1176_v40, 8.507059e+37  ;;  %v1729_v40 = vpack.c.bf16 %v1689_v61, %v1689_v61 }
 0x1a3   :  { %2413 = vrcp.f32 %v3225_v38  ;;  %v3240_v39 = vpop.eup %2411  ;;  %v1175_v19 = vsel %vm3291_vm3, %v3198_v45, %v1171_v25  ;;  %vm1068_vm5 = vweird.f32 %v3227_v43  ;;  %v1071_v33 = vand.u32 2147483647, %v3200_v30  ;;  %v1698_v45 = vld [vmem:[%s4745_s2 + $0x58] sm:$0xff] }
 0x1a4   :  { %v3238_v18 = vpop.xlane.xlu2 %934  ;;  %v1064_v1 = vsub.f32 1.0, %v1063_v37  ;;  %v1183_v35 = vmul.f32 %v3240_v39, %v3206_v31  ;;  %2415 = vrcp.f32 %v3236_v2  ;;  %v1130_v56 = vsel %vm3264_vm13, %v3202_v14, %v1126_v15  ;;  %vm3325_vm7 = vmor %vm1067_vm4, %vm1068_vm5 }
 0x1a5   :  { %v1121_v15 = vmul.f32 %v2960_v46, %v1120_v22  ;;  %v1730_v46 = vpack.c.bf16 %v1690_v9, %v1690_v9  ;;  %vm1188_vm6 = vweird.f32 %v3240_v39  ;;  %v1193_v9 = vand.u32 2147483648, %v3206_v31 }
 0x1a6   :  { %v1184_v0 = vsub.f32 1.0, %v1183_v35  ;;  %v1065_v35 = vmul.f32 %v3227_v43, %v1064_v1  ;;  %v1135_v1 = vsel %vm1132_vm2, %v1134_v8, %v1130_v56  ;;  %v1073_v56 = vand.u32 2147483648, %v3200_v30  ;;  %vm3338_vm9 = vmor %vm1187_vm8, %vm1188_vm6 }
 0x1a7   :  { %v1136_v25 = vmul.f32 %v2974_v16, %v1135_v1  ;;  %v1651_v8 = vpack.c.bf16 %v1121_v15, %v1121_v15  ;;  %v1191_v16 = vand.u32 2147483647, %v3206_v31  ;;  %v1737_v1 = vpack.c.bf16 %v1697_v42, %v1697_v42 }
 0x1a8   :  { %v1185_v14 = vmul.f32 %v3240_v39, %v1184_v0  ;;  %v1066_v3 = vadd.f32 %v3227_v43, %v1065_v35  ;;  %v1180_v35 = vsel %vm3283_vm15, %v1179_v57, %v1175_v19  ;;  %v1738_v15 = vpack.c.bf16 %v1698_v45, %v1698_v45 }
 0x1a9   :  { %v3268_v37 = vpop.eup %2413  ;;  %v3333_v27 = vunpack.c.l.b16 %v1647_v24  ;;  %v1181_v19 = vmul.f32 %v2969_v4, %v1180_v35  ;;  %v1652_v28 = vpack.c.bf16 %v1136_v25, %v1136_v25  ;;  %v1074_v31 = vor.u32 1.1754944e-38, %v1073_v56 }
 0x1aa   :  { %v1228_v59 = vmul.f32 %v3268_v37, %v3225_v38  ;;  %v3297_v32 = vpop.eup %2415  ;;  %v1186_v61 = vadd.f32 %v3240_v39, %v1185_v14  ;;  %v3331_v14 = vpop.xlane.xlu1 %946  ;;  %v1070_v41 = vsel %vm3325_vm7, %v3227_v43, %v1066_v3  ;;  %v1818_v24 = vunpack.c.l.b16 %v1651_v8 }
 0x1ab   :  { %v1243_v0 = vmul.f32 %v3297_v32, %v3236_v2  ;;  %vm1072_vm10 = vcmp.eq.f32.partialorder %v1071_v33, 8.507059e+37  ;;  %v1194_v45 = vor.u32 1.1754944e-38, %v1193_v9  ;;  %v3347_v43 = vpop.xlane.xlu0 %937  ;;  %vm1192_vm11 = vcmp.eq.f32.partialorder %v1191_v16, 8.507059e+37  ;;  %v1695_v16 = vld [vmem:[%s4745_s2 + $0x40] sm:$0xff] }
 0x1ac   :  { %v3308_v22 = vpop.xlane.xlu2 %970  ;;  %v1229_v48 = vsub.f32 1.0, %v1228_v59  ;;  %v1783_v59 = vunpack.c.l.b16 %v1729_v40  ;;  %v1190_v42 = vsel %vm3338_vm9, %v3240_v39, %v1186_v61  ;;  %v1075_v3 = vsel %vm1072_vm10, %v1074_v31, %v1070_v41 }
 0x1ad   :  { %v1244_v57 = vsub.f32 1.0, %v1243_v0  ;;  %v1236_v0 = vand.u32 2147483647, %v3225_v38  ;;  %v1784_v40 = vunpack.c.l.b16 %v1730_v46  ;;  %v1195_v11 = vsel %vm1192_vm11, %v1194_v45, %v1190_v42 }
 0x1ae   :  { %v1230_v12 = vmul.f32 %v3268_v37, %v1229_v48  ;;  %2417 = vrcp.f32 %v3238_v18  ;;  %v1877_v25 = vunpack.c.l.b16 %v1737_v1  ;;  %v1655_v56 = vpack.c.bf16 %v1181_v19, %v1181_v19 }
 0x1af   :  { %v1245_v4 = vmul.f32 %v3297_v32, %v1244_v57  ;;  %v1819_v39 = vunpack.c.l.b16 %v1652_v28  ;;  %2419 = vrcp.f32 %v3347_v43  ;;  %v1878_v33 = vunpack.c.l.b16 %v1738_v15 }
 0x1b0   :  { %v1076_v61 = vmul.f32 %v2979_v49, %v1075_v3  ;;  %v1231_v8 = vadd.f32 %v3268_v37, %v1230_v12  ;;  %vm1232_vm12 = vweird.f32 %v3225_v38  ;;  %vm1233_vm13 = vweird.f32 %v3268_v37  ;;  %v1687_v49 = vld [vmem:[%s4745_s2] sm:$0xff] }
 0x1b1   :  { %v1196_v35 = vmul.f32 %v2981_v29, %v1195_v11  ;;  %vm3360_vm14 = vcmp.eq.f32.partialorder %v1236_v0, 8.507059e+37  ;;  %v1238_v28 = vand.u32 2147483648, %v3225_v38  ;;  %2421 = vrcp.f32 %v3331_v14  ;;  %v1688_v11 = vld [vmem:[%s4745_s2 + $0x8] sm:$0xff]  ;;  %vm3383_vm3 = vmor %vm1232_vm12, %vm1233_vm13 }
 0x1b2   :  { %v1246_v48 = vadd.f32 %v3297_v32, %v1245_v4  ;;  %vm1247_vm15 = vweird.f32 %v3236_v2  ;;  %vm1248_vm2 = vweird.f32 %v3297_v32  ;;  %v1253_v29 = vand.u32 2147483648, %v3236_v2  ;;  %v3388_v19 = vpop.xlane.xlu1 %961  ;;  %v1696_v38 = vld [vmem:[%s4745_s2 + $0x48] sm:$0xff] }
 0x1b3   :  { %v3379_v1 = vunpack.c.l.b16 %v1655_v56  ;;  %v1251_v41 = vand.u32 2147483647, %v3236_v2  ;;  %v1822_v30 = vpack.c.b16 %v1819_v39, %v1818_v24  ;;  %v1786_v57 = vpack.c.b16 %v1784_v40, %v1783_v59  ;;  %vm3404_vm4 = vmor %vm1247_vm15, %vm1248_vm2 }
 0x1b4   :  { %v3357_v46 = vpop.xlane.xlu2 %949  ;;  %v3390_v31 = vpop.eup %2417  ;;  %v1648_v42 = vpack.c.bf16 %v1076_v61, %v1076_v61  ;;  %v1235_v45 = vsel %vm3383_vm3, %v3268_v37, %v1231_v8  ;;  %v1880_v12 = vpack.c.b16 %v1878_v33, %v1877_v25  ;;  %v1727_v3 = vpack.c.bf16 %v1687_v49, %v1687_v49 }
 0x1b5   :  { %v3398_v0 = vpop.eup %2419  ;;  %v1656_v4 = vpack.c.bf16 %v1196_v35, %v1196_v35  ;;  %v1239_v24 = vor.u32 1.1754944e-38, %v1238_v28  ;;  %2303 = vmatmul.msk.bf16.vlgmr.msra.gmra.mxu3 %vm4764_vm1, %v1822_v30  ;;  %1801 = vmatpush.bf16.msra.mxu2 %v1786_v57  ;;  %v1728_v37 = vpack.c.bf16 %v1688_v11, %v1688_v11  ;;  %v1735_v40 = vpack.c.bf16 %v1695_v16, %v1695_v16  ;;  %v3417_v49 = vpop.xlane.xlu0 %958 }
 0x1b6   :  { %v1250_v25 = vsel %vm3404_vm4, %v3297_v32, %v1246_v48  ;;  %v1254_v56 = vor.u32 1.1754944e-38, %v1253_v29  ;;  %v1088_v39 = vand.u32 2147483648, %v3238_v18  ;;  %1895 = vmatpush.bf16.msrb.mxu0 %v1880_v12  ;;  %v1781_v33 = vunpack.c.l.b16 %v1727_v3 }
 0x1b7   :  { %v3413_v61 = vpop.eup %2421  ;;  %v1240_v2 = vsel %vm3360_vm14, %v1239_v24, %v1235_v45  ;;  %v1782_v8 = vunpack.c.l.b16 %v1728_v37  ;;  %v1736_v35 = vpack.c.bf16 %v1696_v38, %v1696_v38  ;;  %v1875_v28 = vunpack.c.l.b16 %v1735_v40  ;;  %v1702_v37 = vld [vmem:[%s4745_s2 + $0x78] sm:$0xff]  ;;  %v1699_v40 = vld [vmem:[%s4745_s2 + $0x60] sm:$0xff] }
 0x1b8   :  { %v1772_v11 = vunpack.c.l.b16 %v1648_v42  ;;  %vm1252_vm5 = vcmp.eq.f32.partialorder %v1251_v41, 8.507059e+37  ;;  %v1078_v32 = vmul.f32 %v3390_v31, %v3238_v18  ;;  %v1093_v48 = vmul.f32 %v3398_v0, %v3347_v43  ;;  %v1701_v41 = vld [vmem:[%s4745_s2 + $0x70] sm:$0xff] }
 0x1b9   :  { %v1866_v29 = vunpack.c.l.b16 %v1656_v4  ;;  %v1255_v16 = vsel %vm1252_vm5, %v1254_v56, %v1250_v25  ;;  %v1785_v15 = vpack.c.b16 %v1782_v8, %v1781_v33  ;;  %v1876_v30 = vunpack.c.l.b16 %v1736_v35  ;;  %v1700_v25 = vld [vmem:[%s4745_s2 + $0x68] sm:$0xff] }
 0x1ba   :  { %v1241_v9 = vmul.f32 %v2988_v58, %v1240_v2  ;;  %v1086_v57 = vand.u32 2147483647, %v3238_v18  ;;  %v1138_v45 = vmul.f32 %v3413_v61, %v3331_v14  ;;  %2423 = vrcp.f32 %v3417_v49  ;;  %v3451_v33 = vpop.xlane.xlu1 %988 }
 0x1bb   :  { %v3433_v12 = vor.u32 1.1754944e-38, %v1088_v39  ;;  %v1101_v3 = vand.u32 2147483647, %v3347_v43  ;;  %v1103_v38 = vand.u32 2147483648, %v3347_v43  ;;  %1802 = vmatpush.bf16.msra.mxu2 %v1785_v15  ;;  %v1879_v58 = vpack.c.b16 %v1876_v30, %v1875_v28 }
 0x1bc   :  { %v3431_v42 = vpop.xlane.xlu2 %976  ;;  %v1256_v4 = vmul.f32 %v2994_v50, %v1255_v16  ;;  %v1079_v24 = vsub.f32 1.0, %v1078_v32  ;;  %v1094_v59 = vsub.f32 1.0, %v1093_v48  ;;  %2425 = vrcp.f32 %v3308_v22 }
 0x1bd   :  { %1896 = vmatpush.bf16.msrb.mxu0 %v1879_v58  ;;  %2427 = vrcp.f32 %v3388_v19  ;;  %v1775_v50 = vpack.c.b16 %v1772_v11, %v3333_v27  ;;  %v1869_v56 = vpack.c.b16 %v1866_v29, %v3379_v1  ;;  %v1741_v39 = vpack.c.bf16 %v1701_v41, %v1701_v41 }
 0x1be   :  { %v1659_v2 = vpack.c.bf16 %v1241_v9, %v1241_v9  ;;  %vm1082_vm6 = vweird.f32 %v3238_v18  ;;  %vm1083_vm7 = vweird.f32 %v3390_v31  ;;  %v1139_v8 = vsub.f32 1.0, %v1138_v45 }
 0x1bf   :  { %2429 = vrcp.f32 %v3357_v46  ;;  %vm1097_vm8 = vweird.f32 %v3347_v43  ;;  %2301 = vmatmul.msk.bf16.vlgmr.msra.gmra.mxu2 %vm4764_vm1, %v1775_v50  ;;  %v1742_v35 = vpack.c.bf16 %v1702_v37, %v1702_v37  ;;  %v1924_v28 = vunpack.c.l.b16 %v1741_v39  ;;  %vm3509_vm12 = vmor %vm1082_vm6, %vm1083_vm7 }
 0x1c0   :  { %v1739_v27 = vpack.c.bf16 %v1699_v40, %v1699_v40  ;;  %v1740_v11 = vpack.c.bf16 %v1700_v25, %v1700_v25  ;;  %v3458_v1 = vpop.eup %2423  ;;  %v1660_v32 = vpack.c.bf16 %v1256_v4, %v1256_v4  ;;  %v1080_v48 = vmul.f32 %v3390_v31, %v1079_v24  ;;  %2305 = vmatmul.msk.bf16.vlgmr.msrb.gmra.mxu0 %vm4764_vm1, %v1869_v56 }
 0x1c1   :  { %v1148_v29 = vand.u32 2147483648, %v3331_v14  ;;  %2431 = vrcp.f32 %v3451_v33  ;;  %vm3464_vm9 = vcmp.eq.f32.partialorder %v1086_v57, 8.507059e+37  ;;  %v1095_v15 = vmul.f32 %v3398_v0, %v1094_v59 }
 0x1c2   :  { %v1925_v30 = vunpack.c.l.b16 %v1742_v35  ;;  %v1922_v9 = vunpack.c.l.b16 %v1739_v27  ;;  %v1923_v45 = vunpack.c.l.b16 %v1740_v11  ;;  %v3469_v41 = vpop.eup %2425  ;;  %vm1098_vm10 = vweird.f32 %v3398_v0 }
 0x1c3   :  { %vm3472_vm11 = vcmp.eq.f32.partialorder %v1101_v3, 8.507059e+37  ;;  %v1104_v4 = vor.u32 1.1754944e-38, %v1103_v38  ;;  %v1140_v24 = vmul.f32 %v3413_v61, %v1139_v8  ;;  %v3477_v57 = vpop.eup %2427  ;;  %v1912_v37 = vunpack.c.l.b16 %v1659_v2  ;;  %vm1099_vm13 = vmor %vm1097_vm8, %vm1098_vm10 }
 0x1c4   :  { %v1146_v40 = vand.u32 2147483647, %v3331_v14  ;;  %v1198_v59 = vmul.f32 %v3458_v1, %v3417_v49  ;;  %v1927_v25 = vpack.c.b16 %v1925_v30, %v1924_v28  ;;  %v1913_v56 = vunpack.c.l.b16 %v1660_v32  ;;  %v3487_v38 = vpop.xlane.xlu2 %991 }
 0x1c5   :  { %v3482_v50 = vpop.eup %2429  ;;  %v1081_v3 = vadd.f32 %v3390_v31, %v1080_v48  ;;  %v1208_v39 = vand.u32 2147483648, %v3417_v49  ;;  %2433 = vrcp.f32 %v3431_v42  ;;  %v1096_v8 = vadd.f32 %v3398_v0, %v1095_v15 }
 0x1c6   :  { %v3490_v2 = vor.u32 1.1754944e-38, %v1148_v29  ;;  %v1223_v35 = vand.u32 2147483648, %v3388_v19  ;;  %1942 = vmatpush.bf16.msrb.mxu1 %v1927_v25  ;;  %v1926_v27 = vpack.c.b16 %v1923_v45, %v1922_v9  ;;  %v3496_v11 = vadd.f32 %v3413_v61, %v1140_v24 }
 0x1c7   :  { %v3493_v28 = vpop.eup %2431  ;;  %v3500_v32 = vmul.f32 %v3469_v41, %v3308_v22  ;;  %v1213_v15 = vmul.f32 %v3477_v57, %v3388_v19  ;;  %v1199_v30 = vsub.f32 1.0, %v1198_v59  ;;  %v1153_v9 = vmul.f32 %v3482_v50, %v3357_v46 }
 0x1c8   :  { %v1348_v45 = vmul.f32 %v3493_v28, %v3451_v33  ;;  %2435 = vrcp.f32 %v3487_v38  ;;  %v3524_v18 = vor.u32 1.1754944e-38, %v1208_v39  ;;  %v1221_v25 = vand.u32 2147483647, %v3388_v19 }
 0x1c9   :  { %v1163_v59 = vand.u32 2147483648, %v3357_v46  ;;  %v1916_v48 = vpack.c.b16 %v1913_v56, %v1912_v37  ;;  %vm1143_vm14 = vweird.f32 %v3413_v61  ;;  %v3529_v21 = vor.u32 1.1754944e-38, %v1223_v35 }
 0x1ca   :  { %v3518_v24 = vpop.xlane.xlu0 %979  ;;  %v1161_v34 = vand.u32 2147483647, %v3357_v46  ;;  %1943 = vmatpush.bf16.msrb.mxu1 %v1926_v27  ;;  %v1085_v62 = vsel %vm3509_vm12, %v3390_v31, %v1081_v3  ;;  %v1100_v43 = vsel %vm1099_vm13, %v3398_v0, %v1096_v8  ;;  %v1214_v55 = vsub.f32 1.0, %v1213_v15 }
 0x1cb   :  { %v3536_v39 = vpop.eup %2433  ;;  %v1090_v37 = vsel %vm3464_vm9, %v3433_v12, %v1085_v62  ;;  %v1105_v56 = vsel %vm3472_vm11, %v1104_v4, %v1100_v43  ;;  %2437 = vrcp.f32 %v3518_v24  ;;  %vm1142_vm15 = vweird.f32 %v3331_v14 }
 0x1cc   :  { %v1200_v35 = vmul.f32 %v3458_v1, %v1199_v30  ;;  %v1154_v27 = vsub.f32 1.0, %v1153_v9  ;;  %v1349_v31 = vsub.f32 1.0, %v1348_v45  ;;  %v1288_v0 = vmul.f32 %v3536_v39, %v3431_v42  ;;  %vm3614_vm8 = vmor %vm1142_vm15, %vm1143_vm14 }
 0x1cd   :  { %vm1202_vm2 = vweird.f32 %v3417_v49  ;;  %vm1203_vm3 = vweird.f32 %v3458_v1  ;;  %v3550_v16 = vor.u32 1.1754944e-38, %v1163_v59  ;;  %2307 = vmatmul.msk.bf16.vlgmr.msrb.gmra.mxu1 %vm4764_vm1, %v1916_v48  ;;  %v1091_v62 = vmul.f32 %v2991_v52, %v1090_v37  ;;  %v3576_v59 = vpop.xlane.xlu2 %982 }
 0x1ce   :  { %v1106_v12 = vmul.f32 %v3012_v26, %v1105_v56  ;;  %v3555_v58 = vpop.eup %2435  ;;  %vm1352_vm5 = vweird.f32 %v3451_v33  ;;  %v1356_v4 = vand.u32 2147483647, %v3451_v33  ;;  %v1358_v3 = vand.u32 2147483648, %v3451_v33  ;;  %vm3629_vm4 = vmor %vm1202_vm2, %vm1203_vm3 }
 0x1cf   :  { %v1289_v8 = vsub.f32 1.0, %v1288_v0  ;;  %vm3561_vm6 = vcmp.eq.f32.partialorder %v1146_v40, 8.507059e+37  ;;  %v1215_v48 = vmul.f32 %v3477_v57, %v1214_v55  ;;  %v1363_v52 = vmul.f32 %v3555_v58, %v3487_v38 }
 0x1d0   :  { %v1649_v26 = vpack.c.bf16 %v1091_v62, %v1091_v62  ;;  %v1650_v29 = vpack.c.bf16 %v1106_v12, %v1106_v12  ;;  %v3570_v30 = vadd.f32 %v3458_v1, %v1200_v35  ;;  %v1155_v9 = vmul.f32 %v3482_v50, %v1154_v27 }
 0x1d1   :  { %v1350_v40 = vmul.f32 %v3493_v28, %v1349_v31  ;;  %v1296_v45 = vand.u32 2147483647, %v3431_v42  ;;  %v3578_v55 = vpop.eup %2437  ;;  %vm3580_vm9 = vcmp.eq.f32.partialorder %v1161_v34, 8.507059e+37  ;;  %v1298_v37 = vand.u32 2147483648, %v3431_v42 }
 0x1d2   :  { %v1364_v56 = vsub.f32 1.0, %v1363_v52  ;;  %v1773_v35 = vunpack.c.l.b16 %v1649_v26  ;;  %v1774_v0 = vunpack.c.l.b16 %v1650_v29  ;;  %vm3586_vm11 = vcmp.eq.f32.partialorder %v1356_v4, 8.507059e+37 }
 0x1d3   :  { %v1359_v31 = vor.u32 1.1754944e-38, %v1358_v3  ;;  %v1290_v62 = vmul.f32 %v3536_v39, %v1289_v8  ;;  %v1303_v34 = vmul.f32 %v3578_v55, %v3518_v24  ;;  %v4813_v12 = vand.u32 2147483647, %v3417_v49 }
 0x1d4   :  { %v1216_v26 = vadd.f32 %v3477_v57, %v1215_v48  ;;  %v1365_v4 = vmul.f32 %v3555_v58, %v1364_v56  ;;  %v1371_v29 = vand.u32 2147483647, %v3487_v38  ;;  %v1776_v3 = vpack.c.b16 %v1774_v0, %v1773_v35 }
 0x1d5   :  { %vm3596_vm13 = vcmp.eq.f32.partialorder %v4813_v12, 8.507059e+37  ;;  %vm3603_vm0 = vcmp.eq.f32.partialorder %v1221_v25, 8.507059e+37  ;;  %v1351_v23 = vadd.f32 %v3493_v28, %v1350_v40  ;;  %vm1353_vm10 = vweird.f32 %v3493_v28 }
 0x1d6   :  { %v1373_v12 = vand.u32 2147483648, %v3487_v38  ;;  %v1304_v17 = vsub.f32 1.0, %v1303_v34  ;;  %v1156_v25 = vadd.f32 %v3482_v50, %v1155_v9  ;;  %vm3619_vm12 = vcmp.eq.f32.partialorder %v1296_v45, 8.507059e+37  ;;  %2302 = vmatmul.msk.bf16.gmra.mxu2 %vm4764_vm1, %v1776_v3  ;;  %vm3639_vm15 = vmor %vm1352_vm5, %vm1353_vm10 }
 0x1d7   :  { %v1299_v40 = vor.u32 1.1754944e-38, %v1298_v37  ;;  %v1291_v35 = vadd.f32 %v3536_v39, %v1290_v62  ;;  %vm1293_vm14 = vweird.f32 %v3536_v39  ;;  %v1311_v9 = vand.u32 2147483647, %v3518_v24 }
 0x1d8   :  { %v1313_v45 = vand.u32 2147483648, %v3518_v24  ;;  %v1366_v49 = vadd.f32 %v3555_v58, %v1365_v4  ;;  %vm1368_vm2 = vweird.f32 %v3555_v58  ;;  %vm3645_vm3 = vcmp.eq.f32.partialorder %v1371_v29, 8.507059e+37 }
 0x1d9   :  { %v1145_v62 = vsel %vm3614_vm8, %v3413_v61, %v3496_v11  ;;  %vm4828_vm1 = vweird.f32 %v3482_v50  ;;  %vm4829_vm5 = vweird.f32 %v3357_v46  ;;  %v1355_v34 = vsel %vm3639_vm15, %v3493_v28, %v1351_v23  ;;  %v3680_v23 = vpop.xlane.xlu0 %973 }
 0x1da   :  { %vm3657_vm10 = vmor %vm4829_vm5, %vm4828_vm1  ;;  %v1374_v4 = vor.u32 1.1754944e-38, %v1373_v12  ;;  %v1305_v29 = vmul.f32 %v3578_v55, %v1304_v17  ;;  %v1150_v3 = vsel %vm3561_vm6, %v3490_v2, %v1145_v62  ;;  %vm4832_vm8 = vweird.f32 %v3431_v42  ;;  %v3768_v61 = vpop.xlane.xlu1 %994 }
 0x1db   :  { %vm3670_vm7 = vmor %vm4832_vm8, %vm1293_vm14  ;;  %vm1307_vm1 = vweird.f32 %v3518_v24  ;;  %2439 = vrcp.f32 %v3576_v59  ;;  %v1151_v46 = vmul.f32 %v3007_v53, %v1150_v3  ;;  %v1160_v17 = vsel %vm3657_vm10, %v3482_v50, %v1156_v25  ;;  %v1707_v3 = vld [vmem:[%s4745_s2 + $0xa0] sm:$0xff] }
 0x1dc   :  { %v1295_v42 = vsel %vm3670_vm7, %v3536_v39, %v1291_v35  ;;  %vm4835_vm6 = vweird.f32 %v3487_v38  ;;  %vm3693_vm15 = vcmp.eq.f32.partialorder %v1311_v9, 8.507059e+37  ;;  %v1314_v28 = vor.u32 1.1754944e-38, %v1313_v45  ;;  %v3704_v39 = vpop.xlane.xlu2 %997 }
 0x1dd   :  { %vm3689_vm14 = vmor %vm4835_vm6, %vm1368_vm2  ;;  %v1165_v50 = vsel %vm3580_vm9, %v3550_v16, %v1160_v17  ;;  %v1205_v11 = vsel %vm3629_vm4, %v3458_v1, %v3570_v30  ;;  %vm4840_vm7 = vweird.f32 %v3477_v57  ;;  %vm4841_vm2 = vweird.f32 %v3388_v19  ;;  %v1705_v30 = vld [vmem:[%s4745_s2 + $0x90] sm:$0xff] }
 0x1de   :  { %vm3710_vm5 = vmor %vm4841_vm2, %vm4840_vm7  ;;  %v1360_v15 = vsel %vm3586_vm11, %v1359_v31, %v1355_v34  ;;  %v1370_v16 = vsel %vm3689_vm14, %v3555_v58, %v1366_v49  ;;  %vm1308_vm9 = vweird.f32 %v3578_v55  ;;  %v1166_v1 = vmul.f32 %v3025_v44, %v1165_v50  ;;  %v1706_v58 = vld [vmem:[%s4745_s2 + $0x98] sm:$0xff]  ;;  %v1709_v44 = vld [vmem:[%s4745_s2 + $0xb0] sm:$0xff] }
 0x1df   :  { %v1306_v19 = vadd.f32 %v3578_v55, %v1305_v29  ;;  %v1653_v43 = vpack.c.bf16 %v1151_v46, %v1151_v46  ;;  %v1210_v27 = vsel %vm3596_vm13, %v3524_v18, %v1205_v11  ;;  %v1220_v31 = vsel %vm3710_vm5, %v3477_v57, %v1216_v26  ;;  %v1710_v57 = vld [vmem:[%s4745_s2 + $0xb8] sm:$0xff]  ;;  %vm3755_vm4 = vmor %vm1307_vm1, %vm1308_vm9 }
 0x1e0   :  { %v1300_v12 = vsel %vm3619_vm12, %v1299_v40, %v1295_v42  ;;  %v1654_v48 = vpack.c.bf16 %v1166_v1, %v1166_v1  ;;  %v1211_v25 = vmul.f32 %v3027_v7, %v1210_v27  ;;  %v1225_v18 = vsel %vm3603_vm0, %v3529_v21, %v1220_v31  ;;  %v1708_v42 = vld [vmem:[%s4745_s2 + $0xa8] sm:$0xff] }
 0x1e1   :  { %v1375_v52 = vsel %vm3645_vm3, %v1374_v4, %v1370_v16  ;;  %v1820_v26 = vunpack.c.l.b16 %v1653_v43  ;;  %v1226_v14 = vmul.f32 %v3019_v36, %v1225_v18  ;;  %v1745_v35 = vpack.c.bf16 %v1705_v30, %v1705_v30  ;;  %v3749_v56 = vpop.eup %2439  ;;  %v3777_v2 = vpop.xlane.xlu0 %985 }
 0x1e2   :  { %v1821_v21 = vunpack.c.l.b16 %v1654_v48  ;;  %v1657_v8 = vpack.c.bf16 %v1211_v25, %v1211_v25  ;;  %v1746_v40 = vpack.c.bf16 %v1706_v58, %v1706_v58  ;;  %v1749_v9 = vpack.c.bf16 %v1709_v44, %v1709_v44 }
 0x1e3   :  { %v1310_v45 = vsel %vm3755_vm4, %v3578_v55, %v1306_v19  ;;  %v1658_v36 = vpack.c.bf16 %v1226_v14, %v1226_v14  ;;  %v1971_v37 = vunpack.c.l.b16 %v1745_v35  ;;  %v1750_v49 = vpack.c.bf16 %v1710_v57, %v1710_v57 }
 0x1e4   :  { %v1823_v0 = vpack.c.b16 %v1821_v21, %v1820_v26  ;;  %v1867_v62 = vunpack.c.l.b16 %v1657_v8  ;;  %v1972_v33 = vunpack.c.l.b16 %v1746_v40  ;;  %v2018_v34 = vunpack.c.l.b16 %v1749_v9  ;;  %v3781_v16 = vpop.xlane.xlu2 %1000  ;;  %v1703_v26 = vld [vmem:[%s4745_s2 + $0x80] sm:$0xff]  ;;  %v3811_v8 = vpop.xlane.xlu1 %1012 }
 0x1e5   :  { %v1318_v24 = vmul.f32 %v3749_v56, %v3576_v59  ;;  %v1868_v4 = vunpack.c.l.b16 %v1658_v36  ;;  %v2019_v29 = vunpack.c.l.b16 %v1750_v49  ;;  %2441 = vrcp.f32 %v3680_v23 }
 0x1e6   :  { %v1376_v55 = vmul.f32 %v3049_v20, %v1375_v52  ;;  %v1315_v46 = vsel %vm3693_vm15, %v1314_v28, %v1310_v45  ;;  %vm4846_vm0 = vcmask 261120   ;;  %v1974_v17 = vpack.c.b16 %v1972_v33, %v1971_v37  ;;  %v1704_v37 = vld [vmem:[%s4745_s2 + $0x88] sm:$0xff] }
 0x1e7   :  { %2304 = vmatmul.msk.bf16.gmra.mxu3 %vm4846_vm0, %v1823_v0  ;;  %v1259_v50 = vsub.f32 1.0, %v3500_v32  ;;  %v1870_v11 = vpack.c.b16 %v1868_v4, %v1867_v62  ;;  %v2021_v38 = vpack.c.b16 %v2019_v29, %v2018_v34  ;;  %2443 = vrcp.f32 %v3704_v39  ;;  %vm4847_vm11 = vmmov %vm4846_vm0 }
 0x1e8   :  { %v1361_v20 = vmul.f32 %v3035_v60, %v1360_v15  ;;  %v1301_v53 = vmul.f32 %v3038_v63, %v1300_v12  ;;  %1989 = vmatpush.bf16.msrb.mxu2 %v1974_v17  ;;  %v1747_v28 = vpack.c.bf16 %v1707_v3, %v1707_v3  ;;  %v1316_v1 = vmul.f32 %v3058_v10, %v1315_v46  ;;  %vm4848_vm12 = vmmov %vm4846_vm0 }
 0x1e9   :  { %v1319_v30 = vsub.f32 1.0, %v1318_v24  ;;  %2306 = vmatmul.msk.bf16.gmra.mxu0 %vm4847_vm11, %v1870_v11  ;;  %2036 = vmatpush.bf16.msrb.mxu3 %v2021_v38  ;;  %v1748_v19 = vpack.c.bf16 %v1708_v42, %v1708_v42  ;;  %v1668_v32 = vpack.c.bf16 %v1376_v55, %v1376_v55  ;;  %v1260_v31 = vmul.f32 %v3469_v41, %v1259_v50  ;;  %v3821_v49 = vpop.xlane.xlu0 %1003  ;;  %vm4855_vm5 = vmmov %vm4846_vm0 }
 0x1ea   :  { %v2016_v43 = vunpack.c.l.b16 %v1747_v28  ;;  %v1268_v58 = vand.u32 2147483648, %v3308_v22  ;;  %v1667_v15 = vpack.c.bf16 %v1361_v20, %v1361_v20  ;;  %v1663_v63 = vpack.c.bf16 %v1301_v53, %v1301_v53 }
 0x1eb   :  { %v3787_v27 = vpop.eup %2441  ;;  %v2017_v60 = vunpack.c.l.b16 %v1748_v19  ;;  %v1328_v44 = vand.u32 2147483648, %v3576_v59  ;;  %2445 = vrcp.f32 %v3777_v2  ;;  %v1664_v12 = vpack.c.bf16 %v1316_v1, %v1316_v1 }
 0x1ec   :  { %v1320_v48 = vmul.f32 %v3749_v56, %v1319_v30  ;;  %2447 = vrcp.f32 %v3768_v61  ;;  %v1266_v18 = vand.u32 2147483647, %v3308_v22  ;;  %v2007_v57 = vunpack.c.l.b16 %v1668_v32  ;;  %v3830_v24 = vpop.xlane.xlu2 %1027 }
 0x1ed   :  { %v3793_v10 = vpop.eup %2443  ;;  %v2020_v25 = vpack.c.b16 %v2017_v60, %v2016_v43  ;;  %v1273_v52 = vmul.f32 %v3787_v27, %v3680_v23  ;;  %2449 = vrcp.f32 %v3781_v16  ;;  %v3805_v14 = vadd.f32 %v3469_v41, %v1260_v31 }
 0x1ee   :  { %v3807_v35 = vor.u32 1.1754944e-38, %v1268_v58  ;;  %v1326_v7 = vand.u32 2147483647, %v3576_v59  ;;  %v1283_v21 = vand.u32 2147483648, %v3680_v23  ;;  %v2006_v40 = vunpack.c.l.b16 %v1667_v15 }
 0x1ef   :  { %2037 = vmatpush.bf16.msrb.mxu3 %v2020_v25  ;;  %v3813_v9 = vor.u32 1.1754944e-38, %v1328_v44  ;;  %v1393_v45 = vmul.f32 %v3793_v10, %v3704_v39  ;;  %v1403_v36 = vand.u32 2147483648, %v3704_v39  ;;  %v3823_v0 = vunpack.c.l.b16 %v1663_v63 }
 0x1f0   :  { %v3825_v62 = vunpack.c.l.b16 %v1664_v12  ;;  %v3828_v33 = vadd.f32 %v3749_v56, %v1320_v48  ;;  %v1743_v34 = vpack.c.bf16 %v1703_v26, %v1703_v26  ;;  %v1274_v29 = vsub.f32 1.0, %v1273_v52 }
 0x1f1   :  { %v3832_v4 = vpop.eup %2445  ;;  %v1281_v3 = vand.u32 2147483647, %v3680_v23  ;;  %v1401_v55 = vand.u32 2147483647, %v3704_v39  ;;  %v2010_v46 = vpack.c.b16 %v2007_v57, %v2006_v40  ;;  %v3838_v42 = vor.u32 1.1754944e-38, %v1283_v21 }
 0x1f2   :  { %v3836_v17 = vpop.eup %2447  ;;  %v1744_v50 = vpack.c.bf16 %v1704_v37, %v1704_v37  ;;  %v1969_v11 = vunpack.c.l.b16 %v1743_v34  ;;  %2451 = vrcp.f32 %v3821_v49  ;;  %v1394_v20 = vsub.f32 1.0, %v1393_v45  ;;  %v3877_v45 = vpop.xlane.xlu1 %1024 }
 0x1f3   :  { %v3841_v38 = vpop.eup %2449  ;;  %v3843_v53 = vor.u32 1.1754944e-38, %v1403_v36  ;;  %v1343_v28 = vand.u32 2147483648, %v3777_v2  ;;  %v1388_v1 = vand.u32 2147483648, %v3768_v61  ;;  %v1333_v30 = vmul.f32 %v3832_v4, %v3777_v2 }
 0x1f4   :  { %v1408_v19 = vmul.f32 %v3841_v38, %v3781_v16  ;;  %v1416_v32 = vand.u32 2147483647, %v3781_v16  ;;  %v1970_v43 = vunpack.c.l.b16 %v1744_v50  ;;  %v1275_v31 = vmul.f32 %v3787_v27, %v1274_v29 }
 0x1f5   :  { %v1341_v58 = vand.u32 2147483647, %v3777_v2  ;;  %v1418_v60 = vand.u32 2147483648, %v3781_v16  ;;  %2453 = vrcp.f32 %v3811_v8  ;;  %vm1263_vm13 = vweird.f32 %v3469_v41 }
 0x1f6   :  { %v1378_v15 = vmul.f32 %v3836_v17, %v3768_v61  ;;  %v1386_v63 = vand.u32 2147483647, %v3768_v61  ;;  %v1409_v44 = vsub.f32 1.0, %v1408_v19  ;;  %v1973_v12 = vpack.c.b16 %v1970_v43, %v1969_v11 }
 0x1f7   :  { %2311 = vmatmul.msk.bf16.vlgmr.msrb.gmra.mxu3 %vm4848_vm12, %v2010_v46  ;;  %v1395_v48 = vmul.f32 %v3793_v10, %v1394_v20  ;;  %v3862_v25 = vor.u32 1.1754944e-38, %v1343_v28  ;;  %vm1412_vm3 = vweird.f32 %v3781_v16  ;;  %2455 = vrcp.f32 %v3830_v24  ;;  %v3890_v20 = vpop.xlane.xlu2 %1015 }
 0x1f8   :  { %v3866_v57 = vpop.eup %2451  ;;  %vm1262_vm10 = vweird.f32 %v3308_v22  ;;  %vm1278_vm8 = vweird.f32 %v3787_v27  ;;  %v1334_v52 = vsub.f32 1.0, %v1333_v30  ;;  %v3870_v26 = vor.u32 1.1754944e-38, %v1388_v1  ;;  %1990 = vmatpush.bf16.msrb.mxu2 %v1973_v12 }
 0x1f9   :  { %v1410_v21 = vmul.f32 %v3841_v38, %v1409_v44  ;;  %vm3873_vm1 = vcmp.eq.f32.partialorder %v1416_v32, 8.507059e+37  ;;  %v3880_v36 = vadd.f32 %v3787_v27, %v1275_v31  ;;  %vm1413_vm6 = vweird.f32 %v3841_v38 }
 0x1fa   :  { %v1419_v37 = vor.u32 1.1754944e-38, %v1418_v60  ;;  %v1423_v34 = vmul.f32 %v3866_v57, %v3821_v49  ;;  %vm1277_vm14 = vweird.f32 %v3680_v23  ;;  %v1379_v29 = vsub.f32 1.0, %v1378_v15  ;;  %vm3912_vm7 = vmor %vm1412_vm3, %vm1413_vm6 }
 0x1fb   :  { %v1411_v46 = vadd.f32 %v3841_v38, %v1410_v21  ;;  %v1433_v50 = vand.u32 2147483648, %v3821_v49  ;;  %v1963_v11 = vpack.c.b16 %v3825_v62, %v3823_v0  ;;  %v3892_v28 = vpop.eup %2453  ;;  %v3895_v1 = vadd.f32 %v3793_v10, %v1395_v48  ;;  %vm3960_vm3 = vmor %vm1262_vm10, %vm1263_vm13 }
 0x1fc   :  { %v1424_v30 = vsub.f32 1.0, %v1423_v34  ;;  %v1431_v19 = vand.u32 2147483647, %v3821_v49  ;;  %2457 = vrcp.f32 %v3877_v45  ;;  %vm3901_vm15 = vcmp.eq.f32.partialorder %v1266_v18, 8.507059e+37  ;;  %vm3982_vm13 = vmor %vm1277_vm14, %vm1278_vm8 }
 0x1fd   :  { %v3906_v0 = vmul.f32 %v3832_v4, %v1334_v52  ;;  %vm1427_vm2 = vweird.f32 %v3821_v49  ;;  %v1468_v43 = vmul.f32 %v3892_v28, %v3811_v8  ;;  %v1478_v18 = vand.u32 2147483648, %v3811_v8  ;;  %2309 = vmatmul.msk.bf16.vlgmr.msrb.gmra.mxu2 %vm4855_vm5, %v1963_v11  ;;  %v3921_v31 = vpop.eup %2455 }
 0x1fe   :  { %v1415_v60 = vsel %vm3912_vm7, %v3841_v38, %v1411_v46  ;;  %v1425_v16 = vmul.f32 %v3866_v57, %v1424_v30  ;;  %v1553_v15 = vand.u32 2147483648, %v3830_v24  ;;  %2459 = vrcp.f32 %v3890_v20 }
 0x1ff   :  { %vm3931_vm9 = vcmp.eq.f32.partialorder %v1281_v3, 8.507059e+37  ;;  %v3936_v12 = vmul.f32 %v3836_v17, %v1379_v29  ;;  %v1434_v48 = vor.u32 1.1754944e-38, %v1433_v50  ;;  %v1469_v52 = vsub.f32 1.0, %v1468_v43 }
 0x200   :  { %v1543_v38 = vmul.f32 %v3921_v31, %v3830_v24  ;;  %vm1428_vm4 = vweird.f32 %v3866_v57  ;;  %vm3941_vm0 = vcmp.eq.f32.partialorder %v1431_v19, 8.507059e+37  ;;  %vm1472_vm11 = vweird.f32 %v3811_v8 }
 0x201   :  { %v1476_v3 = vand.u32 2147483647, %v3811_v8  ;;  %v1551_v34 = vand.u32 2147483647, %v3830_v24  ;;  %v1420_v29 = vsel %vm3873_vm1, %v1419_v37, %v1415_v60  ;;  %v3950_v46 = vor.u32 1.1754944e-38, %v1478_v18  ;;  %vm3997_vm7 = vmor %vm1427_vm2, %vm1428_vm4 }
 0x202   :  { %v1544_v50 = vsub.f32 1.0, %v1543_v38  ;;  %vm1547_vm12 = vweird.f32 %v3830_v24  ;;  %v1538_v11 = vand.u32 2147483648, %v3877_v45  ;;  %v3954_v30 = vpop.eup %2457  ;;  %v1426_v40 = vadd.f32 %v3866_v57, %v1425_v16  ;;  %v1714_v24 = vld [vmem:[%s4745_s2 + $0xd8] sm:$0xff] }
 0x203   :  { %v3965_v37 = vor.u32 1.1754944e-38, %v1553_v15  ;;  %vm1532_vm1 = vweird.f32 %v3877_v45  ;;  %v1536_v62 = vand.u32 2147483647, %v3877_v45  ;;  %v1470_v43 = vmul.f32 %v3892_v28, %v1469_v52 }
 0x204   :  { %vm1473_vm6 = vweird.f32 %v3892_v28  ;;  %v1545_v18 = vmul.f32 %v3921_v31, %v1544_v50  ;;  %v1265_v22 = vsel %vm3960_vm3, %v3469_v41, %v3805_v14  ;;  %v3976_v60 = vpop.eup %2459  ;;  %v3987_v15 = vmul.f32 %v3082_v47, %v1420_v29 }
 0x205   :  { %vm1548_vm10 = vweird.f32 %v3921_v31  ;;  %v1528_v52 = vmul.f32 %v3954_v30, %v3877_v45  ;;  %v1491_v41 = vand.u32 2147483647, %v3890_v20  ;;  %vm4001_vm8 = vcmp.eq.f32.partialorder %v1476_v3, 8.507059e+37 }
 0x206   :  { %vm4005_vm14 = vcmp.eq.f32.partialorder %v1551_v34, 8.507059e+37  ;;  %v4009_v38 = vor.u32 1.1754944e-38, %v1538_v11  ;;  %v1483_v29 = vmul.f32 %v3976_v60, %v3890_v20  ;;  %vm1487_vm5 = vweird.f32 %v3890_v20 }
 0x207   :  { %v1280_v49 = vsel %vm3982_vm13, %v3787_v27, %v3880_v36  ;;  %v1430_v3 = vsel %vm3997_vm7, %v3866_v57, %v1426_v40  ;;  %v1529_v34 = vsub.f32 1.0, %v1528_v52  ;;  %vm4022_vm4 = vcmp.eq.f32.partialorder %v1536_v62, 8.507059e+37  ;;  %v1721_v40 = vld [vmem:[%s4745_s2 + $0x110] sm:$0xff]  ;;  %v1722_v62 = vld [vmem:[%s4745_s2 + $0x118] sm:$0xff] }
 0x208   :  { %v1493_v11 = vand.u32 2147483648, %v3890_v20  ;;  %v1270_v19 = vsel %vm3901_vm15, %v3807_v35, %v1265_v22  ;;  %v1471_v27 = vadd.f32 %v3892_v28, %v1470_v43  ;;  %v1546_v36 = vadd.f32 %v3921_v31, %v1545_v18  ;;  %vm4058_vm15 = vmor %vm1472_vm11, %vm1473_vm6 }
 0x209   :  { %v1484_v16 = vsub.f32 1.0, %v1483_v29  ;;  %v1271_v57 = vmul.f32 %v3005_v51, %v1270_v19  ;;  %v1530_v35 = vmul.f32 %v3954_v30, %v1529_v34  ;;  %vm1533_vm7 = vweird.f32 %v3954_v30  ;;  %v1726_v19 = vld [vmem:[%s4745_s2 + $0x138] sm:$0xff] }
 0x20a   :  { %vm4044_vm3 = vcmp.eq.f32.partialorder %v1491_v41, 8.507059e+37  ;;  %v1285_v51 = vsel %vm3931_vm9, %v3838_v42, %v1280_v49  ;;  %vm1337_vm2 = vweird.f32 %v3777_v2  ;;  %v1435_v43 = vsel %vm3941_vm0, %v1434_v48, %v1430_v3  ;;  %vm4070_vm0 = vmor %vm1547_vm12, %vm1548_vm10  ;;  %v1725_v49 = vld [vmem:[%s4745_s2 + $0x130] sm:$0xff]  ;;  %v4902_v42 = vld [vmem:[#allocation7_spill] sm:$0xff] }
 0x20b   :  { %v1485_v22 = vmul.f32 %v3976_v60, %v1484_v16  ;;  %vm1488_vm13 = vweird.f32 %v3976_v60  ;;  %v1286_v44 = vmul.f32 %v3066_v13, %v1285_v51  ;;  %vm1382_vm9 = vweird.f32 %v3768_v61  ;;  %vm4086_vm12 = vmor %vm1532_vm1, %vm1533_vm7 }
 0x20c   :  { %v1531_v8 = vadd.f32 %v3954_v30, %v1530_v35  ;;  %v1661_v48 = vpack.c.bf16 %v1271_v57, %v1271_v57  ;;  %v1761_v21 = vpack.c.bf16 %v1721_v40, %v1721_v40  ;;  %v1762_v52 = vpack.c.bf16 %v1722_v62, %v1722_v62  ;;  %v4141_v35 = vpop.xlane.xlu1 %1039 }
 0x20d   :  { %vm1398_vm11 = vweird.f32 %v3793_v10  ;;  %v1475_v13 = vsel %vm4058_vm15, %v3892_v28, %v1471_v27  ;;  %v1550_v41 = vsel %vm4070_vm0, %v3921_v31, %v1546_v36  ;;  %v1486_v23 = vadd.f32 %v3976_v60, %v1485_v22  ;;  %vm4122_vm15 = vmor %vm1487_vm5, %vm1488_vm13  ;;  %v4898_v22 = vld [vmem:[#allocation6_spill] sm:$0xff] }
 0x20e   :  { %v1662_v29 = vpack.c.bf16 %v1286_v44, %v1286_v44  ;;  %vm4096_vm6 = vcmp.eq.f32.partialorder %v1326_v7, 8.507059e+37  ;;  %vm4102_vm10 = vcmp.eq.f32.partialorder %v1341_v58, 8.507059e+37  ;;  %vm4108_vm1 = vcmp.eq.f32.partialorder %v1386_v63, 8.507059e+37 }
 0x20f   :  { %v4113_v3 = vmul.f32 %v3094_v6, %v1435_v43  ;;  %v1535_v7 = vsel %vm4086_vm12, %v3954_v30, %v1531_v8  ;;  %v2159_v34 = vunpack.c.l.b16 %v1761_v21  ;;  %v2160_v63 = vunpack.c.l.b16 %v1762_v52  ;;  %v4129_v6 = vpop.xlane.xlu0 %1036 }
 0x210   :  { %vm1397_vm7 = vweird.f32 %v3704_v39  ;;  %v1490_v30 = vsel %vm4122_vm15, %v3976_v60, %v1486_v23  ;;  %v1494_v27 = vor.u32 1.1754944e-38, %v1493_v11  ;;  %v1914_v20 = vunpack.c.l.b16 %v1661_v48 }
 0x211   :  { %v1915_v36 = vunpack.c.l.b16 %v1662_v29  ;;  %v1480_v16 = vsel %vm4001_vm8, %v3950_v46, %v1475_v13  ;;  %v1555_v57 = vsel %vm4005_vm14, %v3965_v37, %v1550_v41  ;;  %v2162_v40 = vpack.c.b16 %v2160_v63, %v2159_v34  ;;  %v1713_v41 = vld [vmem:[%s4745_s2 + $0xd0] sm:$0xff] }
 0x212   :  { %v1765_v62 = vpack.c.bf16 %v1725_v49, %v1725_v49  ;;  %v1540_v51 = vsel %vm4022_vm4, %v4009_v38, %v1535_v7  ;;  %v1766_v11 = vpack.c.bf16 %v1726_v19, %v1726_v19  ;;  %2461 = vrcp.f32 %v4129_v6 }
 0x213   :  { %v1917_v60 = vpack.c.b16 %v1915_v36, %v1914_v20  ;;  %vm4149_vm5 = vcmp.eq.f32.partialorder %v1401_v55, 8.507059e+37  ;;  %v1336_v37 = vadd.f32 %v3832_v4, %v3906_v0  ;;  %v1381_v14 = vadd.f32 %v3836_v17, %v3936_v12  ;;  %2177 = vmatpush.bf16.msra.mxu2 %v2162_v40 }
 0x214   :  { %v1495_v47 = vsel %vm4044_vm3, %v1494_v27, %v1490_v30  ;;  %v2206_v38 = vunpack.c.l.b16 %v1765_v62  ;;  %vm4890_vm8 = vweird.f32 %v3749_v56  ;;  %vm4891_vm14 = vweird.f32 %v3576_v59  ;;  %v1717_v27 = vld [vmem:[%s4745_s2 + $0xf0] sm:$0xff] }
 0x215   :  { %vm4163_vm4 = vmor %vm4891_vm14, %vm4890_vm8  ;;  %v1671_v50 = vpack.c.bf16 %v3987_v15, %v3987_v15  ;;  %vm4894_vm13 = vcmask 261120   ;;  %v2207_v0 = vunpack.c.l.b16 %v1766_v11  ;;  %v1598_v12 = vand.u32 2147483648, %v4129_v6  ;;  %v1711_v11 = vld [vmem:[%s4745_s2 + $0xc0] sm:$0xff]  ;;  %v1724_v15 = vld [vmem:[%s4745_s2 + $0x128] sm:$0xff] }
 0x216   :  { %2308 = vmatmul.msk.bf16.gmra.mxu1 %vm4894_vm13, %v1917_v60  ;;  %2463 = vrcp.f32 %v4141_v35  ;;  %vm4895_vm3 = vweird.f32 %v3832_v4  ;;  %v1672_v32 = vpack.c.bf16 %v4113_v3, %v4113_v3  ;;  %v4183_v43 = vmul.f32 %v3098_v54, %v1480_v16  ;;  %v1720_v3 = vld [vmem:[%s4745_s2 + $0x108] sm:$0xff] }
 0x217   :  { %vm4176_vm0 = vmor %vm1337_vm2, %vm4895_vm3  ;;  %v4186_v18 = vmul.f32 %v3100_v5, %v1555_v57  ;;  %v4189_v44 = vmul.f32 %v4898_v22, %v1540_v51  ;;  %vm4899_vm12 = vweird.f32 %v3836_v17  ;;  %v4200_v8 = vmul.f32 %v4902_v42, %v1495_v47  ;;  %v4908_v51 = vld [vmem:[#allocation3_spill] sm:$0xff]  ;;  %v4272_v59 = vpop.xlane.xlu0 %1030 }
 0x218   :  { %vm4195_vm2 = vmor %vm1382_vm9, %vm4899_vm12  ;;  %v2209_v48 = vpack.c.b16 %v2207_v0, %v2206_v38  ;;  %v1596_v54 = vand.u32 2147483647, %v4129_v6  ;;  %v1611_v5 = vand.u32 2147483647, %v4141_v35  ;;  %vm1592_vm15 = vweird.f32 %v4129_v6  ;;  %v2462_v23 = vpop.eup %2461 }
 0x219   :  { %v4205_v21 = vor.u32 1.1754944e-38, %v1598_v12  ;;  %v1325_v61 = vsel %vm4163_vm4, %v3749_v56, %v3828_v33  ;;  %v1340_v52 = vsel %vm4176_vm0, %v3832_v4, %v1336_v37  ;;  %v1385_v13 = vsel %vm4195_vm2, %v3836_v17, %v1381_v14  ;;  %vm4237_vm9 = vmor %vm1397_vm7, %vm1398_vm11  ;;  %v1712_v12 = vld [vmem:[%s4745_s2 + $0xc8] sm:$0xff] }
 0x21a   :  { %2224 = vmatpush.bf16.msra.mxu3 %v2209_v48  ;;  %v1613_v56 = vand.u32 2147483648, %v4141_v35  ;;  %v1330_v33 = vsel %vm4096_vm6, %v3813_v9, %v1325_v61  ;;  %v1345_v4 = vsel %vm4102_vm10, %v3862_v25, %v1340_v52  ;;  %v1390_v17 = vsel %vm4108_vm1, %v3870_v26, %v1385_v13  ;;  %v4905_v9 = vld [vmem:[#allocation2_spill] sm:$0xff]  ;;  %v4906_v25 = vld [vmem:[#allocation4_spill] sm:$0xff]  ;;  %v4907_v26 = vld [vmem:[#allocation5_spill] sm:$0xff] }
 0x21b   :  { %v1588_v49 = vmul.f32 %v2462_v23, %v4129_v6  ;;  %vm1593_vm8 = vweird.f32 %v2462_v23  ;;  %vm1607_vm6 = vweird.f32 %v4141_v35  ;;  %v1331_v28 = vmul.f32 %v4905_v9, %v1330_v33  ;;  %v4284_v33 = vpop.xlane.xlu1 %1006 }
 0x21c   :  { %v1346_v45 = vmul.f32 %v4906_v25, %v1345_v4  ;;  %v4245_v7 = vpop.eup %2463  ;;  %v1391_v31 = vmul.f32 %v4907_v26, %v1390_v17  ;;  %v1400_v39 = vsel %vm4237_vm9, %v3793_v10, %v3895_v1  ;;  %v1753_v58 = vpack.c.bf16 %v1713_v41, %v1713_v41  ;;  %v1718_v1 = vld [vmem:[%s4745_s2 + $0xf8] sm:$0xff]  ;;  %vm4277_vm10 = vmor %vm1592_vm15, %vm1593_vm8 }
 0x21d   :  { %v1754_v34 = vpack.c.bf16 %v1714_v24, %v1714_v24  ;;  %v1589_v63 = vsub.f32 1.0, %v1588_v49  ;;  %v1603_v19 = vmul.f32 %v4245_v7, %v4141_v35  ;;  %vm1608_vm11 = vweird.f32 %v4245_v7  ;;  %v1719_v35 = vld [vmem:[%s4745_s2 + $0x100] sm:$0xff] }
 0x21e   :  { %v1665_v30 = vpack.c.bf16 %v1331_v28, %v1331_v28  ;;  %v1666_v20 = vpack.c.bf16 %v1346_v45, %v1346_v45  ;;  %v1405_v36 = vsel %vm4149_vm5, %v3843_v53, %v1400_v39  ;;  %v1669_v16 = vpack.c.bf16 %v1391_v31, %v1391_v31  ;;  %vm4290_vm7 = vmor %vm1607_vm6, %vm1608_vm11 }
 0x21f   :  { %v2065_v10 = vunpack.c.l.b16 %v1753_v58  ;;  %v1590_v57 = vmul.f32 %v2462_v23, %v1589_v63  ;;  %v1604_v40 = vsub.f32 1.0, %v1603_v19  ;;  %v1406_v60 = vmul.f32 %v4908_v51, %v1405_v36  ;;  %vm4913_vm5 = vmmov %vm4894_vm13  ;;  %v4916_v63 = vld [vmem:[#allocation8_spill] sm:$0xff] }
 0x220   :  { %v1961_v62 = vunpack.c.l.b16 %v1665_v30  ;;  %v1962_v37 = vunpack.c.l.b16 %v1666_v20  ;;  %v2008_v14 = vunpack.c.l.b16 %v1669_v16  ;;  %v2066_v47 = vunpack.c.l.b16 %v1754_v34  ;;  %vm4914_vm4 = vmmov %vm4913_vm5 }
 0x221   :  { %v1757_v46 = vpack.c.bf16 %v1717_v27, %v1717_v27  ;;  %v1591_v53 = vadd.f32 %v2462_v23, %v1590_v57  ;;  %v1605_v38 = vmul.f32 %v4245_v7, %v1604_v40  ;;  %v1670_v55 = vpack.c.bf16 %v1406_v60, %v1406_v60  ;;  %v1715_v60 = vld [vmem:[%s4745_s2 + $0xe0] sm:$0xff]  ;;  %vm4917_vm13 = vmmov %vm4914_vm4 }
 0x222   :  { %v1758_v0 = vpack.c.bf16 %v1718_v1, %v1718_v1  ;;  %v1964_v2 = vpack.c.b16 %v1962_v37, %v1961_v62  ;;  %v2068_v42 = vpack.c.b16 %v2066_v47, %v2065_v10  ;;  %v1751_v61 = vpack.c.bf16 %v1711_v11, %v1711_v11  ;;  %v4350_v10 = vpop.xlane.xlu0 %1045  ;;  %v1716_v11 = vld [vmem:[%s4745_s2 + $0xe8] sm:$0xff] }
 0x223   :  { %v2112_v48 = vunpack.c.l.b16 %v1757_v46  ;;  %v1595_v52 = vsel %vm4277_vm10, %v2462_v23, %v1591_v53  ;;  %v1606_v13 = vadd.f32 %v4245_v7, %v1605_v38  ;;  %v2009_v41 = vunpack.c.l.b16 %v1670_v55  ;;  %v4361_v37 = vpop.xlane.xlu1 %1033 }
 0x224   :  { %v2113_v24 = vunpack.c.l.b16 %v1758_v0  ;;  %vm1597_vm1 = vcmp.eq.f32.partialorder %v1596_v54, 8.507059e+37  ;;  %2310 = vmatmul.msk.bf16.gmra.mxu2 %vm4913_vm5, %v1964_v2  ;;  %2083 = vmatpush.bf16.msra.mxu0 %v2068_v42  ;;  %v1752_v4 = vpack.c.bf16 %v1712_v12, %v1712_v12  ;;  %v2063_v23 = vunpack.c.l.b16 %v1751_v61 }
 0x225   :  { %2465 = vrcp.f32 %v4272_v59  ;;  %v1600_v17 = vsel %vm1597_vm1, %v4205_v21, %v1595_v52  ;;  %v1610_v54 = vsel %vm4290_vm7, %v4245_v7, %v1606_v13  ;;  %v2011_v29 = vpack.c.b16 %v2009_v41, %v2008_v14  ;;  %vm4924_vm1 = vmmov %vm4914_vm4 }
 0x226   :  { %v2115_v49 = vpack.c.b16 %v2113_v24, %v2112_v48  ;;  %v1675_v9 = vpack.c.bf16 %v4183_v43, %v4183_v43  ;;  %v1680_v28 = vpack.c.bf16 %v4186_v18, %v4186_v18  ;;  %v1614_v25 = vor.u32 1.1754944e-38, %v1613_v56  ;;  %v4314_v43 = vpop.xlane.xlu2 %1042  ;;  %v4915_v56 = vld [vmem:[#allocation9_spill] sm:$0xff] }
 0x227   :  { %v2064_v45 = vunpack.c.l.b16 %v1752_v4  ;;  %v1679_v26 = vpack.c.bf16 %v4189_v44, %v4189_v44  ;;  %v1676_v21 = vpack.c.bf16 %v4200_v8, %v4200_v8  ;;  %vm1612_vm14 = vcmp.eq.f32.partialorder %v1611_v5, 8.507059e+37  ;;  %2312 = vmatmul.msk.bf16.gmra.mxu3 %vm4914_vm4, %v2011_v29  ;;  %vm4927_vm4 = vmmov %vm4924_vm1 }
 0x228   :  { %2130 = vmatpush.bf16.msra.mxu1 %v2115_v49  ;;  %2467 = vrcp.f32 %v4284_v33  ;;  %v2054_v18 = vunpack.c.l.b16 %v1672_v32  ;;  %v1601_v7 = vmul.f32 %v4915_v56, %v1600_v17  ;;  %v1615_v44 = vsel %vm1612_vm14, %v1614_v25, %v1610_v54  ;;  %v1723_v32 = vld [vmem:[%s4745_s2 + $0x120] sm:$0xff] }
 0x229   :  { %v2067_v31 = vpack.c.b16 %v2064_v45, %v2063_v23  ;;  %v2053_v5 = vunpack.c.l.b16 %v1671_v50  ;;  %v4328_v39 = vunpack.c.l.b16 %v1675_v9  ;;  %v4330_v58 = vunpack.c.l.b16 %v1680_v28 }
 0x22a   :  { %2469 = vrcp.f32 %v4314_v43  ;;  %v4342_v50 = vunpack.c.l.b16 %v1679_v26  ;;  %v4344_v34 = vunpack.c.l.b16 %v1676_v21  ;;  %v1616_v19 = vmul.f32 %v4916_v63, %v1615_v44 }
 0x22b   :  { %v4323_v8 = vpop.eup %2465  ;;  %2084 = vmatpush.bf16.msra.mxu0 %v2067_v31  ;;  %v1683_v27 = vpack.c.bf16 %v1601_v7, %v1601_v7  ;;  %v1566_v20 = vand.u32 2147483647, %v4272_v59  ;;  %v2057_v36 = vpack.c.b16 %v2054_v18, %v2053_v5  ;;  %v1759_v16 = vpack.c.bf16 %v1719_v35, %v1719_v35  ;;  %v4406_v35 = vpop.xlane.xlu0 %1018 }
 0x22c   :  { %v1558_v30 = vmul.f32 %v4323_v8, %v4272_v59  ;;  %v1568_v57 = vand.u32 2147483648, %v4272_v59  ;;  %v1760_v40 = vpack.c.bf16 %v1720_v3, %v1720_v3  ;;  %v1763_v62 = vpack.c.bf16 %v1723_v32, %v1723_v32  ;;  %v4417_v63 = vpop.xlane.xlu1 %1021 }
 0x22d   :  { %v1764_v51 = vpack.c.bf16 %v1724_v15, %v1724_v15  ;;  %v1446_v46 = vand.u32 2147483647, %v4284_v33  ;;  %v2157_v53 = vunpack.c.l.b16 %v1759_v16  ;;  %v1684_v38 = vpack.c.bf16 %v1616_v19, %v1616_v19 }
 0x22e   :  { %v4352_v1 = vpop.eup %2467  ;;  %v1559_v14 = vsub.f32 1.0, %v1558_v30  ;;  %2313 = vmatmul.msk.bf16.vlgmr.msra.gmra.mxu0 %vm4917_vm13, %v2057_v36  ;;  %v2158_v55 = vunpack.c.l.b16 %v1760_v40  ;;  %v2204_v0 = vunpack.c.l.b16 %v1763_v62  ;;  %v1755_v42 = vpack.c.bf16 %v1715_v60, %v1715_v60  ;;  %v4380_v9 = vpop.xlane.xlu2 %1009 }
 0x22f   :  { %v1438_v47 = vmul.f32 %v4352_v1, %v4284_v33  ;;  %v2205_v12 = vunpack.c.l.b16 %v1764_v51  ;;  %v1756_v48 = vpack.c.bf16 %v1716_v11, %v1716_v11  ;;  %2471 = vrcp.f32 %v4350_v10 }
 0x230   :  { %v4367_v22 = vpop.eup %2469  ;;  %v1448_v61 = vand.u32 2147483648, %v4284_v33  ;;  %v1628_v13 = vand.u32 2147483648, %v4314_v43  ;;  %v2161_v41 = vpack.c.b16 %v2158_v55, %v2157_v53  ;;  %v1560_v24 = vmul.f32 %v4323_v8, %v1559_v14 }
 0x231   :  { %v1439_v2 = vsub.f32 1.0, %v1438_v47  ;;  %v1618_v52 = vmul.f32 %v4367_v22, %v4314_v43  ;;  %v2208_v6 = vpack.c.b16 %v2205_v12, %v2204_v0  ;;  %v2110_v4 = vunpack.c.l.b16 %v1755_v42 }
 0x232   :  { %v2111_v23 = vunpack.c.l.b16 %v1756_v48  ;;  %v4375_v17 = vunpack.c.l.b16 %v1683_v27  ;;  %v4377_v54 = vor.u32 1.1754944e-38, %v1568_v57  ;;  %v1626_v49 = vand.u32 2147483647, %v4314_v43  ;;  %2178 = vmatpush.bf16.msra.mxu2 %v2161_v41 }
 0x233   :  { %v1619_v29 = vsub.f32 1.0, %v1618_v52  ;;  %v4382_v28 = vunpack.c.l.b16 %v1684_v38  ;;  %v1440_v25 = vmul.f32 %v4352_v1, %v1439_v2  ;;  %vm1442_vm3 = vweird.f32 %v4284_v33  ;;  %2225 = vmatpush.bf16.msra.mxu3 %v2208_v6 }
 0x234   :  { %v2114_v45 = vpack.c.b16 %v2111_v23, %v2110_v4  ;;  %2473 = vrcp.f32 %v4361_v37  ;;  %vm1562_vm0 = vweird.f32 %v4272_v59  ;;  %vm1563_vm12 = vweird.f32 %v4323_v8 }
 0x235   :  { %vm1443_vm2 = vweird.f32 %v4352_v1  ;;  %v4390_v26 = vor.u32 1.1754944e-38, %v1448_v61  ;;  %v4392_v21 = vor.u32 1.1754944e-38, %v1628_v13  ;;  %v4394_v18 = vpop.eup %2471  ;;  %v4397_v56 = vadd.f32 %v4323_v8, %v1560_v24 }
 0x236   :  { %vm4399_vm15 = vcmp.eq.f32.partialorder %v1446_v46, 8.507059e+37  ;;  %v1620_v44 = vmul.f32 %v4367_v22, %v1619_v29  ;;  %2131 = vmatpush.bf16.msra.mxu1 %v2114_v45  ;;  %v1643_v31 = vand.u32 2147483648, %v4350_v10  ;;  %2475 = vrcp.f32 %v4380_v9 }
 0x237   :  { %vm4408_vm9 = vcmp.eq.f32.partialorder %v1566_v20, 8.507059e+37  ;;  %vm1623_vm8 = vweird.f32 %v4367_v22  ;;  %v1633_v3 = vmul.f32 %v4394_v18, %v4350_v10  ;;  %v1641_v32 = vand.u32 2147483647, %v4350_v10 }
 0x238   :  { %v1581_v15 = vand.u32 2147483647, %v4361_v37  ;;  %v1441_v19 = vadd.f32 %v4352_v1, %v1440_v25  ;;  %vm1622_vm6 = vweird.f32 %v4314_v43  ;;  %v1583_v30 = vand.u32 2147483648, %v4361_v37 }
 0x239   :  { %v1463_v27 = vand.u32 2147483648, %v4380_v9  ;;  %v2104_v20 = vpack.c.b16 %v4344_v34, %v4328_v39  ;;  %v1634_v36 = vsub.f32 1.0, %v1633_v3  ;;  %vm1577_vm11 = vweird.f32 %v4361_v37 }
 0x23a   :  { %v1461_v16 = vand.u32 2147483647, %v4380_v9  ;;  %v2151_v57 = vpack.c.b16 %v4330_v58, %v4342_v50  ;;  %2477 = vrcp.f32 %v4406_v35  ;;  %v4430_v40 = vpop.eup %2473  ;;  %v4433_v62 = vadd.f32 %v4367_v22, %v1620_v44  ;;  %v4944_v44 = vld [vmem:[#allocation11_spill] sm:$0xff] }
 0x23b   :  { %vm4435_vm10 = vcmp.eq.f32.partialorder %v1626_v49, 8.507059e+37  ;;  %v4439_v39 = vor.u32 1.1754944e-38, %v1643_v31  ;;  %2315 = vmatmul.msk.bf16.vlgmr.msra.gmra.mxu1 %vm4924_vm1, %v2104_v20  ;;  %v1508_v34 = vand.u32 2147483648, %v4406_v35  ;;  %2479 = vrcp.f32 %v4417_v63  ;;  %vm4463_vm1 = vmor %vm1442_vm3, %vm1443_vm2 }
 0x23c   :  { %v1635_v58 = vmul.f32 %v4394_v18, %v1634_v36  ;;  %v1573_v50 = vmul.f32 %v4430_v40, %v4361_v37  ;;  %vm4448_vm5 = vcmp.eq.f32.partialorder %v1581_v15, 8.507059e+37  ;;  %vm1457_vm14 = vweird.f32 %v4380_v9  ;;  %2317 = vmatmul.msk.bf16.vlgmr.msra.gmra.mxu2 %vm4927_vm4, %v2151_v57  ;;  %v4454_v11 = vpop.eup %2475  ;;  %vm4479_vm3 = vmor %vm1562_vm0, %vm1563_vm12 }
 0x23d   :  { %v1584_v14 = vor.u32 1.1754944e-38, %v1583_v30  ;;  %v1464_v47 = vor.u32 1.1754944e-38, %v1463_v27  ;;  %v1506_v46 = vand.u32 2147483647, %v4406_v35  ;;  %v1523_v53 = vand.u32 2147483648, %v4417_v63 }
 0x23e   :  { %v1574_v55 = vsub.f32 1.0, %v1573_v50  ;;  %vm1578_vm4 = vweird.f32 %v4430_v40  ;;  %v1453_v0 = vmul.f32 %v4454_v11, %v4380_v9  ;;  %vm4470_vm13 = vcmp.eq.f32.partialorder %v1461_v16, 8.507059e+37  ;;  %v4949_v16 = vld [vmem:[#allocation12_spill] sm:$0xff] }
 0x23f   :  { %v1521_v2 = vand.u32 2147483647, %v4417_v63  ;;  %v1636_v42 = vadd.f32 %v4394_v18, %v1635_v58  ;;  %vm4484_vm2 = vcmp.eq.f32.partialorder %v1641_v32, 8.507059e+37  ;;  %vm1502_vm7 = vweird.f32 %v4406_v35  ;;  %v4950_v58 = vld [vmem:[#allocation15_spill] sm:$0xff] }
 0x240   :  { %v4489_v61 = vor.u32 1.1754944e-38, %v1508_v34  ;;  %v2198_v52 = vpack.c.b16 %v4382_v28, %v4375_v17  ;;  %v1445_v59 = vsel %vm4463_vm1, %v4352_v1, %v1441_v19  ;;  %v2478_v13 = vpop.eup %2477  ;;  %v1575_v41 = vmul.f32 %v4430_v40, %v1574_v55  ;;  %v1898_v34 = vpop.f32.mrf.mxu0 }
 0x241   :  { %v1454_v24 = vsub.f32 1.0, %v1453_v0  ;;  %v1450_v6 = vsel %vm4399_vm15, %v4390_v26, %v1445_v59  ;;  %v1565_v4 = vsel %vm4479_vm3, %v4323_v8, %v4397_v56  ;;  %v2480_v23 = vpop.eup %2479  ;;  %vm1458_vm12 = vweird.f32 %v4454_v11  ;;  %vm4519_vm15 = vmor %vm1622_vm6, %vm1623_vm8  ;;  %v4943_v56 = vld [vmem:[#allocation10_spill] sm:$0xff]  ;;  %v4956_v59 = vld [vmem:[#allocation17_spill] sm:$0xff] }
 0x242   :  { %v1498_v1 = vmul.f32 %v2478_v13, %v4406_v35  ;;  %vm4507_vm1 = vcmp.eq.f32.partialorder %v1506_v46, 8.507059e+37  ;;  %v1524_v29 = vor.u32 1.1754944e-38, %v1523_v53  ;;  %vm4938_vm0 = vcmask 261120   ;;  %vm1459_vm6 = vmor %vm1457_vm14, %vm1458_vm12  ;;  %v4953_v35 = vld [vmem:[#allocation14_spill] sm:$0xff] }
 0x243   :  { %2319 = vmatmul.msk.bf16.vlgmr.msra.gmra.mxu3 %vm4938_vm0, %v2198_v52  ;;  %v1570_v49 = vsel %vm4408_vm9, %v4377_v54, %v1565_v4  ;;  %v1576_v28 = vadd.f32 %v4430_v40, %v1575_v41  ;;  %v1455_v25 = vmul.f32 %v4454_v11, %v1454_v24  ;;  %vm1503_vm3 = vweird.f32 %v2478_v13  ;;  %v1851_v54 = vpop.f32.mrf.mxu3  ;;  %vm1579_vm9 = vmor %vm1577_vm11, %vm1578_vm4  ;;  %v1804_v41 = vpop.f32.mrf.mxu2 }
 0x244   :  { %v1513_v45 = vmul.f32 %v2480_v23, %v4417_v63  ;;  %vm4526_vm0 = vcmp.eq.f32.partialorder %v1521_v2, 8.507059e+37  ;;  %v1499_v43 = vsub.f32 1.0, %v1498_v1  ;;  %v1451_v7 = vmul.f32 %v4943_v56, %v1450_v6  ;;  %v4954_v2 = vld [vmem:[#allocation16_spill] sm:$0xff] }
 0x245   :  { %v1571_v31 = vmul.f32 %v4944_v44, %v1570_v49  ;;  %v1625_v5 = vsel %vm4519_vm15, %v4367_v22, %v4433_v62  ;;  %vm4945_vm8 = vcmask 15360   ;;  %v1456_v3 = vadd.f32 %v4454_v11, %v1455_v25 }
 0x246   :  { %2241 = vst.msk [vmem:[%s4746_s3 + $0x20] sm:$0xff] %vm4945_vm8, %v1851_v54  ;;  %v1514_v32 = vsub.f32 1.0, %v1513_v45  ;;  %v1580_v37 = vsel %vm1579_vm9, %v4430_v40, %v1576_v28  ;;  %v1630_v15 = vsel %vm4435_vm10, %v4392_v21, %v1625_v5  ;;  %v1500_v22 = vmul.f32 %v2478_v13, %v1499_v43  ;;  %v4948_v21 = vld [vmem:[#allocation13_spill] sm:$0xff]  ;;  %vm1504_vm10 = vmor %vm1502_vm7, %vm1503_vm3 }
 0x247   :  { %vm1518_vm11 = vweird.f32 %v2480_v23  ;;  %v1585_v19 = vsel %vm4448_vm5, %v1584_v14, %v1580_v37  ;;  %v1681_v30 = vpack.c.bf16 %v1571_v31, %v1571_v31  ;;  %vm4946_vm4 = vweird.f32 %v4394_v18  ;;  %vm4951_vm5 = vmmov %vm4945_vm8 }
 0x248   :  { %vm4947_vm15 = vweird.f32 %v4350_v10  ;;  %v1460_v27 = vsel %vm1459_vm6, %v4454_v11, %v1456_v3  ;;  %v1515_v20 = vmul.f32 %v2480_v23, %v1514_v32  ;;  %v1586_v36 = vmul.f32 %v4948_v21, %v1585_v19  ;;  %2245 = vst.msk [vmem:[%s4746_s3 + $0x40] sm:$0xff] %vm4951_vm5, %v1898_v34  ;;  %vm4955_vm7 = vmmov %vm4951_vm5 }
 0x249   :  { %vm1639_vm9 = vmor %vm4947_vm15, %vm4946_vm4  ;;  %v1631_v57 = vmul.f32 %v4949_v16, %v1630_v15  ;;  %v1501_v9 = vadd.f32 %v2478_v13, %v1500_v22  ;;  %v1465_v40 = vsel %vm4470_vm13, %v1464_v47, %v1460_v27  ;;  %v1673_v62 = vpack.c.bf16 %v1451_v7, %v1451_v7 }
 0x24a   :  { %v1640_v51 = vsel %vm1639_vm9, %v4394_v18, %v1636_v42  ;;  %v1516_v10 = vadd.f32 %v2480_v23, %v1515_v20  ;;  %v1466_v50 = vmul.f32 %v4950_v58, %v1465_v40  ;;  %v1682_v60 = vpack.c.bf16 %v1586_v36, %v1586_v36  ;;  %v1945_v28 = vpop.f32.mrf.mxu1 }
 0x24b   :  { %v1645_v11 = vsel %vm4484_vm2, %v4439_v39, %v1640_v51  ;;  %v1505_v14 = vsel %vm1504_vm10, %v2478_v13, %v1501_v9  ;;  %vm4952_vm14 = vweird.f32 %v4417_v63  ;;  %v2149_v18 = vunpack.c.l.b16 %v1681_v30  ;;  %v1853_v0 = vpop.f32.mrf.mxu3  ;;  %vm4957_vm2 = vmmov %vm4951_vm5  ;;  %v1806_v25 = vpop.f32.mrf.mxu2 }
 0x24c   :  { %vm1519_vm13 = vmor %vm4952_vm14, %vm1518_vm11  ;;  %v1646_v47 = vmul.f32 %v4953_v35, %v1645_v11  ;;  %v1685_v46 = vpack.c.bf16 %v1631_v57, %v1631_v57  ;;  %v1674_v38 = vpack.c.bf16 %v1466_v50, %v1466_v50  ;;  %v2150_v55 = vunpack.c.l.b16 %v1682_v60  ;;  %2242 = vst.msk [vmem:[%s4746_s3 + $0x28] sm:$0xff] %vm4955_vm7, %v1853_v0 }
 0x24d   :  { %v1520_v53 = vsel %vm1519_vm13, %v2480_v23, %v1516_v10  ;;  %v1510_v39 = vsel %vm4507_vm1, %v4489_v61, %v1505_v14  ;;  %v2055_v63 = vunpack.c.l.b16 %v1673_v62  ;;  %2237 = vst.msk [vmem:[%s4746_s3] sm:$0xff] %vm4957_vm2, %v1804_v41  ;;  %vm4958_vm12 = vcmask 261120   ;;  %vm4960_vm3 = vmmov %vm4957_vm2 }
 0x24e   :  { %v1686_v12 = vpack.c.bf16 %v1646_v47, %v1646_v47  ;;  %v1511_v33 = vmul.f32 %v4954_v2, %v1510_v39  ;;  %v1525_v42 = vsel %vm4526_vm0, %v1524_v29, %v1520_v53  ;;  %v2056_v48 = vunpack.c.l.b16 %v1674_v38  ;;  %v1900_v29 = vpop.f32.mrf.mxu0  ;;  %vm4959_vm1 = vmmov %vm4958_vm12 }
 0x24f   :  { %v2152_v52 = vpack.c.b16 %v2150_v55, %v2149_v18  ;;  %v1526_v13 = vmul.f32 %v4956_v59, %v1525_v42  ;;  %v2196_v24 = vunpack.c.l.b16 %v1685_v46  ;;  %2246 = vst.msk [vmem:[%s4746_s3 + $0x48] sm:$0xff] %vm4960_vm3, %v1900_v29  ;;  %vm4961_vm0 = vmmov %vm4959_vm1 }
 0x250   :  { %v2197_v61 = vunpack.c.l.b16 %v1686_v12  ;;  %v1677_v6 = vpack.c.bf16 %v1511_v33, %v1511_v33  ;;  %v2058_v4 = vpack.c.b16 %v2056_v48, %v2055_v63  ;;  %vm4962_vm8 = vmmov %vm4961_vm0 }
 0x251   :  { %2318 = vmatmul.msk.bf16.gmra.mxu2 %vm4958_vm12, %v2152_v52  ;;  %v1678_v23 = vpack.c.bf16 %v1526_v13, %v1526_v13  ;;  %vm4963_vm6 = vmmov %vm4957_vm2 }
 0x252   :  { %v2199_v1 = vpack.c.b16 %v2197_v61, %v2196_v24  ;;  %v2102_v17 = vunpack.c.l.b16 %v1677_v6  ;;  %2314 = vmatmul.msk.bf16.gmra.mxu0 %vm4959_vm1, %v2058_v4  ;;  %2249 = vst.msk [vmem:[%s4746_s3 + $0x60] sm:$0xff] %vm4963_vm6, %v1945_v28  ;;  %vm4964_vm11 = vmmov %vm4957_vm2  ;;  %v1947_v45 = vpop.f32.mrf.mxu1 }
 0x253   :  { %v2103_v49 = vunpack.c.l.b16 %v1678_v23  ;;  %2238 = vst.msk [vmem:[%s4746_s3 + $0x8] sm:$0xff] %vm4964_vm11, %v1806_v25  ;;  %vm4965_vm4 = vmmov %vm4957_vm2 }
 0x254   :  { %2320 = vmatmul.msk.bf16.gmra.mxu3 %vm4961_vm0, %v2199_v1  ;;  %2250 = vst.msk [vmem:[%s4746_s3 + $0x68] sm:$0xff] %vm4965_vm4, %v1947_v45  ;;  %vm4966_vm15 = vmmov %vm4957_vm2 }
 0x255   :  { %v2105_v8 = vpack.c.b16 %v2103_v49, %v2102_v17  ;;  %vm4967_vm9 = vmmov %vm4957_vm2 }
 0x256   :  { %vm4968_vm10 = vmmov %vm4957_vm2 }
 0x257   :  { %2316 = vmatmul.msk.bf16.gmra.mxu1 %vm4962_vm8, %v2105_v8  ;;  %vm4969_vm5 = vmmov %vm4957_vm2 }
 0x258   :  { %vm4970_vm14 = vmmov %vm4957_vm2 }
 0x259   :  { %v1809_v26 = vpop.f32.mrf.mxu2  ;;  %vm4971_vm13 = vmmov %vm4957_vm2 }
 0x25a   :  { %2239 = vst.msk [vmem:[%s4746_s3 + $0x10] sm:$0xff] %vm4966_vm15, %v1809_v26  ;;  %vm4972_vm7 = vmmov %vm4957_vm2 }
 0x25b   :  { %vm4973_vm12 = vmmov %vm4957_vm2 }
 0x25c   :  { %vm4974_vm1 = vmmov %vm4957_vm2 }
 0x25d   :  { %vm4975_vm3 = vmmov %vm4974_vm1 }
 0x25e   :  { %vm4976_vm0 = vmmov %vm4974_vm1 }
 0x25f   :  { %vm4977_vm8 = vmmov %vm4976_vm0 }
 0x260   :  { %vm4978_vm6 = vmmov %vm4976_vm0 }
 0x261   :  { %v1811_v54 = vpop.f32.mrf.mxu2  ;;  %vm4979_vm11 = vmmov %vm4976_vm0 }
 0x262   :  { %2240 = vst.msk [vmem:[%s4746_s3 + $0x18] sm:$0xff] %vm4967_vm9, %v1811_v54  ;;  %vm4980_vm4 = vmmov %vm4976_vm0 }
 0x263   :  { %vm4981_vm15 = vmmov %vm4976_vm0 }
 0x264   :  { %vm4982_vm9 = vmmov %vm4976_vm0 }
 0x266   :  { %v1903_v43 = vpop.f32.mrf.mxu0 }
 0x267   :  { %2247 = vst.msk [vmem:[%s4746_s3 + $0x50] sm:$0xff] %vm4968_vm10, %v1903_v43  ;;  %vm4983_vm10 = vmmov %vm4976_vm0 }
 0x26a   :  { %v1856_v56 = vpop.f32.mrf.mxu3 }
 0x26b   :  { %2243 = vst.msk [vmem:[%s4746_s3 + $0x30] sm:$0xff] %vm4969_vm5, %v1856_v56  ;;  %vm4984_vm5 = vmmov %vm4976_vm0 }
 0x26e   :  { %v1905_v7 = vpop.f32.mrf.mxu0 }
 0x26f   :  { %2248 = vst.msk [vmem:[%s4746_s3 + $0x58] sm:$0xff] %vm4970_vm14, %v1905_v7  ;;  %vm4985_vm14 = vmmov %vm4976_vm0 }
 0x272   :  { %v1858_v44 = vpop.f32.mrf.mxu3 }
 0x273   :  { %2244 = vst.msk [vmem:[%s4746_s3 + $0x38] sm:$0xff] %vm4971_vm13, %v1858_v44  ;;  %vm4986_vm13 = vmmov %vm4976_vm0 }
 0x27a   :  { %v2039_v31 = vpop.f32.mrf.mxu3 }
 0x27b   :  { %2257 = vst.msk [vmem:[%s4746_s3 + $0xa0] sm:$0xff] %vm4972_vm7, %v2039_v31  ;;  %vm4987_vm7 = vmmov %vm4976_vm0 }
 0x280   :  { %v1992_v5 = vpop.f32.mrf.mxu2 }
 0x281   :  { %2253 = vst.msk [vmem:[%s4746_s3 + $0x80] sm:$0xff] %vm4957_vm2, %v1992_v5  ;;  %vm4988_vm2 = vmmov %vm4976_vm0 }
 0x282   :  { %v2041_v3 = vpop.f32.mrf.mxu3 }
 0x283   :  { %2258 = vst.msk [vmem:[%s4746_s3 + $0xa8] sm:$0xff] %vm4973_vm12, %v2041_v3  ;;  %vm4989_vm12 = vmmov %vm4976_vm0 }
 0x288   :  { %v1994_v32 = vpop.f32.mrf.mxu2 }
 0x289   :  { %2254 = vst.msk [vmem:[%s4746_s3 + $0x88] sm:$0xff] %vm4974_vm1, %v1994_v32  ;;  %vm4990_vm1 = vmmov %vm4976_vm0 }
 0x293   :  { %v1950_v37 = vpop.f32.mrf.mxu1 }
 0x294   :  { %2251 = vst.msk [vmem:[%s4746_s3 + $0x70] sm:$0xff] %vm4975_vm3, %v1950_v37  ;;  %vm4991_vm3 = vmmov %vm4976_vm0 }
 0x29b   :  { %v1952_v15 = vpop.f32.mrf.mxu1 }
 0x29c   :  { %2252 = vst.msk [vmem:[%s4746_s3 + $0x78] sm:$0xff] %vm4976_vm0, %v1952_v15 }
 0x2a7   :  { %v1997_v22 = vpop.f32.mrf.mxu2 }
 0x2a8   :  { %2255 = vst.msk [vmem:[%s4746_s3 + $0x90] sm:$0xff] %vm4977_vm8, %v1997_v22  ;;  %vm4992_vm8 = vmmov %vm4976_vm0 }
 0x2aa   :  { %v2044_v19 = vpop.f32.mrf.mxu3 }
 0x2ab   :  { %2259 = vst.msk [vmem:[%s4746_s3 + $0xb0] sm:$0xff] %vm4978_vm6, %v2044_v19  ;;  %v2086_v30 = vpop.f32.mrf.mxu0  ;;  %vm4993_vm6 = vmmov %vm4976_vm0 }
 0x2ac   :  { %2261 = vst.msk [vmem:[%s4746_s3 + $0xc0] sm:$0xff] %vm4979_vm11, %v2086_v30  ;;  %vm4994_vm11 = vmmov %vm4976_vm0 }
 0x2af   :  { %v1999_v27 = vpop.f32.mrf.mxu2 }
 0x2b0   :  { %2256 = vst.msk [vmem:[%s4746_s3 + $0x98] sm:$0xff] %vm4980_vm4, %v1999_v27  ;;  %vm4995_vm4 = vmmov %vm4976_vm0 }
 0x2b2   :  { %v2046_v20 = vpop.f32.mrf.mxu3 }
 0x2b3   :  { %2260 = vst.msk [vmem:[%s4746_s3 + $0xb8] sm:$0xff] %vm4981_vm15, %v2046_v20  ;;  %v2088_v21 = vpop.f32.mrf.mxu0 }
 0x2b4   :  { %2262 = vst.msk [vmem:[%s4746_s3 + $0xc8] sm:$0xff] %vm4982_vm9, %v2088_v21 }
 0x2b8   :  { %v2133_v36 = vpop.f32.mrf.mxu1 }
 0x2b9   :  { %2265 = vst.msk [vmem:[%s4746_s3 + $0xe0] sm:$0xff] %vm4983_vm10, %v2133_v36 }
 0x2bf   :  { %v2180_v16 = vpop.f32.mrf.mxu2 }
 0x2c0   :  { %2269 = vst.msk [vmem:[%s4746_s3 + $0x100] sm:$0xff] %vm4984_vm5, %v2180_v16  ;;  %v2135_v57 = vpop.f32.mrf.mxu1 }
 0x2c1   :  { %2266 = vst.msk [vmem:[%s4746_s3 + $0xe8] sm:$0xff] %vm4985_vm14, %v2135_v57 }
 0x2c6   :  { %v2227_v9 = vpop.f32.mrf.mxu3 }
 0x2c7   :  { %2273 = vst.msk [vmem:[%s4746_s3 + $0x120] sm:$0xff] %vm4986_vm13, %v2227_v9  ;;  %v2182_v40 = vpop.f32.mrf.mxu2 }
 0x2c8   :  { %2270 = vst.msk [vmem:[%s4746_s3 + $0x108] sm:$0xff] %vm4987_vm7, %v2182_v40 }
 0x2ce   :  { %v2229_v62 = vpop.f32.mrf.mxu3 }
 0x2cf   :  { %2274 = vst.msk [vmem:[%s4746_s3 + $0x128] sm:$0xff] %vm4988_vm2, %v2229_v62  ;;  %v2091_v51 = vpop.f32.mrf.mxu0 }
 0x2d0   :  { %2263 = vst.msk [vmem:[%s4746_s3 + $0xd0] sm:$0xff] %vm4989_vm12, %v2091_v51 }
 0x2d4   :  { %v2185_v34 = vpop.f32.mrf.mxu2  ;;  %v2138_v10 = vpop.f32.mrf.mxu1 }
 0x2d5   :  { %2271 = vst.msk [vmem:[%s4746_s3 + $0x110] sm:$0xff] %vm4990_vm1, %v2185_v34 }
 0x2d6   :  { %2267 = vst.msk [vmem:[%s4746_s3 + $0xf0] sm:$0xff] %vm4991_vm3, %v2138_v10 }
 0x2d7   :  { %v2232_v58 = vpop.f32.mrf.mxu3  ;;  %v2093_v50 = vpop.f32.mrf.mxu0 }
 0x2d8   :  { %2275 = vst.msk [vmem:[%s4746_s3 + $0x130] sm:$0xff] %vm4976_vm0, %v2232_v58 }
 0x2d9   :  { %2264 = vst.msk [vmem:[%s4746_s3 + $0xd8] sm:$0xff] %vm4992_vm8, %v2093_v50 }
 0x2dc   :  { %v2187_v60 = vpop.f32.mrf.mxu2  ;;  %v2140_v11 = vpop.f32.mrf.mxu1 }
 0x2dd   :  { %2272 = vst.msk [vmem:[%s4746_s3 + $0x118] sm:$0xff] %vm4993_vm6, %v2187_v60 }
 0x2de   :  { %2268 = vst.msk [vmem:[%s4746_s3 + $0xf8] sm:$0xff] %vm4994_vm11, %v2140_v11 }
 0x2df   :  { %v2234_v14 = vpop.f32.mrf.mxu3 }
 0x2e0   :  { %2276 = vst.msk [vmem:[%s4746_s3 + $0x138] sm:$0xff] %vm4995_vm4, %v2234_v14 }

// kernel: enformer_forward.21
= control target key start
LH: loop header
LB: loop body
LE: loop exit
PB: predicated region body
PF: predicated region fallthrough
CT: control target
= control target key end

     0   :  { %s424_s12 = smov 0   ;;  %s469_s0 = inlined_call_operand.vmem [shape: f32[2,12,32], index: 0, kind: input, shape index: {}]   ;;  %s470_s1 = inlined_call_operand.vmem [shape: bf16[96,64], index: 1, kind: input, shape index: {}]   ;;  %s471_s2 = inlined_call_operand.vmem [shape: f32[1,64], index: 2, kind: input, shape index: {}]   ;;  %s472_s3 = inlined_call_operand.vmem [shape: f32[2,10,64], index: 3, kind: output, shape index: {}]  }
   0x1 LB: > { %s329_s13 = sadd.s32 4294967295, %s400_s12   ;;  %p333_p0 = scmp.ge.s32.totalorder %s400_s12, 1  ;;  %s400_s12 = sphi %s424_s12, %s13_s12  }
   0x2   : > { %p137_p1 = scmp.lt.s32.totalorder %s400_s12, 3 }
   0x4   : > { %p138_p2 = pnand %p333_p0, %p137_p1 }
   0x5   : > { %p161_p3 = scmp.lt.s32.totalorder (!%p138_p2), %s329_s13, 1  ;;  %s402_s24 = smov (!%p138_p2), 32  }
   0x6   : > { %141 = sbr.rel (%p138_p2) target bundleno = 282 (0x11a), region = 32  ;;  %s403_s25 = smov (!%p138_p2), 64  }
   0xb   : > { %v372_v0 = vld [vmem:[%s470_s1 + $0x28] sm:$0xff]  ;;  %s474_s13 = smov (!%p161_p3, %s329_s13), 1  ;;  %v371_v1 = vld [vmem:[%s470_s1 + $0x20] sm:$0xff]  ;;  %v370_v4 = vld [vmem:[%s470_s1 + $0x18] sm:$0xff]  ;;  %vm194_vm0 = vcmask 261120   ;;  %vm197_vm1 = vcmask 523264  }
   0xc   : > { %259 = vmatpush.bf16.msra.mxu0 %v372_v0  ;;  %s365_s18 = sshll.u32 %s474_s13, 4  ;;  %v369_v9 = vld [vmem:[%s470_s1 + $0x10] sm:$0xff]  ;;  %v368_v10 = vld [vmem:[%s470_s1 + $0x8] sm:$0xff]  ;;  %v367_v11 = vld [vmem:[%s470_s1] sm:$0xff]  ;;  %vm253_vm2 = vcmask 785408   ;;  %vm272_vm3 = vcmask 517120  }
   0xd   : > { %s165_s21 = scalar_lea.vmem %s469_s0, %s365_s18  ;;  %v393_v25 = vld [vmem:[%s471_s2] ss:$0 sm:$0xff]  ;;  %s170_s9 = scalar_lea.vmem %s472_s3, %s365_s18 }
   0xe   : > { %v174_v2 = vld [vmem:[%s165_s21 + $0x1] sm:$0xff]  ;;  %v175_v3 = vld [vmem:[%s165_s21 + $0x9] sm:$0x3] }
   0xf   : > { %v383_v5 = vpack.i.bf16 %v175_v3, %v174_v2  ;;  %v176_v6 = vld [vmem:[%s165_s21 + $0x2] sm:$0xff]  ;;  %v177_v7 = vld [vmem:[%s165_s21 + $0xa] sm:$0x3] }
  0x10   : > { %260 = vmatpush.bf16.msra.mxu0 %v371_v1  ;;  %v388_v8 = vpack.i.bf16 %v177_v7, %v176_v6  ;;  %v172_v15 = vld [vmem:[%s165_s21] sm:$0xff]  ;;  %v173_v16 = vld [vmem:[%s165_s21 + $0x8] sm:$0x3] }
  0x11   : > { %384 = vrot.lane.b32.xlu0 %v383_v5, %s402_s24 }
  0x14   : > { %261 = vmatpush.bf16.msra.mxu0 %v370_v4 }
  0x18   : > { %262 = vmatpush.bf16.msra.mxu0 %v369_v9 }
  0x19   : > { %389 = vrot.lane.b32.xlu0 %v388_v8, %s403_s25 }
  0x1c   : > { %263 = vmatpush.bf16.msra.mxu0 %v368_v10 }
  0x20   : > { %264 = vmatpush.bf16.msra.mxu0 %v367_v11 }
  0x83   : > { %v385_v12 = vpop.permute.xlu0 %384 }
  0x84   : > { %v387_v13 = vunpack.i.h.bf16 %v385_v12  ;;  %v386_v14 = vunpack.i.l.bf16 %v385_v12 }
  0x86   : > { %v195_v20 = vsel %vm194_vm0, %v172_v15, %v386_v14  ;;  %v196_v21 = vsel %vm194_vm0, %v173_v16, %v387_v13 }
  0x8b   : > { %v390_v17 = vpop.permute.xlu0 %389 }
  0x8c   : > { %v392_v18 = vunpack.i.h.bf16 %v390_v17  ;;  %v391_v19 = vunpack.i.l.bf16 %v390_v17 }
  0x8e   : > { %v198_v22 = vsel %vm197_vm1, %v195_v20, %v391_v19  ;;  %v199_v23 = vsel %vm197_vm1, %v196_v21, %v392_v18 }
  0x8f   : > { %v200_v24 = vpack.c.bf16 %v199_v23, %v198_v22 }
  0x91   : > { %362 = vmatmul.msk.bf16.vlgmr.msra.gmra.mxu0 %vm253_vm2, %v200_v24 }
 0x10e   : > { %v266_v26 = vpop.f32.mrf.mxu0 }
 0x10f   : > { %v267_v27 = vadd.f32 %v393_v25, %v266_v26 }
 0x111   : > { %271 = vst.msk [vmem:[%s170_s9] sm:$0xff] %vm197_vm1, %v267_v27 }
 0x116   : > { %v268_v28 = vpop.f32.mrf.mxu0 }
 0x117   : > { %v269_v29 = vadd.f32 %v393_v25, %v268_v28 }
 0x119   : > { %273 = vst.msk [vmem:[%s170_s9 + $0x8] sm:$0x3] %vm272_vm3, %v269_v29 }
 0x11a PF: > { %s13_s12 = sadd.s32 1, %s400_s12  }
 0x11b   : > { %p10_p4 = scmp.ge.s32.totalorder %s13_s12, 4  }
 0x11d   :  { %12 = sbr.rel (!%p10_p4) target bundleno = 1 (0x1), region = 62 }

// kernel: enformer_forward.20
= control target key start
LH: loop header
LB: loop body
LE: loop exit
PB: predicated region body
PF: predicated region fallthrough
CT: control target
= control target key end

     0   :  { %s650_s21 = smov 0   ;;  %s728_s0 = inlined_call_operand.vmem [shape: f32[2,12,64], index: 0, kind: input, shape index: {}]   ;;  %s729_s1 = inlined_call_operand.vmem [shape: bf16[192,32], index: 1, kind: input, shape index: {}]   ;;  %s730_s2 = inlined_call_operand.vmem [shape: f32[1,32], index: 2, kind: input, shape index: {}]   ;;  %s731_s3 = inlined_call_operand.vmem [shape: f32[2,10,32], index: 3, kind: input, shape index: {}]   ;;  %s732_s4 = inlined_call_operand.vmem [shape: f32[1,32], index: 4, kind: input, shape index: {}]   ;;  %s733_s5 = inlined_call_operand.vmem [shape: f32[1,32], index: 5, kind: input, shape index: {}]   ;;  %s734_s6 = inlined_call_operand.vmem [shape: f32[2,10,32], index: 6, kind: output, shape index: {}]  }
   0x1 LB: > { %s512_s22 = sadd.s32 4294967295, %s612_s21   ;;  %p516_p0 = scmp.ge.s32.totalorder %s612_s21, 1  ;;  %s612_s21 = sphi %s650_s21, %s16_s21  }
   0x2   : > { %p222_p1 = scmp.lt.s32.totalorder %s612_s21, 3 }
   0x4   : > { %p223_p2 = pnand %p516_p0, %p222_p1 }
   0x5   : > { %p257_p3 = scmp.lt.s32.totalorder (!%p223_p2), %s512_s22, 1  ;;  %s614_s15 = smov (!%p223_p2), 64  }
   0x6   : > { %226 = sbr.rel (%p223_p2) target bundleno = 284 (0x11c), region = 44 }
   0xb   : > { %v584_v0 = vld [vmem:[%s729_s1 + $0x38] sm:$0xff]  ;;  %s736_s22 = smov (!%p257_p3, %s512_s22), 1  ;;  %v583_v2 = vld [vmem:[%s729_s1 + $0x30] sm:$0xff]  ;;  %v582_v6 = vld [vmem:[%s729_s1 + $0x28] sm:$0xff]  ;;  %vm287_vm0 = vcmask 523264   ;;  %vm441_vm1 = vcmask 261120  }
   0xc   : > { %v588_v1 = vld [vmem:[%s729_s1 + $0x58] sm:$0xff]  ;;  %395 = vmatpush.bf16.msra.mxu0 %v584_v0  ;;  %v587_v3 = vld [vmem:[%s729_s1 + $0x50] sm:$0xff]  ;;  %s670_s7 = sshll.u32 %s736_s22, 4  ;;  %v586_v8 = vld [vmem:[%s729_s1 + $0x48] sm:$0xff]  ;;  %vm443_vm2 = vcmask 254976  }
   0xd   : > { %413 = vmatpush.bf16.msra.mxu1 %v588_v1  ;;  %s676_s10 = scalar_lea.vmem %s728_s0, %s670_s7  ;;  %v581_v9 = vld [vmem:[%s729_s1 + $0x20] sm:$0xff]  ;;  %v580_v13 = vld [vmem:[%s729_s1 + $0x18] sm:$0xff]  ;;  %v579_v15 = vld [vmem:[%s729_s1 + $0x10] sm:$0xff]  ;;  %s266_s11 = scalar_lea.vmem %s731_s3, %s670_s7 }
   0xe   : > { %v275_v4 = vld [vmem:[%s676_s10 + $0x1] sm:$0xff]  ;;  %v276_v5 = vld [vmem:[%s676_s10 + $0x9] sm:$0x3]  ;;  %v603_v26 = vld [vmem:[%s730_s2] ss:$0 sm:$0xff]  ;;  %s271_s17 = scalar_lea.vmem %s734_s6, %s670_s7 }
   0xf   : > { %v598_v7 = vpack.i.bf16 %v276_v5, %v275_v4  ;;  %v585_v10 = vld [vmem:[%s729_s1 + $0x40] sm:$0xff]  ;;  %v278_v12 = vld [vmem:[%s676_s10 + $0xa] sm:$0x3]  ;;  %v274_v20 = vld [vmem:[%s676_s10 + $0x8] sm:$0x3] }
  0x10   : > { %396 = vmatpush.bf16.msra.mxu0 %v583_v2  ;;  %v277_v11 = vld [vmem:[%s676_s10 + $0x2] sm:$0xff]  ;;  %v604_v32 = vld [vmem:[%s732_s4] ss:$0 sm:$0xff] }
  0x11   : > { %414 = vmatpush.bf16.msra.mxu1 %v587_v3  ;;  %599 = vrot.lane.b32.xlu0 %v598_v7, %s614_s15  ;;  %v291_v14 = vpack.c.bf16 %v278_v12, %v277_v11  ;;  %v578_v16 = vld [vmem:[%s729_s1 + $0x8] sm:$0xff]  ;;  %v577_v17 = vld [vmem:[%s729_s1] sm:$0xff] }
  0x12   : > { %v273_v19 = vld [vmem:[%s676_s10] sm:$0xff]  ;;  %v424_v40 = vld [vmem:[%s266_s11 + $0x8] sm:$0x3] }
  0x13   : > { %v423_v30 = vld [vmem:[%s266_s11] sm:$0xff] }
  0x14   : > { %397 = vmatpush.bf16.msra.mxu0 %v582_v6  ;;  %v605_v34 = vld [vmem:[%s733_s5] ss:$0 sm:$0xff] }
  0x15   : > { %415 = vmatpush.bf16.msra.mxu1 %v586_v8 }
  0x18   : > { %398 = vmatpush.bf16.msra.mxu0 %v581_v9 }
  0x19   : > { %416 = vmatpush.bf16.msra.mxu1 %v585_v10 }
  0x1c   : > { %399 = vmatpush.bf16.msra.mxu0 %v580_v13  ;;  %571 = vmatmul.msk.bf16.vlgmr.msra.gmra.mxu1 %vm287_vm0, %v291_v14 }
  0x20   : > { %400 = vmatpush.bf16.msra.mxu0 %v579_v15 }
  0x24   : > { %401 = vmatpush.bf16.msra.mxu0 %v578_v16 }
  0x28   : > { %402 = vmatpush.bf16.msra.mxu0 %v577_v17 }
  0x83   : > { %v600_v18 = vpop.permute.xlu0 %599 }
  0x84   : > { %v602_v21 = vunpack.i.h.bf16 %v600_v18  ;;  %v601_v22 = vunpack.i.l.bf16 %v600_v18 }
  0x86   : > { %v288_v23 = vsel %vm287_vm0, %v273_v19, %v601_v22  ;;  %v289_v24 = vsel %vm287_vm0, %v274_v20, %v602_v21 }
  0x87   : > { %v290_v25 = vpack.c.bf16 %v289_v24, %v288_v23 }
  0x89   : > { %403 = vmatmul.bf16.vlgmr.msra.gmra.mxu0 %v290_v25 }
  0x99   : > { %v418_v27 = vpop.f32.mrf.mxu1 }
  0xa1   : > { %v420_v39 = vpop.f32.mrf.mxu1 }
 0x106   : > { %v404_v28 = vpop.f32.mrf.mxu0 }
 0x107   : > { %v405_v29 = vadd.f32 %v603_v26, %v404_v28 }
 0x109   : > { %v419_v31 = vadd.f32 %v418_v27, %v405_v29 }
 0x10b   : > { %v425_v33 = vadd.f32 %v423_v30, %v419_v31 }
 0x10d   : > { %v431_v35 = vmul.f32 %v604_v32, %v425_v33 }
 0x10e   : > { %v406_v36 = vpop.f32.mrf.mxu0 }
 0x10f   : > { %v437_v37 = vadd.f32 %v605_v34, %v431_v35  ;;  %v407_v38 = vadd.f32 %v603_v26, %v406_v36 }
 0x111   : > { %v439_v41 = vmax.f32 %v437_v37, 0.0  ;;  %v421_v42 = vadd.f32 %v420_v39, %v407_v38 }
 0x113   : > { %442 = vst.msk [vmem:[%s271_s17] sm:$0xff] %vm441_vm1, %v439_v41  ;;  %v426_v43 = vadd.f32 %v424_v40, %v421_v42 }
 0x115   : > { %v432_v44 = vmul.f32 %v604_v32, %v426_v43 }
 0x117   : > { %v438_v45 = vadd.f32 %v605_v34, %v432_v44 }
 0x119   : > { %v440_v46 = vmax.f32 %v438_v45, 0.0 }
 0x11b   : > { %444 = vst.msk [vmem:[%s271_s17 + $0x8] sm:$0x3] %vm443_vm2, %v440_v46 }
 0x11c PF: > { %s16_s21 = sadd.s32 1, %s612_s21  }
 0x11d   : > { %p13_p4 = scmp.ge.s32.totalorder %s16_s21, 4  }
 0x11f   :  { %15 = sbr.rel (!%p13_p4) target bundleno = 1 (0x1), region = 77 }

// kernel: enformer_forward.22
= control target key start
LH: loop header
LB: loop body
LE: loop exit
PB: predicated region body
PF: predicated region fallthrough
CT: control target
= control target key end

     0   :  { %s498_s12 = smov 0   ;;  %s573_s0 = inlined_call_operand.vmem [shape: f32[2,12,64], index: 0, kind: input, shape index: {}]   ;;  %s574_s1 = inlined_call_operand.vmem [shape: bf16[192,64], index: 1, kind: input, shape index: {}]   ;;  %s575_s2 = inlined_call_operand.vmem [shape: f32[1,64], index: 2, kind: input, shape index: {}]   ;;  %s576_s3 = inlined_call_operand.vmem [shape: f32[2,10,64], index: 3, kind: output, shape index: {}]  }
   0x1 LB: > { %s380_s13 = sadd.s32 4294967295, %s475_s12   ;;  %p384_p0 = scmp.ge.s32.totalorder %s475_s12, 1  ;;  %s475_s12 = sphi %s498_s12, %s13_s12  }
   0x2   : > { %p137_p1 = scmp.lt.s32.totalorder %s475_s12, 3 }
   0x4   : > { %p138_p2 = pnand %p384_p0, %p137_p1 }
   0x5   : > { %p161_p3 = scmp.lt.s32.totalorder (!%p138_p2), %s380_s13, 1  ;;  %s477_s30 = smov (!%p138_p2), 64  }
   0x6   : > { %141 = sbr.rel (%p138_p2) target bundleno = 276 (0x114), region = 32 }
   0xb   : > { %v449_v0 = vld [vmem:[%s574_s1 + $0x38] sm:$0xff]  ;;  %s578_s13 = smov (!%p161_p3, %s380_s13), 1  ;;  %v448_v2 = vld [vmem:[%s574_s1 + $0x30] sm:$0xff]  ;;  %v447_v6 = vld [vmem:[%s574_s1 + $0x28] sm:$0xff]  ;;  %vm186_vm0 = vcmask 523264   ;;  %vm323_vm1 = vcmask 517120  }
   0xc   : > { %v453_v1 = vld [vmem:[%s574_s1 + $0x58] sm:$0xff]  ;;  %294 = vmatpush.bf16.msra.mxu0 %v449_v0  ;;  %v452_v3 = vld [vmem:[%s574_s1 + $0x50] sm:$0xff]  ;;  %s440_s22 = sshll.u32 %s578_s13, 4  ;;  %v451_v8 = vld [vmem:[%s574_s1 + $0x48] sm:$0xff] }
   0xd   : > { %312 = vmatpush.bf16.msra.mxu1 %v453_v1  ;;  %s526_s25 = scalar_lea.vmem %s573_s0, %s440_s22  ;;  %v446_v9 = vld [vmem:[%s574_s1 + $0x20] sm:$0xff]  ;;  %v445_v13 = vld [vmem:[%s574_s1 + $0x18] sm:$0xff]  ;;  %v444_v15 = vld [vmem:[%s574_s1 + $0x10] sm:$0xff]  ;;  %s170_s23 = scalar_lea.vmem %s576_s3, %s440_s22 }
   0xe   : > { %v174_v4 = vld [vmem:[%s526_s25 + $0x1] sm:$0xff]  ;;  %v175_v5 = vld [vmem:[%s526_s25 + $0x9] sm:$0x3]  ;;  %v468_v26 = vld [vmem:[%s575_s2] ss:$0 sm:$0xff] }
   0xf   : > { %v463_v7 = vpack.i.bf16 %v175_v5, %v174_v4  ;;  %v450_v10 = vld [vmem:[%s574_s1 + $0x40] sm:$0xff]  ;;  %v177_v12 = vld [vmem:[%s526_s25 + $0xa] sm:$0x3]  ;;  %v173_v20 = vld [vmem:[%s526_s25 + $0x8] sm:$0x3] }
  0x10   : > { %295 = vmatpush.bf16.msra.mxu0 %v448_v2  ;;  %v176_v11 = vld [vmem:[%s526_s25 + $0x2] sm:$0xff] }
  0x11   : > { %313 = vmatpush.bf16.msra.mxu1 %v452_v3  ;;  %464 = vrot.lane.b32.xlu0 %v463_v7, %s477_s30  ;;  %v190_v14 = vpack.c.bf16 %v177_v12, %v176_v11  ;;  %v443_v16 = vld [vmem:[%s574_s1 + $0x8] sm:$0xff]  ;;  %v442_v17 = vld [vmem:[%s574_s1] sm:$0xff] }
  0x12   : > { %v172_v19 = vld [vmem:[%s526_s25] sm:$0xff] }
  0x14   : > { %296 = vmatpush.bf16.msra.mxu0 %v447_v6 }
  0x15   : > { %314 = vmatpush.bf16.msra.mxu1 %v451_v8 }
  0x18   : > { %297 = vmatpush.bf16.msra.mxu0 %v446_v9 }
  0x19   : > { %315 = vmatpush.bf16.msra.mxu1 %v450_v10 }
  0x1c   : > { %298 = vmatpush.bf16.msra.mxu0 %v445_v13  ;;  %437 = vmatmul.msk.bf16.vlgmr.msra.gmra.mxu1 %vm186_vm0, %v190_v14 }
  0x20   : > { %299 = vmatpush.bf16.msra.mxu0 %v444_v15 }
  0x24   : > { %300 = vmatpush.bf16.msra.mxu0 %v443_v16 }
  0x28   : > { %301 = vmatpush.bf16.msra.mxu0 %v442_v17 }
  0x83   : > { %v465_v18 = vpop.permute.xlu0 %464 }
  0x84   : > { %v467_v21 = vunpack.i.h.bf16 %v465_v18  ;;  %v466_v22 = vunpack.i.l.bf16 %v465_v18 }
  0x86   : > { %v187_v23 = vsel %vm186_vm0, %v172_v19, %v466_v22  ;;  %v188_v24 = vsel %vm186_vm0, %v173_v20, %v467_v21 }
  0x87   : > { %v189_v25 = vpack.c.bf16 %v188_v24, %v187_v23 }
  0x89   : > { %302 = vmatmul.bf16.vlgmr.msra.gmra.mxu0 %v189_v25 }
  0x99   : > { %v317_v27 = vpop.f32.mrf.mxu1 }
  0xa1   : > { %v319_v33 = vpop.f32.mrf.mxu1 }
 0x106   : > { %v303_v28 = vpop.f32.mrf.mxu0 }
 0x107   : > { %v304_v29 = vadd.f32 %v468_v26, %v303_v28 }
 0x109   : > { %v318_v30 = vadd.f32 %v317_v27, %v304_v29 }
 0x10b   : > { %322 = vst.msk [vmem:[%s170_s23] sm:$0xff] %vm186_vm0, %v318_v30 }
 0x10e   : > { %v305_v31 = vpop.f32.mrf.mxu0 }
 0x10f   : > { %v306_v32 = vadd.f32 %v468_v26, %v305_v31 }
 0x111   : > { %v320_v34 = vadd.f32 %v319_v33, %v306_v32 }
 0x113   : > { %324 = vst.msk [vmem:[%s170_s23 + $0x8] sm:$0x3] %vm323_vm1, %v320_v34 }
 0x114 PF: > { %s13_s12 = sadd.s32 1, %s475_s12  }
 0x115   : > { %p10_p4 = scmp.ge.s32.totalorder %s13_s12, 4  }
 0x117   :  { %12 = sbr.rel (!%p10_p4) target bundleno = 1 (0x1), region = 62 }

// kernel: enformer_forward.23
= control target key start
LH: loop header
LB: loop body
LE: loop exit
PB: predicated region body
PF: predicated region fallthrough
CT: control target
= control target key end

     0   :  { %s552_s20 = smov 0   ;;  %s594_s0 = inlined_call_operand.vmem [shape: f32[2,640], index: 0, kind: input, shape index: {}]   ;;  %s595_s1 = inlined_call_operand.vmem [shape: bf16[640,64], index: 1, kind: input, shape index: {}]   ;;  %s596_s2 = inlined_call_operand.vmem [shape: f32[1,64], index: 2, kind: input, shape index: {}]   ;;  %s597_s3 = inlined_call_operand.vmem [shape: bf16[64,1], index: 3, kind: input, shape index: {}]   ;;  %s598_s4 = inlined_call_operand.<no memory space> [shape: f32[1,1], index: 4, kind: input, shape index: {}]   ;;  %s599_s5 = inlined_call_operand.vmem [shape: f32[2,1], index: 5, kind: output, shape index: {}]  }
   0x1   :  { %v10_v0 = vstv %s598_s4 }
   0x2   :  { %11 = vst [vmem:[#allocation3] sm:$0x1] %v10_v0 }
   0x3 LB: > { %s558_s21 = sadd.s32 4294967295, %s516_s20   ;;  %p430_p0 = scmp.ge.s32.totalorder %s516_s20, 1  ;;  %s516_s20 = sphi %s552_s20, %s17_s20  }
   0x4   : > { %p194_p1 = scmp.lt.s32.totalorder %s516_s20, 6 }
   0x6   : > { %p195_p2 = pnand %p430_p0, %p194_p1 }
   0x7   : > { %p221_p3 = scmp.lt.s32.totalorder (!%p195_p2), %s558_s21, 4  ;;  %s432_s4 = sshll.u32 (!%p195_p2), %s558_s21, 4 }
   0x8   : > { %198 = sbr.rel (%p195_p2) target bundleno = 337 (0x151), region = 40  ;;  %p226_p4 = scmp.lt.s32.totalorder (!%p195_p2), %s432_s4, 79 }
   0x9   : > { %p434_p5 = scmp.ne.s32.totalorder (!%p195_p2), %s558_s21, 0 }
   0xd   : > { %s222_s22 = scalar_select %p221_p3, %s558_s21, 4 }
   0xe   : > { %s601_s4 = smov (!%p226_p4, %s432_s4), 79  ;;  %235 = sbr.rel (%p434_p5) target bundleno = 21 (0x15), region = 44 }
   0xf   : > { %s431_s23 = sshll.u32 %s222_s22, 1  ;;  %s433_s27 = sshll.u32 %s601_s4, 2 }
  0x10   : > { %s224_s26 = scalar_lea.vmem %s594_s0, %s431_s23  ;;  %s229_s30 = scalar_lea.vmem %s595_s1, %s433_s27 }
  0x13   : > { %vm236_vm0 = vcmask 517120   ;;  %v518_v1 = vmov 0.0  }
  0x14   : > { %237 = vst.msk [vmem:[#allocation2] sm:$0x3] %vm236_vm0, %v518_v1 }
  0x15 PF: > { %v494_v2 = vld [vmem:[%s229_s30 + $0x38] sm:$0xff]  ;;  %v493_v3 = vld [vmem:[%s229_s30 + $0x30] sm:$0xff]  ;;  %v492_v4 = vld [vmem:[%s229_s30 + $0x28] sm:$0xff]  ;;  %vm319_vm1 = vcmask 517120   ;;  %p467_p6 = scmp.ne.s32.totalorder %s558_s21, 4 }
  0x16   : > { %305 = vmatpush.bf16.msra.mxu0 %v494_v2  ;;  %v491_v5 = vld [vmem:[%s229_s30 + $0x20] sm:$0xff]  ;;  %v490_v6 = vld [vmem:[%s229_s30 + $0x18] sm:$0xff]  ;;  %v489_v7 = vld [vmem:[%s229_s30 + $0x10] sm:$0xff] }
  0x17   : > { %v488_v8 = vld [vmem:[%s229_s30 + $0x8] sm:$0xff]  ;;  %v487_v9 = vld [vmem:[%s229_s30] sm:$0xff] }
  0x18   : > { %v239_v10 = vld [vmem:[%s224_s26] sm:$0x3] }
  0x19   : > { %v240_v11 = vpack.c.bf16 %v239_v10, %v239_v10 }
  0x1a   : > { %306 = vmatpush.bf16.msra.mxu0 %v493_v3 }
  0x1b   : > { %v238_v12 = vld [vmem:[#allocation2] sm:$0x3] }
  0x1e   : > { %307 = vmatpush.bf16.msra.mxu0 %v492_v4 }
  0x22   : > { %308 = vmatpush.bf16.msra.mxu0 %v491_v5 }
  0x26   : > { %309 = vmatpush.bf16.msra.mxu0 %v490_v6 }
  0x2a   : > { %310 = vmatpush.bf16.msra.mxu0 %v489_v7 }
  0x2e   : > { %311 = vmatpush.bf16.msra.mxu0 %v488_v8 }
  0x32   : > { %312 = vmatpush.bf16.msra.mxu0 %v487_v9 }
  0x35   : > { %313 = vmatmul.bf16.vlgmr.msra.gmra.mxu0 %v240_v11 }
  0xb2   : > { %v314_v13 = vpop.f32.mrf.mxu0 }
  0xb3   : > { %v318_v14 = vadd.f32 %v314_v13, %v238_v12 }
  0xb5   : > { %320 = vst.msk [vmem:[#allocation2] sm:$0x3] %vm319_vm1, %v318_v14 }
  0xb6   : > { %324 = sbr.rel (%p467_p6) target bundleno = 337 (0x151), region = 48 }
  0xba   : > { %v316_v15 = vpop.f32.mrf.mxu0 }
  0xbb   : > { %v498_v16 = vld [vmem:[%s597_s3 + $0x18] sm:$0xff]  ;;  %v497_v17 = vld [vmem:[%s597_s3 + $0x10] sm:$0xff]  ;;  %v508_v18 = vld [vmem:[%s596_s2] ss:$0 sm:$0xff]  ;;  %vm368_vm2 = vcmask 523264   ;;  %vm385_vm3 = vcmask 1024  }
  0xbc   : > { %376 = vmatpush.bf16.msra.mxu0 %v498_v16  ;;  %v496_v19 = vld [vmem:[%s597_s3 + $0x8] sm:$0xff]  ;;  %v325_v20 = vld [vmem:[#allocation2] sm:$0x3]  ;;  %v509_v24 = vld [vmem:[#allocation3] ss:$0 sm:$0xff] }
  0xbd   : > { %v330_v21 = vadd.f32 %v508_v18, %v325_v20  ;;  %v495_v22 = vld [vmem:[%s597_s3] sm:$0xff] }
  0xbf   : > { %v331_v23 = vpack.c.bf16 %v330_v21, %v330_v21 }
  0xc0   : > { %377 = vmatpush.bf16.msra.mxu0 %v497_v17 }
  0xc4   : > { %378 = vmatpush.bf16.msra.mxu0 %v496_v19 }
  0xc8   : > { %379 = vmatpush.bf16.msra.mxu0 %v495_v22 }
  0xcb   : > { %484 = vmatmul.msk.bf16.vlgmr.msra.gmra.mxu0 %vm368_vm2, %v331_v23 }
 0x148   : > { %v381_v25 = vpop.f32.mrf.mxu0 }
 0x149   : > { %v382_v26 = vadd.f32 %v509_v24, %v381_v25 }
 0x14b   : > { %386 = vst.msk [vmem:[%s599_s5] sm:$0x3] %vm385_vm3, %v382_v26 }
 0x150   : > { %v383_v27 = vpop.f32.mrf.mxu0 }
 0x151 PF: > { %s17_s20 = sadd.s32 1, %s516_s20  }
 0x152   : > { %p14_p7 = scmp.ge.s32.totalorder %s17_s20, 7  }
 0x154   :  { %16 = sbr.rel (!%p14_p7) target bundleno = 3 (0x3), region = 77 }

</bundles_post_ra>
